<compile_context>
chip_gen: v6e
topology: v6e:2x2x1
jax: 0.10.0
libtpu: 0.0.40
codegen_flags: <defaults>
</compile_context>

<pallas_src>
import math

import jax
import jax.numpy as jnp
from jax.experimental import pallas as pl
from jax.experimental.pallas import tpu as pltpu


def _vae_kernel(x_ref, eps_ref,
                w1_ref, b1_ref, w2m_ref, b2m_ref, w2l_ref, b2l_ref,
                w3_ref, b3_ref, w4_ref, b4_ref,
                xr_ref, mu_ref, logvar_ref):
    cdt = w1_ref.dtype      # MXU operand dtype (bf16); accumulation is f32.

    x = x_ref[...].astype(cdt)

    # ---- encoder ----
    h1 = jnp.dot(x, w1_ref[...], preferred_element_type=jnp.float32) + b1_ref[...]
    h1 = jnp.maximum(h1, 0.0).astype(cdt)                      # ReLU

    # Two lane-dense heads instead of one (B, 2*d_z) result + sub-128 slicing.
    mu = jnp.dot(h1, w2m_ref[...], preferred_element_type=jnp.float32) + b2m_ref[...]
    logvar = jnp.dot(h1, w2l_ref[...], preferred_element_type=jnp.float32) + b2l_ref[...]

    # ---- reparameterise (training mode; eps supplied by caller) ----
    z = mu + eps_ref[...] * jnp.exp(0.5 * logvar)

    # ---- decoder ----
    h2 = jnp.dot(z.astype(cdt), w3_ref[...], preferred_element_type=jnp.float32) + b3_ref[...]
    h2 = jnp.maximum(h2, 0.0).astype(cdt)                      # ReLU
    logits = jnp.dot(h2, w4_ref[...], preferred_element_type=jnp.float32) + b4_ref[...]

    # sigmoid = 1 / (1 + exp(-logits)); exp and approx reciprocal both run on
    # the EUP slot instead of a VALU divide.
    xr = pl.reciprocal(1.0 + jnp.exp(-logits), approx=True)

    xr_ref[...] = xr.astype(xr_ref.dtype)
    mu_ref[...] = mu.astype(mu_ref.dtype)
    logvar_ref[...] = logvar.astype(logvar_ref.dtype)


def vae_v2_forward(x, params, eps, *, block_m=256):
    """x: (B, d_in) f32; eps: (B, d_z) f32; params: dict (see init_params)."""
    B, d_in = x.shape
    d_z = eps.shape[-1]
    d_h = params["w1"].shape[-1]

    # Batch tile: 256 saturates the v6e/v7x MXU M dim (also a multiple of 128
    # for v5e); clamp to B for tiny batches so the block equals the full dim.
    bm = min(block_m, B)
    grid = (pl.cdiv(B, bm),)

    def tiled(cols):
        return pl.BlockSpec((bm, cols), lambda i: (i, 0))

    def pinned(a):
        # Whole-array block with a constant index_map -> stays VMEM-resident.
        return pl.BlockSpec(a.shape, lambda i: (0,) * a.ndim)

    weight_args = (params["w1"], params["b1"],
                   params["w2m"], params["b2m"],
                   params["w2l"], params["b2l"],
                   params["w3"], params["b3"],
                   params["w4"], params["b4"])

    in_specs = [tiled(d_in), tiled(d_z)] + [pinned(a) for a in weight_args]
    out_specs = (tiled(d_in), tiled(d_z), tiled(d_z))
    out_shape = (jax.ShapeDtypeStruct((B, d_in), jnp.float32),   # xr
                 jax.ShapeDtypeStruct((B, d_z), jnp.float32),    # mu
                 jax.ShapeDtypeStruct((B, d_z), jnp.float32))    # logvar

    # Advisory scheduler hint so XLA overlaps this call with surrounding ops.
    flops = 2 * B * (d_in * d_h + d_h * 2 * d_z + d_z * d_h + d_h * d_in)
    transcendentals = B * (d_z + 2 * d_in)      # exp(0.5*logvar), exp(-logits), rcp
    w_bytes = sum(int(a.size) * a.dtype.itemsize for a in weight_args)
    bytes_accessed = (x.nbytes + eps.nbytes + w_bytes
                      + B * d_in * 4 + 2 * B * d_z * 4)
    cost = pl.CostEstimate(flops=flops, transcendentals=transcendentals,
                           bytes_accessed=bytes_accessed)

    # Explicit VMEM budget: resident weights + double-buffered I/O tiles +
    # f32 intermediates, 2x headroom, capped well under v7x's 64 MiB VMEM.
    tile_bytes = 2 * bm * (2 * d_in + 3 * d_z) * 4     # dbl-buffered x/eps/xr/mu/logvar
    interm_bytes = bm * (2 * d_h + 2 * d_in + 4 * d_z) * 4
    vmem_limit = int(min(max(2 * (w_bytes + tile_bytes + interm_bytes),
                             16 * 1024 * 1024),
                         48 * 1024 * 1024))

    return pl.pallas_call(
        _vae_kernel,
        grid=grid,
        in_specs=in_specs,
        out_specs=out_specs,
        out_shape=out_shape,
        compiler_params=pltpu.CompilerParams(
            dimension_semantics=("parallel",),
            vmem_limit_bytes=vmem_limit),
        cost_estimate=cost,
    )(x, eps, *weight_args)


def init_params(key, d_in, d_z, d_h, param_dtype=jnp.bfloat16):
    """PyTorch-style U(-1/sqrt(fan_in), +1/sqrt(fan_in)) init.

    Weights are stored as (in_features, out_features) (transpose of nn.Linear)
    in `param_dtype` for the MXU; biases stay f32 and are added post-accum.
    The encoder head W2/b2 is split column-wise into mu / logvar halves, which
    matches PyTorch's reshape(-1, 2, d_z)[:, 0, :] / [:, 1, :] convention.
    """
    ks = jax.random.split(key, 8)

    def lin(kw, kb, fan_in, fan_out):
        bound = 1.0 / math.sqrt(fan_in)
        w = jax.random.uniform(kw, (fan_in, fan_out), jnp.float32, -bound, bound)
        b = jax.random.uniform(kb, (1, fan_out), jnp.float32, -bound, bound)
        return w.astype(param_dtype), b

    w1, b1 = lin(ks[0], ks[1], d_in, d_h)
    w2, b2 = lin(ks[2], ks[3], d_h, 2 * d_z)
    w3, b3 = lin(ks[4], ks[5], d_z, d_h)
    w4, b4 = lin(ks[6], ks[7], d_h, d_in)

    return dict(w1=w1, b1=b1,
                w2m=w2[:, :d_z], b2m=b2[:, :d_z],
                w2l=w2[:, d_z:], b2l=b2[:, d_z:],
                w3=w3, b3=b3, w4=w4, b4=b4)


def _reference(x, params, eps):
    """Pure-JAX mirror of the kernel (same dtypes) for the sanity check."""
    cdt = params["w1"].dtype
    h1 = jnp.maximum(
        jnp.dot(x.astype(cdt), params["w1"], preferred_element_type=jnp.float32)
        + params["b1"], 0.0)
    h1c = h1.astype(cdt)
    mu = jnp.dot(h1c, params["w2m"], preferred_element_type=jnp.float32) + params["b2m"]
    logvar = jnp.dot(h1c, params["w2l"], preferred_element_type=jnp.float32) + params["b2l"]
    z = mu + eps * jnp.exp(0.5 * logvar)
    h2 = jnp.maximum(
        jnp.dot(z.astype(cdt), params["w3"], preferred_element_type=jnp.float32)
        + params["b3"], 0.0)
    logits = jnp.dot(h2.astype(cdt), params["w4"],
                     preferred_element_type=jnp.float32) + params["b4"]
    return jax.nn.sigmoid(logits), mu, logvar


if __name__ == "__main__":
    # Small, lane-aligned shapes consistent with the module (d_in/d_z/d_h are
    # ctor args).  B=512 with block_m=256 exercises a 2-step pipelined grid.
    B, d_in, d_z, d_h = 512, 512, 128, 256

    key = jax.random.PRNGKey(0)
    k_params, k_x, k_eps = jax.random.split(key, 3)

    params = init_params(k_params, d_in, d_z, d_h)
    x = jax.random.uniform(k_x, (B, d_in), jnp.float32)       # pixels in [0, 1)
    eps = jax.random.normal(k_eps, (B, d_z), jnp.float32)     # reparam noise

    xr, mu, logvar = vae_v2_forward(x, params, eps, block_m=256)
    jax.block_until_ready((xr, mu, logvar))

    # Sanity-check against the plain-JAX reference (same bf16 weights).
    xr_ref, mu_ref, lv_ref = _reference(x, params, eps)
    assert xr.shape == (B, d_in) and mu.shape == (B, d_z) and logvar.shape == (B, d_z)
    assert jnp.allclose(mu, mu_ref, atol=1e-3, rtol=1e-3)
    assert jnp.allclose(logvar, lv_ref, atol=1e-3, rtol=1e-3)
    # xr tolerance covers the EUP approximate-reciprocal sigmoid.
    assert jnp.allclose(xr, xr_ref, atol=1e-2, rtol=1e-2)
    assert bool(jnp.all(jnp.isfinite(xr)))

    print("KERNEL_OK")
</pallas_src>

<mosaic_0001>
module attributes {stable_mosaic.version = 11 : i64} {
  func.func @_vae_kernel(%arg0: i32, %arg1: memref<256x512xf32, #tpu.memory_space<vmem>>, %arg2: memref<256x128xf32, #tpu.memory_space<vmem>>, %arg3: memref<512x256xbf16, #tpu.memory_space<vmem>>, %arg4: memref<1x256xf32, #tpu.memory_space<vmem>>, %arg5: memref<256x128xbf16, #tpu.memory_space<vmem>>, %arg6: memref<1x128xf32, #tpu.memory_space<vmem>>, %arg7: memref<256x128xbf16, #tpu.memory_space<vmem>>, %arg8: memref<1x128xf32, #tpu.memory_space<vmem>>, %arg9: memref<128x256xbf16, #tpu.memory_space<vmem>>, %arg10: memref<1x256xf32, #tpu.memory_space<vmem>>, %arg11: memref<256x512xbf16, #tpu.memory_space<vmem>>, %arg12: memref<1x512xf32, #tpu.memory_space<vmem>>, %arg13: memref<256x512xf32, #tpu.memory_space<vmem>>, %arg14: memref<256x128xf32, #tpu.memory_space<vmem>>, %arg15: memref<256x128xf32, #tpu.memory_space<vmem>>) attributes {dimension_semantics = [#tpu.dimension_semantics<parallel>], iteration_bounds = array<i64: 2>, scalar_prefetch = 0 : i64, scratch_operands = 0 : i64, tpu.core_type = #tpu.core_type<tc>, window_params = [{transform_indices = @transform_0, window_bounds = array<i64: 256, 512>}, {transform_indices = @transform_1, window_bounds = array<i64: 256, 128>}, {pipeline_mode = #tpu.pipeline_mode<synchronous>, transform_indices = @transform_2, window_bounds = array<i64: 512, 256>}, {pipeline_mode = #tpu.pipeline_mode<synchronous>, transform_indices = @transform_3, window_bounds = array<i64: 1, 256>}, {pipeline_mode = #tpu.pipeline_mode<synchronous>, transform_indices = @transform_4, window_bounds = array<i64: 256, 128>}, {pipeline_mode = #tpu.pipeline_mode<synchronous>, transform_indices = @transform_5, window_bounds = array<i64: 1, 128>}, {pipeline_mode = #tpu.pipeline_mode<synchronous>, transform_indices = @transform_6, window_bounds = array<i64: 256, 128>}, {pipeline_mode = #tpu.pipeline_mode<synchronous>, transform_indices = @transform_7, window_bounds = array<i64: 1, 128>}, {pipeline_mode = #tpu.pipeline_mode<synchronous>, transform_indices = @transform_8, window_bounds = array<i64: 128, 256>}, {pipeline_mode = #tpu.pipeline_mode<synchronous>, transform_indices = @transform_9, window_bounds = array<i64: 1, 256>}, {pipeline_mode = #tpu.pipeline_mode<synchronous>, transform_indices = @transform_10, window_bounds = array<i64: 256, 512>}, {pipeline_mode = #tpu.pipeline_mode<synchronous>, transform_indices = @transform_11, window_bounds = array<i64: 1, 512>}, {transform_indices = @transform_12, window_bounds = array<i64: 256, 512>}, {transform_indices = @transform_13, window_bounds = array<i64: 256, 128>}, {transform_indices = @transform_14, window_bounds = array<i64: 256, 128>}]} {
    %c0 = arith.constant 0 : index
    %c0_0 = arith.constant 0 : index
    %0 = vector.load %arg1[%c0, %c0_0] : memref<256x512xf32, #tpu.memory_space<vmem>>, vector<256x512xf32>
    %1 = arith.truncf %0 : vector<256x512xf32> to vector<256x512xbf16>
    %c0_1 = arith.constant 0 : index
    %c0_2 = arith.constant 0 : index
    %2 = vector.load %arg3[%c0_1, %c0_2] : memref<512x256xbf16, #tpu.memory_space<vmem>>, vector<512x256xbf16>
    %cst = arith.constant dense<0.000000e+00> : vector<256x256xf32>
    %3 = tpu.matmul %1, %2, %cst {dimension_numbers = #tpu.dot_dimension_numbers<[1], [0], [0], [1], [0, 0, 1, 1], [], []>} : vector<256x512xbf16>, vector<512x256xbf16>, vector<256x256xf32> -> vector<256x256xf32>
    %c0_3 = arith.constant 0 : index
    %c0_4 = arith.constant 0 : index
    %4 = vector.load %arg4[%c0_3, %c0_4] : memref<1x256xf32, #tpu.memory_space<vmem>>, vector<1x256xf32>
    %5 = vector.broadcast %4 : vector<1x256xf32> to vector<256x256xf32>
    %6 = arith.addf %3, %5 : vector<256x256xf32>
    %cst_5 = arith.constant 0.000000e+00 : f32
    %7 = vector.broadcast %cst_5 : f32 to vector<256x256xf32>
    %8 = arith.maximumf %6, %7 : vector<256x256xf32>
    %9 = arith.truncf %8 : vector<256x256xf32> to vector<256x256xbf16>
    %c0_6 = arith.constant 0 : index
    %c0_7 = arith.constant 0 : index
    %10 = vector.load %arg5[%c0_6, %c0_7] : memref<256x128xbf16, #tpu.memory_space<vmem>>, vector<256x128xbf16>
    %cst_8 = arith.constant dense<0.000000e+00> : vector<256x128xf32>
    %11 = tpu.matmul %9, %10, %cst_8 {dimension_numbers = #tpu.dot_dimension_numbers<[1], [0], [0], [1], [0, 0, 1, 1], [], []>} : vector<256x256xbf16>, vector<256x128xbf16>, vector<256x128xf32> -> vector<256x128xf32>
    %c0_9 = arith.constant 0 : index
    %c0_10 = arith.constant 0 : index
    %12 = vector.load %arg6[%c0_9, %c0_10] : memref<1x128xf32, #tpu.memory_space<vmem>>, vector<1x128xf32>
    %13 = vector.broadcast %12 : vector<1x128xf32> to vector<256x128xf32>
    %14 = arith.addf %11, %13 : vector<256x128xf32>
    %c0_11 = arith.constant 0 : index
    %c0_12 = arith.constant 0 : index
    %15 = vector.load %arg7[%c0_11, %c0_12] : memref<256x128xbf16, #tpu.memory_space<vmem>>, vector<256x128xbf16>
    %cst_13 = arith.constant dense<0.000000e+00> : vector<256x128xf32>
    %16 = tpu.matmul %9, %15, %cst_13 {dimension_numbers = #tpu.dot_dimension_numbers<[1], [0], [0], [1], [0, 0, 1, 1], [], []>} : vector<256x256xbf16>, vector<256x128xbf16>, vector<256x128xf32> -> vector<256x128xf32>
    %c0_14 = arith.constant 0 : index
    %c0_15 = arith.constant 0 : index
    %17 = vector.load %arg8[%c0_14, %c0_15] : memref<1x128xf32, #tpu.memory_space<vmem>>, vector<1x128xf32>
    %18 = vector.broadcast %17 : vector<1x128xf32> to vector<256x128xf32>
    %19 = arith.addf %16, %18 : vector<256x128xf32>
    %c0_16 = arith.constant 0 : index
    %c0_17 = arith.constant 0 : index
    %20 = vector.load %arg2[%c0_16, %c0_17] : memref<256x128xf32, #tpu.memory_space<vmem>>, vector<256x128xf32>
    %cst_18 = arith.constant 5.000000e-01 : f32
    %21 = vector.broadcast %cst_18 : f32 to vector<256x128xf32>
    %22 = arith.mulf %21, %19 : vector<256x128xf32>
    %23 = math.exp %22 : vector<256x128xf32>
    %24 = arith.mulf %20, %23 : vector<256x128xf32>
    %25 = arith.addf %14, %24 : vector<256x128xf32>
    %26 = arith.truncf %25 : vector<256x128xf32> to vector<256x128xbf16>
    %c0_19 = arith.constant 0 : index
    %c0_20 = arith.constant 0 : index
    %27 = vector.load %arg9[%c0_19, %c0_20] : memref<128x256xbf16, #tpu.memory_space<vmem>>, vector<128x256xbf16>
    %cst_21 = arith.constant dense<0.000000e+00> : vector<256x256xf32>
    %28 = tpu.matmul %26, %27, %cst_21 {dimension_numbers = #tpu.dot_dimension_numbers<[1], [0], [0], [1], [0, 0, 1, 1], [], []>} : vector<256x128xbf16>, vector<128x256xbf16>, vector<256x256xf32> -> vector<256x256xf32>
    %c0_22 = arith.constant 0 : index
    %c0_23 = arith.constant 0 : index
    %29 = vector.load %arg10[%c0_22, %c0_23] : memref<1x256xf32, #tpu.memory_space<vmem>>, vector<1x256xf32>
    %30 = vector.broadcast %29 : vector<1x256xf32> to vector<256x256xf32>
    %31 = arith.addf %28, %30 : vector<256x256xf32>
    %cst_24 = arith.constant 0.000000e+00 : f32
    %32 = vector.broadcast %cst_24 : f32 to vector<256x256xf32>
    %33 = arith.maximumf %31, %32 : vector<256x256xf32>
    %34 = arith.truncf %33 : vector<256x256xf32> to vector<256x256xbf16>
    %c0_25 = arith.constant 0 : index
    %c0_26 = arith.constant 0 : index
    %35 = vector.load %arg11[%c0_25, %c0_26] : memref<256x512xbf16, #tpu.memory_space<vmem>>, vector<256x512xbf16>
    %cst_27 = arith.constant dense<0.000000e+00> : vector<256x512xf32>
    %36 = tpu.matmul %34, %35, %cst_27 {dimension_numbers = #tpu.dot_dimension_numbers<[1], [0], [0], [1], [0, 0, 1, 1], [], []>} : vector<256x256xbf16>, vector<256x512xbf16>, vector<256x512xf32> -> vector<256x512xf32>
    %c0_28 = arith.constant 0 : index
    %c0_29 = arith.constant 0 : index
    %37 = vector.load %arg12[%c0_28, %c0_29] : memref<1x512xf32, #tpu.memory_space<vmem>>, vector<1x512xf32>
    %38 = vector.broadcast %37 : vector<1x512xf32> to vector<256x512xf32>
    %39 = arith.addf %36, %38 : vector<256x512xf32>
    %cst_30 = arith.constant 0.000000e+00 : f32
    %40 = vector.broadcast %cst_30 : f32 to vector<256x512xf32>
    %41 = arith.subf %40, %39 : vector<256x512xf32>
    %42 = math.exp %41 : vector<256x512xf32>
    %cst_31 = arith.constant 1.000000e+00 : f32
    %43 = vector.broadcast %cst_31 : f32 to vector<256x512xf32>
    %44 = arith.addf %43, %42 : vector<256x512xf32>
    %45 = tpu.reciprocal %44 {approx = true} : vector<256x512xf32> -> vector<256x512xf32>
    %c0_32 = arith.constant 0 : index
    %c0_33 = arith.constant 0 : index
    %46 = vector.load %arg13[%c0_32, %c0_33] : memref<256x512xf32, #tpu.memory_space<vmem>>, vector<256x512xf32>
    tpu.vector_store %arg13[%c0_32, %c0_33], %45 {strides = array<i32>} : memref<256x512xf32, #tpu.memory_space<vmem>>, vector<256x512xf32>,
    %c0_34 = arith.constant 0 : index
    %c0_35 = arith.constant 0 : index
    %47 = vector.load %arg14[%c0_34, %c0_35] : memref<256x128xf32, #tpu.memory_space<vmem>>, vector<256x128xf32>
    tpu.vector_store %arg14[%c0_34, %c0_35], %14 {strides = array<i32>} : memref<256x128xf32, #tpu.memory_space<vmem>>, vector<256x128xf32>,
    %c0_36 = arith.constant 0 : index
    %c0_37 = arith.constant 0 : index
    %48 = vector.load %arg15[%c0_36, %c0_37] : memref<256x128xf32, #tpu.memory_space<vmem>>, vector<256x128xf32>
    tpu.vector_store %arg15[%c0_36, %c0_37], %19 {strides = array<i32>} : memref<256x128xf32, #tpu.memory_space<vmem>>, vector<256x128xf32>,
    return
  }
  func.func @transform_0(%arg0: i32) -> (i32, i32) {
    %c0_i32 = arith.constant 0 : i32
    %c0_i32_0 = arith.constant 0 : i32
    return %arg0, %c0_i32 : i32, i32
  }
  func.func @transform_1(%arg0: i32) -> (i32, i32) {
    %c0_i32 = arith.constant 0 : i32
    %c0_i32_0 = arith.constant 0 : i32
    return %arg0, %c0_i32 : i32, i32
  }
  func.func @transform_2(%arg0: i32) -> (i32, i32) {
    %c0_i32 = arith.constant 0 : i32
    %c0_i32_0 = arith.constant 0 : i32
    %c0_i32_1 = arith.constant 0 : i32
    return %c0_i32, %c0_i32_0 : i32, i32
  }
  func.func @transform_3(%arg0: i32) -> (i32, i32) {
    %c0_i32 = arith.constant 0 : i32
    %c0_i32_0 = arith.constant 0 : i32
    %c0_i32_1 = arith.constant 0 : i32
    return %c0_i32, %c0_i32_0 : i32, i32
  }
  func.func @transform_4(%arg0: i32) -> (i32, i32) {
    %c0_i32 = arith.constant 0 : i32
    %c0_i32_0 = arith.constant 0 : i32
    %c0_i32_1 = arith.constant 0 : i32
    return %c0_i32, %c0_i32_0 : i32, i32
  }
  func.func @transform_5(%arg0: i32) -> (i32, i32) {
    %c0_i32 = arith.constant 0 : i32
    %c0_i32_0 = arith.constant 0 : i32
    %c0_i32_1 = arith.constant 0 : i32
    return %c0_i32, %c0_i32_0 : i32, i32
  }
  func.func @transform_6(%arg0: i32) -> (i32, i32) {
    %c0_i32 = arith.constant 0 : i32
    %c0_i32_0 = arith.constant 0 : i32
    %c0_i32_1 = arith.constant 0 : i32
    return %c0_i32, %c0_i32_0 : i32, i32
  }
  func.func @transform_7(%arg0: i32) -> (i32, i32) {
    %c0_i32 = arith.constant 0 : i32
    %c0_i32_0 = arith.constant 0 : i32
    %c0_i32_1 = arith.constant 0 : i32
    return %c0_i32, %c0_i32_0 : i32, i32
  }
  func.func @transform_8(%arg0: i32) -> (i32, i32) {
    %c0_i32 = arith.constant 0 : i32
    %c0_i32_0 = arith.constant 0 : i32
    %c0_i32_1 = arith.constant 0 : i32
    return %c0_i32, %c0_i32_0 : i32, i32
  }
  func.func @transform_9(%arg0: i32) -> (i32, i32) {
    %c0_i32 = arith.constant 0 : i32
    %c0_i32_0 = arith.constant 0 : i32
    %c0_i32_1 = arith.constant 0 : i32
    return %c0_i32, %c0_i32_0 : i32, i32
  }
  func.func @transform_10(%arg0: i32) -> (i32, i32) {
    %c0_i32 = arith.constant 0 : i32
    %c0_i32_0 = arith.constant 0 : i32
    %c0_i32_1 = arith.constant 0 : i32
    return %c0_i32, %c0_i32_0 : i32, i32
  }
  func.func @transform_11(%arg0: i32) -> (i32, i32) {
    %c0_i32 = arith.constant 0 : i32
    %c0_i32_0 = arith.constant 0 : i32
    %c0_i32_1 = arith.constant 0 : i32
    return %c0_i32, %c0_i32_0 : i32, i32
  }
  func.func @transform_12(%arg0: i32) -> (i32, i32) {
    %c0_i32 = arith.constant 0 : i32
    %c0_i32_0 = arith.constant 0 : i32
    return %arg0, %c0_i32 : i32, i32
  }
  func.func @transform_13(%arg0: i32) -> (i32, i32) {
    %c0_i32 = arith.constant 0 : i32
    %c0_i32_0 = arith.constant 0 : i32
    return %arg0, %c0_i32 : i32, i32
  }
  func.func @transform_14(%arg0: i32) -> (i32, i32) {
    %c0_i32 = arith.constant 0 : i32
    %c0_i32_0 = arith.constant 0 : i32
    return %arg0, %c0_i32 : i32, i32
  }
}

</mosaic_0001>

<bundles_post_ra>
// kernel: tpu_custom_call.1
= control target key start
LH: loop header
LB: loop body
LE: loop exit
PB: predicated region body
PF: predicated region fallthrough
CT: control target
= control target key end

     0   :  { %s8097_s0 = inlined_call_operand.hbm [shape: f32[512,512], index: 0, kind: input, shape index: {}]   ;;  %s8098_s1 = inlined_call_operand.hbm [shape: f32[512,128], index: 1, kind: input, shape index: {}]   ;;  %s8099_s2 = inlined_call_operand.hbm [shape: bf16[512,256], index: 2, kind: input, shape index: {}]   ;;  %s8100_s3 = inlined_call_operand.vmem [shape: f32[1,256], index: 3, kind: input, shape index: {}]   ;;  %s8101_s4 = inlined_call_operand.hbm [shape: bf16[256,128], index: 4, kind: input, shape index: {}]   ;;  %s8102_s5 = inlined_call_operand.vmem [shape: f32[1,128], index: 5, kind: input, shape index: {}]   ;;  %s8103_s6 = inlined_call_operand.hbm [shape: bf16[256,128], index: 6, kind: input, shape index: {}]   ;;  %s8104_s7 = inlined_call_operand.vmem [shape: f32[1,128], index: 7, kind: input, shape index: {}]   ;;  %s8105_s8 = inlined_call_operand.hbm [shape: bf16[128,256], index: 8, kind: input, shape index: {}]   ;;  %s8106_s9 = inlined_call_operand.vmem [shape: f32[1,256], index: 9, kind: input, shape index: {}]   ;;  %s8107_s10 = inlined_call_operand.hbm [shape: bf16[256,512], index: 10, kind: input, shape index: {}]   ;;  %s8108_s11 = inlined_call_operand.vmem [shape: f32[1,512], index: 11, kind: input, shape index: {}]   ;;  %s8109_s12 = inlined_call_operand.hbm [shape: f32[512,512], index: 12, kind: output, shape index: {0}]   ;;  %s8110_s13 = inlined_call_operand.hbm [shape: f32[512,128], index: 13, kind: output, shape index: {1}]   ;;  %s8111_s14 = inlined_call_operand.hbm [shape: f32[512,128], index: 14, kind: output, shape index: {2}]  }
   0x1   :  { %8132 = sst [smem:[#allocation38_spill]] %s8097_s0 }
   0x2   :  { %8133 = sst [smem:[#allocation39_spill]] %s8099_s2 }
   0x3   :  { %8134 = sst [smem:[#allocation40_spill]] %s8101_s4 }
   0x4   :  { %8135 = sst [smem:[#allocation41_spill]] %s8103_s6 }
   0x5   :  { %8136 = sst [smem:[#allocation42_spill]] %s8105_s8 }
   0x6   :  { %8137 = sst [smem:[#allocation43_spill]] %s8107_s10 }
   0x7   :  { %8138 = sst [smem:[#allocation44_spill]] %s8109_s12 }
   0x8   :  { %8139 = sst [smem:[#allocation45_spill]] %s8111_s14 }
   0x9   :  { %20 = vsyncpa [#allocation3], 0 }
   0xa   :  { %22 = vsyncpa [#allocation3 + $0x1], 0 }
   0xb   :  { %23 = vsyncpa [#allocation6], 0 }
   0xc   :  { %25 = vsyncpa [#allocation6 + $0x1], 0 }
   0xd   :  { %26 = vsyncpa [#allocation9], 0 }
   0xe   :  { %27 = vsyncpa [#allocation12], 0 }
   0xf   :  { %28 = vsyncpa [#allocation4], 0 }
  0x10   :  { %30 = vsyncpa [#allocation4 + $0x1], 0 }
  0x11   :  { %31 = vsyncpa [#allocation16], 0 }
  0x12   :  { %33 = vsyncpa [#allocation16 + $0x1], 0  ;;  %s6627_s29 = smov 0   ;;  %s6629_s30 = smov 0  }
  0x13   :  { %s6631_s15 = smov 0   ;;  %s6633_s16 = smov 0  }
  0x14 LB: > { %8140 = sst [smem:[#allocation25_spill]] %s6523_s15  ;;  %s6529_s17 = smov [#allocation7]   ;;  %s6527_s16 = sphi %s6633_s16, %s8194_s16   ;;  %s6523_s15 = sphi %s6631_s15, %s8196_s15   ;;  %s6519_s30 = sphi %s6629_s30, %s8198_s30   ;;  %s6515_s29 = sphi %s6627_s29, %s8197_s29  }
  0x15   : > { %s396_s18 = sshll.u32 %s6529_s17, 4  ;;  %s6648_s19 = sadd.s32 4294967295, %s6527_s16   ;;  %s397_s18 = int_to_ptr.vmem [resolvable:$true] %s396_s18 }
  0x16   : > { %p4776_p0 = scmp.ge.s32.totalorder %s6527_s16, 1  ;;  %p8119_p1 = scmp.eq.s32.totalorder %s6648_s19, 0 }
  0x17   : > { %p384_p2 = scmp.lt.s32.totalorder %s6527_s16, 3  ;;  %s6530_s21 = smov [#allocation8]  }
  0x18   : > { %s412_s22 = sshll.u32 %s6530_s21, 4  ;;  %s6531_s24 = smov [#allocation11]   ;;  %s6666_s22 = int_to_ptr.vmem [resolvable:$true] %s412_s22 }
  0x19   : > { %p6653_p3 = pnand %p4776_p0, %p384_p2  ;;  %s6668_s25 = sshll.u32 %s6531_s24, 4  ;;  %s445_s25 = int_to_ptr.vmem [resolvable:$true] %s6668_s25 }
  0x1a   : > { %s6216_s27 = scalar_lea.vmem %s397_s18, 8192  ;;  %p6224_p11 = scmp.lt.s32.totalorder %s397_s18, %s397_s18 }
  0x1b   : > { %p5284_p5 = pneg %p6653_p3  ;;  %p6217_p8 = scmp.ne.s32.totalorder %s397_s18, %s6216_s27 }
  0x1c   : > { %p6225_p12 = scmp.lt.s32.totalorder %s6216_s27, %s6216_s27 }
  0x1d   : > { %p6662_p6 = pnand %p5284_p5, %p8119_p1 }
  0x1e   : > { %p6226_p13 = por %p6225_p12, %p6224_p11 }
  0x1f   : > { %p6672_p7 = pneg %p6662_p6 }
  0x21   : > { %p6219_p9 = pnand %p6217_p8, %p6672_p7 }
  0x23   : > { %p6220_p10 = pneg %p6219_p9 }
  0x25   : > { %p6227_p0 = pnand %p6226_p13, %p6220_p10 }
  0x27   : > { %6230 = shalt.err (!%p6227_p0)
}
  0x28   : > { %s8116_s28 = smov 128   ;;  %s8118_s17 = smov 8  }
  0x29   : > { %s8144_s2 = sld [smem:[#allocation39_spill]]  ;;  %s6242_s12 = scalar_lea.vmem %s6666_s22, 2048 }
  0x2a   : > { %p6243_p2 = scmp.ne.s32.totalorder %s6666_s22, %s6242_s12  ;;  %p6250_p9 = scmp.lt.s32.totalorder %s6666_s22, %s6666_s22 }
  0x2b   : > { %p6251_p10 = scmp.lt.s32.totalorder %s6242_s12, %s6242_s12 }
  0x2c   : > { %p6245_p5 = pnand %p6243_p2, %p6672_p7 }
  0x2d   : > { %p6252_p11 = por %p6251_p10, %p6250_p9 }
  0x2e   : > { %p6246_p8 = pneg %p6245_p5 }
  0x2f   : > { %5287 = dma.hbm_to_vmem [thread:$0]  (!%p6662_p6), %s8144_s2, 8192, %s397_s18, [#allocation6], %s8116_s28, %s8116_s28, %s8118_s17  }
  0x30   : > { %p6253_p12 = pnand %p6252_p11, %p6246_p8 }
  0x32   : > { %6256 = shalt.err (!%p6253_p12)
}
  0x33   : > { %s8114_s27 = smov 64   ;;  %s8115_s14 = smov 4  }
  0x34   : > { %s8145_s4 = sld [smem:[#allocation40_spill]]  ;;  %s6268_s24 = scalar_lea.vmem %s445_s25, 2048 }
  0x35   : > { %p6269_p13 = scmp.ne.s32.totalorder %s445_s25, %s6268_s24  ;;  %p6276_p5 = scmp.lt.s32.totalorder %s445_s25, %s445_s25 }
  0x36   : > { %p6277_p8 = scmp.lt.s32.totalorder %s6268_s24, %s6268_s24 }
  0x37   : > { %p6271_p0 = pnand %p6269_p13, %p6672_p7 }
  0x38   : > { %p6278_p9 = por %p6277_p8, %p6276_p5 }
  0x39   : > { %p6272_p2 = pneg %p6271_p0 }
  0x3a   : > { %5290 = dma.hbm_to_vmem [thread:$0]  (!%p6662_p6), %s8145_s4, 2048, %s6666_s22, [#allocation9], %s8114_s27, %s8114_s27, %s8115_s14  }
  0x3b   : > { %p6279_p10 = pnand %p6278_p9, %p6272_p2 }
  0x3d   : > { %6282 = shalt.err (!%p6279_p10)
}
  0x3e   : > { %s8146_s8 = sld [smem:[#allocation42_spill]]  ;;  %s6536_s22 = smov [#allocation10]  }
  0x3f   : > { %s428_s18 = sshll.u32 %s6536_s22, 4  ;;  %s6537_s21 = smov [#allocation13]   ;;  %s429_s18 = int_to_ptr.vmem [resolvable:$true] %s428_s18 }
  0x40   : > { %s460_s27 = sshll.u32 %s6537_s21, 4  ;;  %s6294_s14 = scalar_lea.vmem %s429_s18, 2048  ;;  %s461_s27 = int_to_ptr.vmem [resolvable:$true] %s460_s27 }
  0x41   : > { %p6295_p11 = scmp.ne.s32.totalorder %s429_s18, %s6294_s14  ;;  %p6302_p0 = scmp.lt.s32.totalorder %s429_s18, %s429_s18 }
  0x42   : > { %p6303_p2 = scmp.lt.s32.totalorder %s6294_s14, %s6294_s14 }
  0x43   : > { %p6297_p12 = pnand %p6295_p11, %p6672_p7 }
  0x44   : > { %5296 = dma.hbm_to_vmem [thread:$0]  (!%p6662_p6), %s8146_s8, 2048, %s445_s25, [#allocation12], %s8116_s28, %s8116_s28, %s8118_s17  }
  0x45   : > { %p6298_p13 = pneg %p6297_p12  ;;  %p6304_p5 = por %p6303_p2, %p6302_p0 }
  0x47   : > { %p6305_p8 = pnand %p6304_p5, %p6298_p13 }
  0x49   : > { %6308 = shalt.err (!%p6305_p8)
}
  0x4a   : > { %s8147_s2 = smov 4   ;;  %s8148_s24 = smov 64  }
  0x4b   : > { %s8149_s6 = sld [smem:[#allocation41_spill]]  ;;  %s6320_s22 = scalar_lea.vmem %s461_s27, 8192 }
  0x4c   : > { %p6321_p9 = scmp.ne.s32.totalorder %s461_s27, %s6320_s22  ;;  %p6328_p12 = scmp.lt.s32.totalorder %s461_s27, %s461_s27 }
  0x4d   : > { %p6329_p0 = scmp.lt.s32.totalorder %s6320_s22, %s6320_s22 }
  0x4e   : > { %p6323_p10 = pnand %p6321_p9, %p6672_p7 }
  0x4f   : > { %p6330_p13 = por %p6329_p0, %p6328_p12 }
  0x50   : > { %p6324_p11 = pneg %p6323_p10 }
  0x51   : > { %5293 = dma.hbm_to_vmem [thread:$0]  (!%p6662_p6), %s8149_s6, 2048, %s429_s18, [#allocation9], %s8148_s24, %s8148_s24, %s8147_s2  }
  0x52   : > { %p6331_p2 = pnand %p6330_p13, %p6324_p11 }
  0x54   : > { %6334 = shalt.err (!%p6331_p2)
}
  0x55   : > { %s6538_s14 = smov 256   ;;  %s6539_s26 = smov 16  }
  0x56   : > { %s8150_s10 = sld [smem:[#allocation43_spill]]  ;;  %s8117_s2 = sadd.s32 4294967294, %s6527_s16  }
  0x57   : > { %s6731_s24 = sadd.s32 1, %s6527_s16   ;;  %s46_s25 = sadd.s32 1, %s6523_s15 }
  0x58   : > { %8151 = sst [smem:[#allocation26_spill]] %s6731_s24  ;;  %s43_s12 = ssub.s32 %s6527_s16, %s6731_s24 }
  0x59   : > { %p53_p7 = scmp.ne.s32.totalorder %s6523_s15, %s6519_s30  ;;  %p44_p5 = scmp.eq.s32.totalorder %s43_s12, 0 }
  0x5a   : > { %p54_p8 = scmp.eq.s32.totalorder %s6527_s16, 0  ;;  %p59_p9 = scmp.ne.s32.totalorder %s6519_s30, %s6515_s29 }
  0x5b   : > { %p319_p10 = scmp.eq.s32.totalorder %s6648_s19, 1  ;;  %p325_p0 = scmp.eq.s32.totalorder %s8117_s2, 1 }
  0x5c   : > { %5299 = dma.hbm_to_vmem [thread:$0]  (!%p6662_p6), %s8150_s10, 8192, %s461_s27, [#allocation12], %s6538_s14, %s6538_s14, %s6539_s26  }
  0x5d   : > { %s6743_s22 = scalar_select %p44_p5, %s6523_s15, %s46_s25  }
  0x5e   : > { %p55_p11 = por %p54_p8, %p53_p7  ;;  %p6747_p12 = por %p8119_p1, %p59_p9 }
  0x5f   : > { %8152 = sst [smem:[#allocation27_spill]] %s6743_s22  ;;  %p6751_p6 = por %p319_p10, %p53_p7 }
  0x60   : > { %s8153_s23 = scalar_select %p6747_p12, 1, 0 }
  0x61   : > { %s8154_s27 = scalar_select %p6751_p6, 1, 0 }
  0x62   : > { %p5322_p13 = scmp.lt.s32.totalorder %s6527_s16, 2  ;;  %s6759_s14 = sand.u32 1, %s6523_s15  }
  0x63   : > { %p6761_p2 = por %p325_p0, %p59_p9  ;;  %s4783_s18 = sshll.u32 %s6759_s14, 10 }
  0x64   : > { %s4992_s21 = sshll.u32 %s6527_s16, 14  ;;  %s8157_s0 = sld [smem:[#allocation38_spill]] }
  0x65   : > { %s8155_s26 = scalar_select %p6761_p2, 1, 0 }
  0x66   : > { %s481_s2 = scalar_lea.vmem [#allocation2], %s4783_s18  ;;  %p6772_p7 = pnand %p5322_p13, %p55_p11 }
  0x67   : > { %8156 = sst [smem:[#allocation28_spill]] %s8155_s26  ;;  %s489_s17 = sshll.u32 %s481_s2, 4  ;;  %s6776_s17 = int_to_ptr.vmem [resolvable:$true] %s489_s17 }
  0x68   : > { %p6337_p8 = pneg %p6772_p7 }
  0x6a   : > { %s6770_s28 = scalar_lea.hbm %s8157_s0, %s4992_s21  ;;  %s6340_s2 = scalar_lea.hbm %s8157_s0, 32768 }
  0x6b   : > { %s6335_s8 = scalar_lea.hbm %s6770_s28, 16384  ;;  %p6341_p11 = scmp.lt.s32.totalorder %s6770_s28, %s8157_s0 }
  0x6c   : > { %p6336_p5 = scmp.ne.s32.totalorder %s6770_s28, %s6335_s8  ;;  %p6342_p0 = scmp.lt.s32.totalorder %s6340_s2, %s6335_s8 }
  0x6e   : > { %p6338_p9 = pnand %p6337_p8, %p6336_p5  ;;  %p6343_p13 = por %p6342_p0, %p6341_p11 }
  0x70   : > { %p6339_p10 = pneg %p6338_p9 }
  0x72   : > { %p6344_p4 = pnand %p6343_p13, %p6339_p10 }
  0x74   : > { %6347 = shalt.err (!%p6344_p4)
}
  0x75   : > { %s6348_s6 = scalar_lea.vmem %s6776_s17, 16384  ;;  %s6540_s21 = smov [#allocation2]  }
  0x76   : > { %p6349_p1 = scmp.ne.s32.totalorder %s6776_s17, %s6348_s6  ;;  %s6353_s18 = sshll.u32 %s6540_s21, 4  ;;  %s6354_s18 = int_to_ptr.vmem [resolvable:$false] %s6353_s18 }
  0x77   : > { %s6355_s10 = scalar_lea.vmem %s6354_s18, 32768  ;;  %p6356_p2 = scmp.lt.s32.totalorder %s6776_s17, %s6354_s18 }
  0x78   : > { %p6351_p5 = pnand %p6349_p1, %p6337_p8  ;;  %p6357_p6 = scmp.lt.s32.totalorder %s6355_s10, %s6348_s6 }
  0x7a   : > { %p6352_p9 = pneg %p6351_p5  ;;  %p6358_p12 = por %p6357_p6, %p6356_p2 }
  0x7c   : > { %p6359_p11 = pnand %p6358_p12, %p6352_p9 }
  0x7e   : > { %6362 = shalt.err (!%p6359_p11)
}
  0x7f   : > { %s6541_s8 = smov 512   ;;  %s6542_s2 = smov 32  }
  0x80   : > { %s8159_s25 = scalar_lea.sflag [#allocation3], %s6759_s14  ;;  %s499_s12 = sand.u32 1, %s6527_s16  }
  0x81   : > { %5303 = dma.hbm_to_vmem [thread:$0]  (!%p6772_p7), %s6770_s28, 16384, %s6776_s17, %s8159_s25, %s6541_s8, %s6541_s8, %s6542_s2  }
  0x82   : > { %s4787_s21 = sshll.u32 %s6759_s14, 8  ;;  %s4993_s18 = sshll.u32 %s6527_s16, 12 }
  0x83   : > { %s503_s6 = scalar_lea.vmem [#allocation5], %s4787_s21  ;;  %s6811_s15 = scalar_lea.hbm %s8098_s1, %s4993_s18 }
  0x84   : > { %s510_s10 = sshll.u32 %s503_s6, 4  ;;  %s500_s24 = scalar_lea.sflag [#allocation6], %s499_s12  ;;  %s6813_s10 = int_to_ptr.vmem [resolvable:$true] %s510_s10 }
  0x85   : > { %s6363_s26 = scalar_lea.hbm %s6811_s15, 4096  ;;  %s6368_s14 = scalar_lea.hbm %s8098_s1, 8192 }
  0x86   : > { %p6364_p1 = scmp.ne.s32.totalorder %s6811_s15, %s6363_s26  ;;  %p6369_p6 = scmp.lt.s32.totalorder %s6811_s15, %s8098_s1 }
  0x87   : > { %p6370_p2 = scmp.lt.s32.totalorder %s6368_s14, %s6363_s26 }
  0x88   : > { %p6366_p4 = pnand %p6364_p1, %p6337_p8 }
  0x89   : > { %p6371_p10 = por %p6370_p2, %p6369_p6 }
  0x8a   : > { %p6367_p12 = pneg %p6366_p4 }
  0x8c   : > { %p6372_p0 = pnand %p6371_p10, %p6367_p12 }
  0x8e   : > { %6375 = shalt.err (!%p6372_p0)
}
  0x8f   : > { %s6376_s22 = scalar_lea.vmem %s6813_s10, 4096  ;;  %s6543_s2 = smov [#allocation5]  }
  0x90   : > { %p6377_p13 = scmp.ne.s32.totalorder %s6813_s10, %s6376_s22  ;;  %s6381_s25 = sshll.u32 %s6543_s2, 4  ;;  %s6382_s25 = int_to_ptr.vmem [resolvable:$false] %s6381_s25 }
  0x91   : > { %s6383_s12 = scalar_lea.vmem %s6382_s25, 8192  ;;  %p6384_p11 = scmp.lt.s32.totalorder %s6813_s10, %s6382_s25 }
  0x92   : > { %p6379_p5 = pnand %p6377_p13, %p6337_p8  ;;  %p6385_p1 = scmp.lt.s32.totalorder %s6383_s12, %s6376_s22 }
  0x94   : > { %p6380_p9 = pneg %p6379_p5  ;;  %p6386_p4 = por %p6385_p1, %p6384_p11 }
  0x96   : > { %p6387_p6 = pnand %p6386_p4, %p6380_p9 }
  0x98   : > { %6390 = shalt.err (!%p6387_p6)
}
  0x99   : > { %s8160_s26 = smov 8   ;;  %s8161_s21 = smov 128  }
  0x9a   : > { %5306 = dma.hbm_to_vmem [thread:$0]  (!%p6772_p7), %s6811_s15, 4096, %s6813_s10, %s500_s24, %s8161_s21, %s8161_s21, %s8160_s26  }
  0x9b   : > { %522 = sbr.rel (%p6653_p3) target bundleno = 1466 (0x5ba), region = 68 }
  0xa0   : > { %s6843_s18 = sand.u32 1, %s6519_s30   ;;  %p8162_p8 = scmp.ne.s32.totalorder %s8153_s23, 0 }
  0xa1   : > { %s4791_s6 = sshll.u32 %s6843_s18, 10  ;;  %s525_s28 = scalar_lea.sflag [#allocation3], %s6843_s18 }
  0xa2   : > { %s6849_s4 = scalar_lea.vmem [#allocation2], %s4791_s6 }
  0xa3   : > { %6486 = dma.done.wait (%p8162_p8), %s525_s28, 16384  }
  0xa4   : > { %6488 = vsyncadd (%p8162_p8), %s525_s28, 4294950912  ;;  %s533_s15 = sand.u32 1, %s6648_s19   ;;  %s6857_s20 = sshll.u32 %s6843_s18, 8 }
  0xa5   : > { %s534_s24 = scalar_lea.sflag [#allocation6], %s533_s15  ;;  %s6862_s10 = scalar_lea.vmem [#allocation5], %s6857_s20 }
  0xa6   : > { %6490 = dma.done.wait (%p8162_p8), %s534_s24, 4096  }
  0xa7   : > { %6492 = vsyncadd (%p8162_p8), %s534_s24, 4294963200  ;;  %p8163_p3 = scmp.eq.s32.totalorder %s6648_s19, 0 }
  0xa9   : > { %6494 = dma.done.wait (%p8163_p3), [#allocation6], 8192   ;;  %p8164_p7 = pmov %p8163_p3 }
  0xaa   : > { %p8165_p12 = pmov %p8163_p3 }
  0xab   : > { %6496 = vsyncadd (%p8164_p7), [#allocation6], 4294959104 }
  0xac   : > { %6498 = dma.done.wait (%p8165_p12), [#allocation9], 4096   ;;  %p8166_p2 = pmov %p8163_p3 }
  0xae   : > { %6500 = vsyncadd (%p8166_p2), [#allocation9], 4294963200  ;;  %p8167_p10 = pmov %p8166_p2 }
  0xaf   : > { %p8168_p0 = pmov %p8166_p2 }
  0xb0   : > { %6502 = dma.done.wait (%p8167_p10), [#allocation12], 10240  }
  0xb1   : > { %6504 = vsyncadd (%p8168_p0), [#allocation12], 4294957056  ;;  %v5379_v0 = vld [vmem:[#allocation7 + $0x74] ss:$8 sps:$4 sm:$0xff]   ;;  %v5381_v1 = vld [vmem:[#allocation7 + $0x70] ss:$8 sps:$4 sm:$0xff]  }
  0xb2   : > { %5222 = vmatprep.subr.bf16.mxu1 %v5379_v0  ;;  %v5382_v2 = vld [vmem:[#allocation7 + $0x64] ss:$8 sps:$4 sm:$0xff]   ;;  %1211 = vmatprep.subr.bf16.mxu0 %v5379_v0  ;;  %v5384_v3 = vld [vmem:[#allocation7 + $0x60] ss:$8 sps:$4 sm:$0xff]   ;;  %v5385_v4 = vld [vmem:[#allocation7 + $0x54] ss:$8 sps:$4 sm:$0xff]  }
  0xb3   : > { %5238 = vmatpush1.bf16.msra.mxu1 %v5381_v1  ;;  %1212 = vmatpush1.bf16.msra.mxu0 %v5381_v1  ;;  %v5387_v5 = vld [vmem:[#allocation7 + $0x50] ss:$8 sps:$4 sm:$0xff]   ;;  %v5388_v6 = vld [vmem:[#allocation7 + $0x44] ss:$8 sps:$4 sm:$0xff]   ;;  %v5390_v7 = vld [vmem:[#allocation7 + $0x40] ss:$8 sps:$4 sm:$0xff]  }
  0xb4   : > { %5223 = vmatprep.subr.bf16.mxu1 %v5382_v2  ;;  %1213 = vmatprep.subr.bf16.mxu0 %v5382_v2  ;;  %v5391_v8 = vld [vmem:[#allocation7 + $0x34] ss:$8 sps:$4 sm:$0xff]   ;;  %v5393_v9 = vld [vmem:[#allocation7 + $0x30] ss:$8 sps:$4 sm:$0xff]   ;;  %v5394_v10 = vld [vmem:[#allocation7 + $0x24] ss:$8 sps:$4 sm:$0xff]  }
  0xb5   : > { %v5396_v11 = vld [vmem:[#allocation7 + $0x20] ss:$8 sps:$4 sm:$0xff]   ;;  %v5397_v12 = vld [vmem:[#allocation7 + $0x14] ss:$8 sps:$4 sm:$0xff]   ;;  %v5399_v16 = vld [vmem:[#allocation7 + $0x10] ss:$8 sps:$4 sm:$0xff]  }
  0xb6   : > { %v688_v13 = vld [vmem:[%s6849_s4 + $0x208] sm:$0xff]  ;;  %v5403_v19 = vld [vmem:[#allocation7 + $0xf4] ss:$8 sps:$4 sm:$0xff]   ;;  %v5405_v20 = vld [vmem:[#allocation7 + $0xf0] ss:$8 sps:$4 sm:$0xff]   ;;  %s7270_s2 = scalar_lea.vmem [#allocation15], %s6857_s20 }
  0xb7   : > { %5239 = vmatpush1.bf16.msra.mxu1 %v5384_v3  ;;  %1214 = vmatpush1.bf16.msra.mxu0 %v5384_v3  ;;  %v692_v14 = vld [vmem:[%s6849_s4 + $0x228] sm:$0xff]  ;;  %v5409_v23 = vld [vmem:[#allocation7 + $0xd4] ss:$8 sps:$4 sm:$0xff]   ;;  %v5411_v24 = vld [vmem:[#allocation7 + $0xd0] ss:$8 sps:$4 sm:$0xff]   ;;  %s7275_s25 = scalar_lea.vmem [#allocation17], %s6857_s20 }
  0xb8   : > { %5224 = vmatprep.subr.bf16.mxu1 %v5385_v4  ;;  %1215 = vmatprep.subr.bf16.mxu0 %v5385_v4  ;;  %v784_v15 = vpack.c.bf16 %v692_v14, %v688_v13  ;;  %v5400_v17 = vld [vmem:[#allocation7 + $0x4] ss:$8 sps:$4 sm:$0xff]   ;;  %v5402_v18 = vld [vmem:[#allocation7] ss:$8 sps:$4 sm:$0xff]   ;;  %v5415_v27 = vld [vmem:[#allocation7 + $0xb4] ss:$8 sps:$4 sm:$0xff]  }
  0xb9   : > { %v5406_v21 = vld [vmem:[#allocation7 + $0xe4] ss:$8 sps:$4 sm:$0xff]   ;;  %v5408_v22 = vld [vmem:[#allocation7 + $0xe0] ss:$8 sps:$4 sm:$0xff]   ;;  %v5417_v28 = vld [vmem:[#allocation7 + $0xb0] ss:$8 sps:$4 sm:$0xff]  }
  0xba   : > { %1323 = vmatprep.mubr.bf16.mxu1 %v784_v15  ;;  %v5412_v25 = vld [vmem:[#allocation7 + $0xc4] ss:$8 sps:$4 sm:$0xff]   ;;  %v5414_v26 = vld [vmem:[#allocation7 + $0xc0] ss:$8 sps:$4 sm:$0xff]   ;;  %v5421_v34 = vld [vmem:[#allocation7 + $0x94] ss:$8 sps:$4 sm:$0xff]  }
  0xbb   : > { %5240 = vmatpush1.bf16.msra.mxu1 %v5387_v5  ;;  %1216 = vmatpush1.bf16.msra.mxu0 %v5387_v5  ;;  %v5418_v29 = vld [vmem:[#allocation7 + $0xa4] ss:$8 sps:$4 sm:$0xff]   ;;  %v5420_v32 = vld [vmem:[#allocation7 + $0xa0] ss:$8 sps:$4 sm:$0xff]   ;;  %v5423_v35 = vld [vmem:[#allocation7 + $0x90] ss:$8 sps:$4 sm:$0xff]  }
  0xbc   : > { %5225 = vmatprep.subr.bf16.mxu1 %v5388_v6  ;;  %1217 = vmatprep.subr.bf16.mxu0 %v5388_v6  ;;  %v624_v30 = vld [vmem:[%s6849_s4 + $0x8] sm:$0xff]  ;;  %v687_v38 = vld [vmem:[%s6849_s4 + $0x200] sm:$0xff]  ;;  %v5429_v42 = vld [vmem:[#allocation7 + $0x174] ss:$8 sps:$4 sm:$0xff]   ;;  %s7691_s23 = scalar_lea.vmem [#allocation14], %s4791_s6  ;;  %s4996_s6 = sshll.u32 %s6648_s19, 12 }
  0xbd   : > { %v628_v31 = vld [vmem:[%s6849_s4 + $0x28] sm:$0xff]  ;;  %v691_v39 = vld [vmem:[%s6849_s4 + $0x220] sm:$0xff]  ;;  %v5427_v49 = vld [vmem:[#allocation7 + $0x170] ss:$8 sps:$4 sm:$0xff]   ;;  %s4555_s17 = sshll.u32 %s7270_s2, 4  ;;  %s7831_s0 = scalar_lea.hbm %s8110_s13, %s4996_s6  ;;  %s7837_s17 = int_to_ptr.vmem [resolvable:$true] %s4555_s17 }
  0xbe   : > { %v752_v33 = vpack.c.bf16 %v628_v31, %v624_v30  ;;  %v5424_v36 = vld [vmem:[#allocation7 + $0x84] ss:$8 sps:$4 sm:$0xff]   ;;  %v5426_v37 = vld [vmem:[#allocation7 + $0x80] ss:$8 sps:$4 sm:$0xff]   ;;  %v783_v47 = vpack.c.bf16 %v691_v39, %v687_v38  ;;  %v5435_v58 = vld [vmem:[#allocation7 + $0x154] ss:$8 sps:$4 sm:$0xff]  }
  0xbf   : > { %5241 = vmatpush1.bf16.msra.mxu1 %v5390_v7  ;;  %1218 = vmatpush1.bf16.msra.mxu0 %v5390_v7  ;;  %v623_v40 = vld [vmem:[%s6849_s4] sm:$0xff]  ;;  %v696_v43 = vld [vmem:[%s6849_s4 + $0x248] sm:$0xff]  ;;  %v5433_v1 = vld [vmem:[#allocation7 + $0x150] ss:$8 sps:$4 sm:$0xff]   ;;  %s7845_s22 = scalar_lea.sflag [#allocation16], %s533_s15  ;;  %p8187_p5 = scmp.ne.s32.totalorder %s8154_s27, 0 }
  0xc0   : > { %5226 = vmatprep.subr.bf16.mxu1 %v5391_v8  ;;  %1219 = vmatprep.subr.bf16.mxu0 %v5391_v8  ;;  %v627_v41 = vld [vmem:[%s6849_s4 + $0x20] sm:$0xff]  ;;  %v700_v44 = vld [vmem:[%s6849_s4 + $0x268] sm:$0xff]  ;;  %v5441_v8 = vld [vmem:[#allocation7 + $0x134] ss:$8 sps:$4 sm:$0xff]   ;;  %s6545_s12 = smov [#allocation15]  }
  0xc1   : > { %1243 = vmatprep.mubr.bf16.mxu0 %v752_v33  ;;  %v632_v45 = vld [vmem:[%s6849_s4 + $0x48] sm:$0xff]  ;;  %v751_v48 = vpack.c.bf16 %v627_v41, %v623_v40  ;;  %v788_v50 = vpack.c.bf16 %v700_v44, %v696_v43  ;;  %v695_v54 = vld [vmem:[%s6849_s4 + $0x240] sm:$0xff]  ;;  %v5445_v31 = vld [vmem:[#allocation7 + $0x110] ss:$8 sps:$4 sm:$0xff]   ;;  %s6395_s26 = sshll.u32 %s6545_s12, 4  ;;  %s6396_s26 = int_to_ptr.vmem [resolvable:$false] %s6395_s26 }
  0xc2   : > { %v636_v46 = vld [vmem:[%s6849_s4 + $0x68] sm:$0xff]  ;;  %v699_v55 = vld [vmem:[%s6849_s4 + $0x260] sm:$0xff]  ;;  %v5453_v40 = vld [vmem:[#allocation7 + $0x1f4] ss:$8 sps:$4 sm:$0xff]   ;;  %s6397_s21 = scalar_lea.vmem %s6396_s26, 8192  ;;  %p6398_p1 = scmp.lt.s32.totalorder %s7837_s17, %s6396_s26 }
  0xc3   : > { %5242 = vmatpush1.bf16.msra.mxu1 %v5393_v9  ;;  %1220 = vmatpush1.bf16.msra.mxu0 %v5393_v9  ;;  %v5432_v51 = vld [vmem:[#allocation7 + $0x164] ss:$8 sps:$4 sm:$0xff]   ;;  %v756_v52 = vpack.c.bf16 %v636_v46, %v632_v45  ;;  %v5430_v53 = vld [vmem:[#allocation7 + $0x160] ss:$8 sps:$4 sm:$0xff]   ;;  %v787_v63 = vpack.c.bf16 %v699_v55, %v695_v54 }
  0xc4   : > { %5227 = vmatprep.subr.bf16.mxu1 %v5394_v10  ;;  %1221 = vmatprep.subr.bf16.mxu0 %v5394_v10  ;;  %v631_v56 = vld [vmem:[%s6849_s4 + $0x40] sm:$0xff]  ;;  %v704_v59 = vld [vmem:[%s6849_s4 + $0x288] sm:$0xff] }
  0xc5   : > { %v635_v57 = vld [vmem:[%s6849_s4 + $0x60] sm:$0xff]  ;;  %v708_v60 = vld [vmem:[%s6849_s4 + $0x2a8] sm:$0xff] }
  0xc6   : > { %v640_v61 = vld [vmem:[%s6849_s4 + $0x88] sm:$0xff]  ;;  %v755_v0 = vpack.c.bf16 %v635_v57, %v631_v56  ;;  %v792_v2 = vpack.c.bf16 %v708_v60, %v704_v59  ;;  %v703_v6 = vld [vmem:[%s6849_s4 + $0x280] sm:$0xff]  ;;  %v5459_v56 = vld [vmem:[#allocation7 + $0x1d4] ss:$8 sps:$4 sm:$0xff]  }
  0xc7   : > { %5243 = vmatpush1.bf16.msra.mxu1 %v5396_v11  ;;  %1222 = vmatpush1.bf16.msra.mxu0 %v5396_v11  ;;  %v644_v62 = vld [vmem:[%s6849_s4 + $0xa8] sm:$0xff]  ;;  %v707_v7 = vld [vmem:[%s6849_s4 + $0x2a0] sm:$0xff] }
  0xc8   : > { %5228 = vmatprep.subr.bf16.mxu1 %v5397_v12  ;;  %1223 = vmatprep.subr.bf16.mxu0 %v5397_v12  ;;  %v5438_v3 = vld [vmem:[#allocation7 + $0x144] ss:$8 sps:$4 sm:$0xff]   ;;  %v760_v4 = vpack.c.bf16 %v644_v62, %v640_v61  ;;  %v5436_v5 = vld [vmem:[#allocation7 + $0x140] ss:$8 sps:$4 sm:$0xff]   ;;  %v791_v15 = vpack.c.bf16 %v707_v7, %v703_v6 }
  0xc9   : > { %v639_v9 = vld [vmem:[%s6849_s4 + $0x80] sm:$0xff]  ;;  %v712_v11 = vld [vmem:[%s6849_s4 + $0x2c8] sm:$0xff] }
  0xca   : > { %v643_v10 = vld [vmem:[%s6849_s4 + $0xa0] sm:$0xff]  ;;  %v716_v12 = vld [vmem:[%s6849_s4 + $0x2e8] sm:$0xff] }
  0xcb   : > { %5244 = vmatpush1.bf16.msra.mxu1 %v5399_v16  ;;  %1224 = vmatpush1.bf16.msra.mxu0 %v5399_v16  ;;  %v648_v13 = vld [vmem:[%s6849_s4 + $0xc8] sm:$0xff]  ;;  %v759_v16 = vpack.c.bf16 %v643_v10, %v639_v9  ;;  %v719_v38 = vld [vmem:[%s6849_s4 + $0x300] sm:$0xff] }
  0xcc   : > { %5229 = vmatprep.subr.bf16.mxu1 %v5400_v17  ;;  %1225 = vmatprep.subr.bf16.mxu0 %v5400_v17  ;;  %v652_v14 = vld [vmem:[%s6849_s4 + $0xe8] sm:$0xff]  ;;  %v5439_v17 = vld [vmem:[#allocation7 + $0x130] ss:$8 sps:$4 sm:$0xff]   ;;  %v723_v39 = vld [vmem:[%s6849_s4 + $0x320] sm:$0xff] }
  0xcd   : > { %v660_v30 = vld [vmem:[%s6849_s4 + $0x128] sm:$0xff]  ;;  %v655_v43 = vld [vmem:[%s6849_s4 + $0x100] sm:$0xff] }
  0xce   : > { %v5450_v33 = vld [vmem:[#allocation7 + $0x104] ss:$8 sps:$4 sm:$0xff]  }
  0xcf   : > { %5245 = vmatpush1.bf16.msra.mxu1 %v5402_v18  ;;  %1226 = vmatpush1.bf16.msra.mxu0 %v5402_v18  ;;  %v796_v18 = vpack.c.bf16 %v716_v12, %v712_v11  ;;  %v728_v41 = vld [vmem:[%s6849_s4 + $0x348] sm:$0xff]  ;;  %v659_v44 = vld [vmem:[%s6849_s4 + $0x120] sm:$0xff] }
  0xd0   : > { %5230 = vmatprep.subr.bf16.mxu1 %v5403_v19  ;;  %1227 = vmatprep.subr.bf16.mxu0 %v5403_v19  ;;  %v5444_v19 = vld [vmem:[#allocation7 + $0x124] ss:$8 sps:$4 sm:$0xff]  }
  0xd1   : > { %v664_v45 = vld [vmem:[%s6849_s4 + $0x148] sm:$0xff]  ;;  %v727_v54 = vld [vmem:[%s6849_s4 + $0x340] sm:$0xff] }
  0xd2   : > { %v668_v46 = vld [vmem:[%s6849_s4 + $0x168] sm:$0xff]  ;;  %v731_v55 = vld [vmem:[%s6849_s4 + $0x360] sm:$0xff] }
  0xd3   : > { %5246 = vmatpush2.bf16.msra.mxu1 %v5405_v20  ;;  %1228 = vmatpush2.bf16.msra.mxu0 %v5405_v20  ;;  %v764_v20 = vpack.c.bf16 %v652_v14, %v648_v13  ;;  %v736_v57 = vld [vmem:[%s6849_s4 + $0x388] sm:$0xff]  ;;  %v663_v59 = vld [vmem:[%s6849_s4 + $0x140] sm:$0xff] }
  0xd4   : > { %5231 = vmatprep.subr.bf16.mxu1 %v5406_v21  ;;  %1229 = vmatprep.subr.bf16.mxu0 %v5406_v21  ;;  %v5442_v21 = vld [vmem:[#allocation7 + $0x120] ss:$8 sps:$4 sm:$0xff]  }
  0xd5   : > { %v667_v60 = vld [vmem:[%s6849_s4 + $0x160] sm:$0xff]  ;;  %v672_v61 = vld [vmem:[%s6849_s4 + $0x188] sm:$0xff] }
  0xd6   : > { %v676_v62 = vld [vmem:[%s6849_s4 + $0x1a8] sm:$0xff]  ;;  %v735_v6 = vld [vmem:[%s6849_s4 + $0x380] sm:$0xff] }
  0xd7   : > { %5247 = vmatpush2.bf16.msra.mxu1 %v5408_v22  ;;  %1230 = vmatpush2.bf16.msra.mxu0 %v5408_v22  ;;  %v711_v22 = vld [vmem:[%s6849_s4 + $0x2c0] sm:$0xff]  ;;  %v744_v9 = vld [vmem:[%s6849_s4 + $0x3c8] sm:$0xff] }
  0xd8   : > { %5232 = vmatprep.subr.bf16.mxu1 %v5409_v23  ;;  %1231 = vmatprep.subr.bf16.mxu0 %v5409_v23  ;;  %v715_v23 = vld [vmem:[%s6849_s4 + $0x2e0] sm:$0xff]  ;;  %v748_v10 = vld [vmem:[%s6849_s4 + $0x3e8] sm:$0xff] }
  0xd9   : > { %v739_v7 = vld [vmem:[%s6849_s4 + $0x3a0] sm:$0xff]  ;;  %v680_v13 = vld [vmem:[%s6849_s4 + $0x1c8] sm:$0xff] }
  0xda   : > { %v671_v11 = vld [vmem:[%s6849_s4 + $0x180] sm:$0xff]  ;;  %v684_v14 = vld [vmem:[%s6849_s4 + $0x1e8] sm:$0xff] }
  0xdb   : > { %5248 = vmatpush2.bf16.msra.mxu1 %v5411_v24  ;;  %1232 = vmatpush2.bf16.msra.mxu0 %v5411_v24  ;;  %v5447_v24 = vld [vmem:[#allocation7 + $0x114] ss:$8 sps:$4 sm:$0xff]   ;;  %v675_v12 = vld [vmem:[%s6849_s4 + $0x1a0] sm:$0xff] }
  0xdc   : > { %5233 = vmatprep.subr.bf16.mxu1 %v5412_v25  ;;  %1233 = vmatprep.subr.bf16.mxu0 %v5412_v25  ;;  %v720_v25 = vld [vmem:[%s6849_s4 + $0x308] sm:$0xff] }
  0xdf   : > { %5249 = vmatpush2.bf16.msra.mxu1 %v5414_v26  ;;  %1234 = vmatpush2.bf16.msra.mxu0 %v5414_v26  ;;  %v724_v26 = vld [vmem:[%s6849_s4 + $0x328] sm:$0xff] }
  0xe0   : > { %5234 = vmatprep.subr.bf16.mxu1 %v5415_v27  ;;  %1235 = vmatprep.subr.bf16.mxu0 %v5415_v27  ;;  %v647_v27 = vld [vmem:[%s6849_s4 + $0xc0] sm:$0xff] }
  0xe3   : > { %5250 = vmatpush2.bf16.msra.mxu1 %v5417_v28  ;;  %1236 = vmatpush2.bf16.msra.mxu0 %v5417_v28  ;;  %v651_v28 = vld [vmem:[%s6849_s4 + $0xe0] sm:$0xff] }
  0xe4   : > { %5235 = vmatprep.subr.bf16.mxu1 %v5418_v29  ;;  %1237 = vmatprep.subr.bf16.mxu0 %v5418_v29  ;;  %v656_v29 = vld [vmem:[%s6849_s4 + $0x108] sm:$0xff] }
  0xe7   : > { %5251 = vmatpush2.bf16.msra.mxu1 %v5420_v32  ;;  %1238 = vmatpush2.bf16.msra.mxu0 %v5420_v32  ;;  %v795_v32 = vpack.c.bf16 %v715_v23, %v711_v22  ;;  %v743_v22 = vld [vmem:[%s6849_s4 + $0x3c0] sm:$0xff] }
  0xe8   : > { %5236 = vmatprep.subr.bf16.mxu1 %v5421_v34  ;;  %1239 = vmatprep.subr.bf16.mxu0 %v5421_v34  ;;  %v763_v34 = vpack.c.bf16 %v651_v28, %v647_v27  ;;  %v747_v23 = vld [vmem:[%s6849_s4 + $0x3e0] sm:$0xff] }
  0xe9   : > { %v679_v27 = vld [vmem:[%s6849_s4 + $0x1c0] sm:$0xff] }
  0xea   : > { %v683_v28 = vld [vmem:[%s6849_s4 + $0x1e0] sm:$0xff] }
  0xeb   : > { %5252 = vmatpush2.bf16.msra.mxu1 %v5423_v35  ;;  %1240 = vmatpush2.bf16.msra.mxu0 %v5423_v35  ;;  %v800_v35 = vpack.c.bf16 %v724_v26, %v720_v25  ;;  %v626_v25 = vld [vmem:[%s6849_s4 + $0x18] sm:$0xff] }
  0xec   : > { %5237 = vmatprep.subr.bf16.mxu1 %v5424_v36  ;;  %1241 = vmatprep.subr.bf16.mxu0 %v5424_v36  ;;  %v768_v36 = vpack.c.bf16 %v660_v30, %v656_v29  ;;  %v630_v26 = vld [vmem:[%s6849_s4 + $0x38] sm:$0xff]  ;;  %v811_v30 = vpack.c.bf16 %v747_v23, %v743_v22  ;;  %v677_v22 = vld [vmem:[%s6849_s4 + $0x1b0] sm:$0xff] }
  0xed   : > { %v5469_v29 = vld [vmem:[#allocation7 + $0x190] ss:$8 sps:$4 sm:$0xff]  }
  0xee   : > { %v682_v23 = vld [vmem:[%s6849_s4 + $0x1d8] sm:$0xff] }
  0xef   : > { %5253 = vmatpush2.bf16.msra.mxu1 %v5426_v37  ;;  %1242 = vmatpush2.bf16.msra.mxu0 %v5426_v37  ;;  %v5448_v37 = vld [vmem:[#allocation7 + $0x100] ss:$8 sps:$4 sm:$0xff]  }
  0xf0   : > { %1404 = vmatprep.subr.bf16.mxu1 %v5429_v42  ;;  %v732_v42 = vld [vmem:[%s6849_s4 + $0x368] sm:$0xff] }
  0xf2   : > { %1324 = vmatmul.mubr.bf16.vlgmr.msra.gmra.mxu1 %v783_v47  ;;  %1244 = vmatmul.mubr.bf16.vlgmr.msra.gmra.mxu0 %v751_v48  ;;  %v5451_v47 = vld [vmem:[#allocation7 + $0x1f0] ss:$8 sps:$4 sm:$0xff]   ;;  %v799_v48 = vpack.c.bf16 %v723_v39, %v719_v38 }
  0xf3   : > { %1405 = vmatpush1.bf16.msra.mxu1 %v5427_v49  ;;  %1333 = vmatprep.mubr.bf16.mxu1 %v788_v50  ;;  %v5456_v49 = vld [vmem:[#allocation7 + $0x1e4] ss:$8 sps:$4 sm:$0xff]   ;;  %v767_v50 = vpack.c.bf16 %v659_v44, %v655_v43  ;;  %v638_v38 = vld [vmem:[%s6849_s4 + $0x78] sm:$0xff]  ;;  %v633_v44 = vld [vmem:[%s6849_s4 + $0x50] sm:$0xff] }
  0xf4   : > { %1406 = vmatprep.subr.bf16.mxu1 %v5432_v51  ;;  %1253 = vmatprep.mubr.bf16.mxu0 %v756_v52  ;;  %v804_v51 = vpack.c.bf16 %v732_v42, %v728_v41  ;;  %v772_v52 = vpack.c.bf16 %v668_v46, %v664_v45  ;;  %v5475_v39 = vld [vmem:[#allocation10 + $0x78] sm:$0xff]   ;;  %v5477_v42 = vld [vmem:[#allocation10 + $0x70] sm:$0xff]  }
  0xf5   : > { %v637_v45 = vld [vmem:[%s6849_s4 + $0x70] sm:$0xff] }
  0xf6   : > { %v5478_v46 = vld [vmem:[#allocation10 + $0x30] sm:$0xff]  }
  0xf7   : > { %1407 = vmatpush1.bf16.msra.mxu1 %v5430_v53  ;;  %v5454_v53 = vld [vmem:[#allocation7 + $0x1e0] ss:$8 sps:$4 sm:$0xff]  }
  0xf8   : > { %1408 = vmatprep.subr.bf16.mxu1 %v5435_v58  ;;  %v740_v58 = vld [vmem:[%s6849_s4 + $0x3a8] sm:$0xff] }
  0xfa   : > { %1334 = vmatmul.mubr.bf16.gmra.mxu1 %v787_v63  ;;  %1254 = vmatmul.mubr.bf16.gmra.mxu0 %v755_v0  ;;  %v5457_v63 = vld [vmem:[#allocation7 + $0x1d0] ss:$8 sps:$4 sm:$0xff]   ;;  %v803_v0 = vpack.c.bf16 %v731_v55, %v727_v54 }
  0xfb   : > { %1409 = vmatpush1.bf16.msra.mxu1 %v5433_v1  ;;  %1343 = vmatprep.mubr.bf16.mxu1 %v792_v2  ;;  %v5462_v1 = vld [vmem:[#allocation7 + $0x1c4] ss:$8 sps:$4 sm:$0xff]   ;;  %v771_v2 = vpack.c.bf16 %v667_v60, %v663_v59  ;;  %v641_v54 = vld [vmem:[%s6849_s4 + $0x90] sm:$0xff] }
  0xfc   : > { %1410 = vmatprep.subr.bf16.mxu1 %v5438_v3  ;;  %1263 = vmatprep.mubr.bf16.mxu0 %v760_v4  ;;  %v808_v3 = vpack.c.bf16 %v740_v58, %v736_v57  ;;  %v776_v4 = vpack.c.bf16 %v676_v62, %v672_v61  ;;  %v645_v55 = vld [vmem:[%s6849_s4 + $0xb0] sm:$0xff]  ;;  %v650_v57 = vld [vmem:[%s6849_s4 + $0xd8] sm:$0xff] }
  0xfd   : > { %v654_v58 = vld [vmem:[%s6849_s4 + $0xf8] sm:$0xff]  ;;  %v761_v59 = vpack.c.bf16 %v645_v55, %v641_v54  ;;  %v5502_v54 = vld [vmem:[#allocation8 + $0x10] sm:$0xff]  }
  0xfe   : > { %v766_v60 = vpack.c.bf16 %v654_v58, %v650_v57  ;;  %v5483_v61 = vld [vmem:[#allocation10 + $0x58] sm:$0xff]   ;;  %v5503_v58 = vld [vmem:[#allocation8 + $0x48] sm:$0xff]  }
  0xff   : > { %1411 = vmatpush1.bf16.msra.mxu1 %v5436_v5  ;;  %v5460_v5 = vld [vmem:[#allocation7 + $0x1c0] ss:$8 sps:$4 sm:$0xff]   ;;  %v5484_v62 = vld [vmem:[#allocation10 + $0x18] sm:$0xff]  }
 0x100   : > { %1412 = vmatprep.subr.bf16.mxu1 %v5441_v8  ;;  %v5465_v8 = vld [vmem:[#allocation7 + $0x1b4] ss:$8 sps:$4 sm:$0xff]  }
 0x101   : > { %v706_v55 = vld [vmem:[%s6849_s4 + $0x298] sm:$0xff] }
 0x102   : > { %1344 = vmatmul.mubr.bf16.gmra.mxu1 %v791_v15  ;;  %1264 = vmatmul.mubr.bf16.gmra.mxu0 %v759_v16  ;;  %v5463_v15 = vld [vmem:[#allocation7 + $0x1b0] ss:$8 sps:$4 sm:$0xff]   ;;  %v807_v16 = vpack.c.bf16 %v739_v7, %v735_v6 }
 0x103   : > { %1413 = vmatpush1.bf16.msra.mxu1 %v5439_v17  ;;  %1353 = vmatprep.mubr.bf16.mxu1 %v796_v18  ;;  %v5468_v17 = vld [vmem:[#allocation7 + $0x1a4] ss:$8 sps:$4 sm:$0xff]   ;;  %v775_v18 = vpack.c.bf16 %v675_v12, %v671_v11  ;;  %v661_v6 = vld [vmem:[%s6849_s4 + $0x130] sm:$0xff]  ;;  %v666_v7 = vld [vmem:[%s6849_s4 + $0x158] sm:$0xff] }
 0x104   : > { %1414 = vmatprep.subr.bf16.mxu1 %v5444_v19  ;;  %1273 = vmatprep.mubr.bf16.mxu0 %v764_v20  ;;  %v812_v19 = vpack.c.bf16 %v748_v10, %v744_v9  ;;  %v780_v20 = vpack.c.bf16 %v684_v14, %v680_v13  ;;  %v5485_v11 = vld [vmem:[#allocation10 + $0x50] sm:$0xff]  }
 0x105   : > { %v5486_v12 = vld [vmem:[#allocation10 + $0x10] sm:$0xff]  }
 0x106   : > { %v665_v13 = vld [vmem:[%s6849_s4 + $0x150] sm:$0xff] }
 0x107   : > { %1415 = vmatpush1.bf16.msra.mxu1 %v5442_v21  ;;  %v5466_v21 = vld [vmem:[#allocation7 + $0x1a0] ss:$8 sps:$4 sm:$0xff]   ;;  %v669_v14 = vld [vmem:[%s6849_s4 + $0x170] sm:$0xff] }
 0x108   : > { %1416 = vmatprep.subr.bf16.mxu1 %v5447_v24  ;;  %v5471_v24 = vld [vmem:[#allocation7 + $0x194] ss:$8 sps:$4 sm:$0xff]  }
 0x10a   : > { %1354 = vmatmul.mubr.bf16.gmra.mxu1 %v795_v32  ;;  %1274 = vmatmul.mubr.bf16.gmra.mxu0 %v763_v34  ;;  %v779_v32 = vpack.c.bf16 %v683_v28, %v679_v27  ;;  %v5472_v34 = vld [vmem:[#allocation7 + $0x180] ss:$8 sps:$4 sm:$0xff]  }
 0x10b   : > { %1417 = vmatpush1.bf16.msra.mxu1 %v5445_v31  ;;  %1363 = vmatprep.mubr.bf16.mxu1 %v800_v35  ;;  %v5474_v31 = vld [vmem:[#allocation7 + $0x184] ss:$8 sps:$4 sm:$0xff]   ;;  %v625_v35 = vld [vmem:[%s6849_s4 + $0x10] sm:$0xff] }
 0x10c   : > { %1418 = vmatprep.subr.bf16.mxu1 %v5450_v33  ;;  %1283 = vmatprep.mubr.bf16.mxu0 %v768_v36  ;;  %v754_v33 = vpack.c.bf16 %v630_v26, %v626_v25  ;;  %v629_v36 = vld [vmem:[%s6849_s4 + $0x30] sm:$0xff] }
 0x10d   : > { %v753_v41 = vpack.c.bf16 %v629_v36, %v625_v35  ;;  %v5489_v25 = vld [vmem:[#allocation8 + $0x70] sm:$0xff]   ;;  %v5493_v35 = vld [vmem:[#allocation8 + $0x68] sm:$0xff]  }
 0x10e   : > { %v5490_v26 = vld [vmem:[#allocation8 + $0x30] sm:$0xff]   ;;  %v5494_v36 = vld [vmem:[#allocation8 + $0x28] sm:$0xff]  }
 0x10f   : > { %1419 = vmatpush1.bf16.msra.mxu1 %v5448_v37  ;;  %v634_v37 = vld [vmem:[%s6849_s4 + $0x58] sm:$0xff] }
 0x110   : > { %1420 = vmatprep.subr.bf16.mxu1 %v5453_v40  ;;  %v5476_v40 = vld [vmem:[#allocation10 + $0x38] sm:$0xff]   ;;  %v758_v43 = vpack.c.bf16 %v638_v38, %v634_v37 }
 0x112   : > { %1364 = vmatmul.mubr.bf16.gmra.mxu1 %v799_v48  ;;  %1284 = vmatmul.mubr.bf16.gmra.mxu0 %v767_v50  ;;  %v646_v48 = vld [vmem:[%s6849_s4 + $0xb8] sm:$0xff]  ;;  %v5480_v50 = vld [vmem:[#allocation10 + $0x28] sm:$0xff]  }
 0x113   : > { %1421 = vmatpush2.bf16.msra.mxu1 %v5451_v47  ;;  %1373 = vmatprep.mubr.bf16.mxu1 %v804_v51  ;;  %v642_v47 = vld [vmem:[%s6849_s4 + $0x98] sm:$0xff]  ;;  %v757_v51 = vpack.c.bf16 %v637_v45, %v633_v44 }
 0x114   : > { %1422 = vmatprep.subr.bf16.mxu1 %v5456_v49  ;;  %1293 = vmatprep.mubr.bf16.mxu0 %v772_v52  ;;  %v5479_v49 = vld [vmem:[#allocation10 + $0x68] sm:$0xff]   ;;  %v762_v52 = vpack.c.bf16 %v646_v48, %v642_v47  ;;  %v702_v44 = vld [vmem:[%s6849_s4 + $0x278] sm:$0xff] }
 0x115   : > { %v5499_v48 = vld [vmem:[#allocation8 + $0x18] sm:$0xff]  }
 0x117   : > { %1423 = vmatpush2.bf16.msra.mxu1 %v5454_v53  ;;  %v5481_v53 = vld [vmem:[#allocation10 + $0x60] sm:$0xff]  }
 0x118   : > { %1424 = vmatprep.subr.bf16.mxu1 %v5459_v56  ;;  %v5482_v56 = vld [vmem:[#allocation10 + $0x20] sm:$0xff]  }
 0x11a   : > { %1374 = vmatmul.mubr.bf16.gmra.mxu1 %v803_v0  ;;  %1294 = vmatmul.mubr.bf16.gmra.mxu0 %v771_v2  ;;  %v653_v0 = vld [vmem:[%s6849_s4 + $0xf0] sm:$0xff]  ;;  %v662_v2 = vld [vmem:[%s6849_s4 + $0x138] sm:$0xff] }
 0x11b   : > { %1425 = vmatpush2.bf16.msra.mxu1 %v5457_v63  ;;  %1383 = vmatprep.mubr.bf16.mxu1 %v808_v3  ;;  %v649_v63 = vld [vmem:[%s6849_s4 + $0xd0] sm:$0xff] }
 0x11c   : > { %1426 = vmatprep.subr.bf16.mxu1 %v5462_v1  ;;  %1303 = vmatprep.mubr.bf16.mxu0 %v776_v4  ;;  %v658_v1 = vld [vmem:[%s6849_s4 + $0x118] sm:$0xff]  ;;  %v765_v3 = vpack.c.bf16 %v653_v0, %v649_v63  ;;  %v709_v63 = vld [vmem:[%s6849_s4 + $0x2b0] sm:$0xff]  ;;  %v5506_v0 = vld [vmem:[#allocation8] sm:$0xff]  }
 0x11d   : > { %v770_v4 = vpack.c.bf16 %v662_v2, %v658_v1  ;;  %v714_v1 = vld [vmem:[%s6849_s4 + $0x2d8] sm:$0xff] }
 0x11e   : > { %v718_v2 = vld [vmem:[%s6849_s4 + $0x2f8] sm:$0xff] }
 0x11f   : > { %1427 = vmatpush2.bf16.msra.mxu1 %v5460_v5  ;;  %v657_v5 = vld [vmem:[%s6849_s4 + $0x110] sm:$0xff] }
 0x120   : > { %1428 = vmatprep.subr.bf16.mxu1 %v5465_v8  ;;  %v670_v8 = vld [vmem:[%s6849_s4 + $0x178] sm:$0xff]  ;;  %v769_v9 = vpack.c.bf16 %v661_v6, %v657_v5  ;;  %v713_v5 = vld [vmem:[%s6849_s4 + $0x2d0] sm:$0xff] }
 0x121   : > { %v774_v10 = vpack.c.bf16 %v670_v8, %v666_v7  ;;  %v717_v6 = vld [vmem:[%s6849_s4 + $0x2f0] sm:$0xff]  ;;  %v722_v7 = vld [vmem:[%s6849_s4 + $0x318] sm:$0xff] }
 0x122   : > { %1384 = vmatmul.mubr.bf16.gmra.mxu1 %v807_v16  ;;  %1304 = vmatmul.mubr.bf16.gmra.mxu0 %v775_v18  ;;  %v678_v16 = vld [vmem:[%s6849_s4 + $0x1b8] sm:$0xff] }
 0x123   : > { %1429 = vmatpush2.bf16.msra.mxu1 %v5463_v15  ;;  %1393 = vmatprep.mubr.bf16.mxu1 %v812_v19  ;;  %v674_v15 = vld [vmem:[%s6849_s4 + $0x198] sm:$0xff]  ;;  %v773_v19 = vpack.c.bf16 %v669_v14, %v665_v13 }
 0x124   : > { %1430 = vmatprep.subr.bf16.mxu1 %v5468_v17  ;;  %1313 = vmatprep.mubr.bf16.mxu0 %v780_v20  ;;  %v5487_v17 = vld [vmem:[#allocation8 + $0x78] sm:$0xff]   ;;  %v778_v20 = vpack.c.bf16 %v678_v16, %v674_v15 }
 0x125   : > { %v5488_v18 = vld [vmem:[#allocation8 + $0x38] sm:$0xff]   ;;  %4998 = vmatprep.subr.bf16.mxu0 %v5487_v17  ;;  %v729_v17 = vld [vmem:[%s6849_s4 + $0x350] sm:$0xff] }
 0x126   : > { %4999 = vmatpush3.bf16.msra.mxu0 %v5488_v18  ;;  %v726_v8 = vld [vmem:[%s6849_s4 + $0x338] sm:$0xff]  ;;  %v733_v18 = vld [vmem:[%s6849_s4 + $0x370] sm:$0xff] }
 0x127   : > { %1431 = vmatpush2.bf16.msra.mxu1 %v5466_v21  ;;  %v673_v21 = vld [vmem:[%s6849_s4 + $0x190] sm:$0xff]  ;;  %5000 = vmatprep.subr.bf16.mxu0 %v5489_v25  ;;  %v730_v13 = vld [vmem:[%s6849_s4 + $0x358] sm:$0xff] }
 0x128   : > { %1432 = vmatprep.subr.bf16.mxu1 %v5471_v24  ;;  %v686_v24 = vld [vmem:[%s6849_s4 + $0x1f8] sm:$0xff]  ;;  %v777_v27 = vpack.c.bf16 %v677_v22, %v673_v21  ;;  %v805_v21 = vpack.c.bf16 %v733_v18, %v729_v17 }
 0x129   : > { %v782_v28 = vpack.c.bf16 %v686_v24, %v682_v23  ;;  %v734_v14 = vld [vmem:[%s6849_s4 + $0x378] sm:$0xff]  ;;  %v737_v23 = vld [vmem:[%s6849_s4 + $0x390] sm:$0xff] }
 0x12a   : > { %1394 = vmatmul.mubr.bf16.gmra.mxu1 %v811_v30  ;;  %1314 = vmatmul.mubr.bf16.gmra.mxu0 %v779_v32  ;;  %v5492_v30 = vld [vmem:[#allocation10 + $0x8] sm:$0xff]   ;;  %v685_v32 = vld [vmem:[%s6849_s4 + $0x1f0] sm:$0xff]  ;;  %v806_v16 = vpack.c.bf16 %v734_v14, %v730_v13  ;;  %v746_v25 = vld [vmem:[%s6849_s4 + $0x3d8] sm:$0xff] }
 0x12b   : > { %1433 = vmatpush2.bf16.msra.mxu1 %v5469_v29  ;;  %1436 = vmatprep.mubr.bf16.mxu1 %v754_v33  ;;  %v5491_v29 = vld [vmem:[#allocation10 + $0x48] sm:$0xff]   ;;  %v690_v33 = vld [vmem:[%s6849_s4 + $0x218] sm:$0xff]  ;;  %v741_v24 = vld [vmem:[%s6849_s4 + $0x3b0] sm:$0xff] }
 0x12c   : > { %1434 = vmatprep.subr.bf16.mxu1 %v5474_v31  ;;  %5001 = vmatpush3.bf16.msra.mxu0 %v5490_v26  ;;  %v681_v31 = vld [vmem:[%s6849_s4 + $0x1d0] sm:$0xff]  ;;  %v750_v26 = vld [vmem:[%s6849_s4 + $0x3f8] sm:$0xff] }
 0x12d   : > { %v781_v37 = vpack.c.bf16 %v685_v32, %v681_v31  ;;  %5002 = vmatprep.subr.bf16.mxu0 %v5493_v35  ;;  %v881_v31 = vlaneseq  ;;  %v879_v35 = vld [vmem:[%s8100_s3] sm:$0x3] }
 0x12f   : > { %1435 = vmatpush2.bf16.msra.mxu1 %v5472_v34  ;;  %v694_v34 = vld [vmem:[%s6849_s4 + $0x238] sm:$0xff] }
 0x130   : > { %5110 = vmatprep.subr.bf16.mxu1 %v5475_v39  ;;  %v786_v38 = vpack.c.bf16 %v694_v34, %v690_v33  ;;  %5003 = vmatpush3.bf16.msra.mxu0 %v5494_v36  ;;  %v5495_v39 = vld [vmem:[#allocation8 + $0x60] sm:$0xff]   ;;  %v7008_v33 = vshrl.u32 %v881_v31, 7 }
 0x131   : > { %5004 = vmatprep.subr.bf16.mxu0 %v5495_v39 }
 0x132   : > { %1437 = vmatmul.mubr.bf16.vlgmr.msra.gmra.mxu1 %v753_v41  ;;  %v693_v41 = vld [vmem:[%s6849_s4 + $0x230] sm:$0xff]  ;;  %8169 = vst [vmem:[#allocation29_spill] sm:$0xff] %v7008_v33  ;;  %v7011_v34 = vsub.s32 0, %v7008_v33  ;;  %v7017_v36 = vsub.s32 1, %v7008_v33 }
 0x133   : > { %1446 = vmatprep.mubr.bf16.mxu1 %v758_v43  ;;  %5111 = vmatpush3.bf16.msra.mxu1 %v5476_v40  ;;  %v689_v40 = vld [vmem:[%s6849_s4 + $0x210] sm:$0xff]  ;;  %v698_v43 = vld [vmem:[%s6849_s4 + $0x258] sm:$0xff] }
 0x134   : > { %5112 = vmatprep.subr.bf16.mxu1 %v5477_v42  ;;  %v5496_v42 = vld [vmem:[#allocation8 + $0x20] sm:$0xff]   ;;  %v785_v45 = vpack.c.bf16 %v693_v41, %v689_v40  ;;  %v790_v47 = vpack.c.bf16 %v702_v44, %v698_v43  ;;  %8170 = vst [vmem:[#allocation30_spill] sm:$0xff] %v7011_v34  ;;  %8171 = vst [vmem:[#allocation31_spill] sm:$0xff] %v7017_v36 }
 0x135   : > { %5005 = vmatpush3.bf16.msra.mxu0 %v5496_v42 }
 0x137   : > { %5113 = vmatpush3.bf16.msra.mxu1 %v5478_v46  ;;  %v5497_v46 = vld [vmem:[#allocation8 + $0x58] sm:$0xff]  }
 0x138   : > { %5114 = vmatprep.subr.bf16.mxu1 %v5479_v49  ;;  %5006 = vmatprep.subr.bf16.mxu0 %v5497_v46  ;;  %v5498_v49 = vld [vmem:[#allocation10 + $0x40] sm:$0xff]  }
 0x139   : > { %5007 = vmatpush3.bf16.msra.mxu0 %v5499_v48 }
 0x13a   : > { %1447 = vmatmul.mubr.bf16.gmra.mxu1 %v757_v51  ;;  %v5501_v51 = vld [vmem:[#allocation8 + $0x50] sm:$0xff]  }
 0x13b   : > { %1456 = vmatprep.mubr.bf16.mxu1 %v762_v52  ;;  %5115 = vmatpush3.bf16.msra.mxu1 %v5480_v50  ;;  %v5500_v50 = vld [vmem:[#allocation10] sm:$0xff]   ;;  %v697_v52 = vld [vmem:[%s6849_s4 + $0x250] sm:$0xff] }
 0x13c   : > { %5116 = vmatprep.subr.bf16.mxu1 %v5481_v53  ;;  %v701_v53 = vld [vmem:[%s6849_s4 + $0x270] sm:$0xff]  ;;  %5008 = vmatprep.subr.bf16.mxu0 %v5501_v51 }
 0x13d   : > { %5009 = vmatpush3.bf16.msra.mxu0 %v5502_v54  ;;  %v789_v57 = vpack.c.bf16 %v701_v53, %v697_v52 }
 0x13e   : > { %5010 = vmatprep.subr.bf16.mxu0 %v5503_v58 }
 0x13f   : > { %5117 = vmatpush3.bf16.msra.mxu1 %v5482_v56  ;;  %v710_v56 = vld [vmem:[%s6849_s4 + $0x2b8] sm:$0xff] }
 0x140   : > { %5118 = vmatprep.subr.bf16.mxu1 %v5483_v61  ;;  %v5505_v61 = vld [vmem:[#allocation8 + $0x40] sm:$0xff]  }
 0x142   : > { %1457 = vmatmul.mubr.bf16.gmra.mxu1 %v761_v59  ;;  %v794_v59 = vpack.c.bf16 %v710_v56, %v706_v55 }
 0x143   : > { %1466 = vmatprep.mubr.bf16.mxu1 %v766_v60  ;;  %5119 = vmatpush3.bf16.msra.mxu1 %v5484_v62  ;;  %v5504_v60 = vld [vmem:[#allocation8 + $0x8] sm:$0xff]   ;;  %v705_v62 = vld [vmem:[%s6849_s4 + $0x290] sm:$0xff] }
 0x144   : > { %5120 = vmatprep.subr.bf16.mxu1 %v5485_v11  ;;  %5011 = vmatpush3.bf16.msra.mxu0 %v5504_v60  ;;  %v721_v11 = vld [vmem:[%s6849_s4 + $0x310] sm:$0xff] }
 0x145   : > { %5012 = vmatprep.subr.bf16.mxu0 %v5505_v61 }
 0x147   : > { %5121 = vmatpush3.bf16.msra.mxu1 %v5486_v12  ;;  %v725_v12 = vld [vmem:[%s6849_s4 + $0x330] sm:$0xff] }
 0x148   : > { %5122 = vmatprep.subr.bf16.mxu1 %v5491_v29  ;;  %5013 = vmatpush3.bf16.msra.mxu0 %v5506_v0  ;;  %v801_v15 = vpack.c.bf16 %v725_v12, %v721_v11  ;;  %v745_v29 = vld [vmem:[%s6849_s4 + $0x3d0] sm:$0xff] }
 0x14a   : > { %1467 = vmatmul.mubr.bf16.gmra.mxu1 %v765_v3  ;;  %v793_v3 = vpack.c.bf16 %v709_v63, %v705_v62 }
 0x14b   : > { %1476 = vmatprep.mubr.bf16.mxu1 %v770_v4  ;;  %5123 = vmatpush3.bf16.msra.mxu1 %v5492_v30  ;;  %v798_v4 = vpack.c.bf16 %v718_v2, %v714_v1  ;;  %v749_v30 = vld [vmem:[%s6849_s4 + $0x3f0] sm:$0xff] }
 0x14c   : > { %5124 = vmatprep.subr.bf16.mxu1 %v5498_v49  ;;  %v813_v32 = vpack.c.bf16 %v749_v30, %v745_v29 }
 0x14f   : > { %5125 = vmatpush3.bf16.msra.mxu1 %v5500_v50 }
 0x152   : > { %1477 = vmatmul.mubr.bf16.gmra.mxu1 %v769_v9  ;;  %v797_v9 = vpack.c.bf16 %v717_v6, %v713_v5 }
 0x153   : > { %1486 = vmatprep.mubr.bf16.mxu1 %v774_v10  ;;  %v802_v10 = vpack.c.bf16 %v726_v8, %v722_v7 }
 0x15a   : > { %1487 = vmatmul.mubr.bf16.gmra.mxu1 %v773_v19  ;;  %v738_v19 = vld [vmem:[%s6849_s4 + $0x398] sm:$0xff] }
 0x15b   : > { %1496 = vmatprep.mubr.bf16.mxu1 %v778_v20  ;;  %v742_v20 = vld [vmem:[%s6849_s4 + $0x3b8] sm:$0xff] }
 0x15c   : > { %v810_v22 = vpack.c.bf16 %v742_v20, %v738_v19 }
 0x162   : > { %1497 = vmatmul.mubr.bf16.gmra.mxu1 %v777_v27  ;;  %v809_v27 = vpack.c.bf16 %v741_v24, %v737_v23 }
 0x163   : > { %1506 = vmatprep.mubr.bf16.mxu1 %v782_v28  ;;  %v814_v28 = vpack.c.bf16 %v750_v26, %v746_v25 }
 0x16a   : > { %1507 = vmatmul.mubr.bf16.gmra.mxu1 %v781_v37  ;;  %v7020_v37 = vrot.slane %v879_v35, %v7011_v34 }
 0x16b   : > { %1516 = vmatprep.mubr.bf16.mxu1 %v786_v38  ;;  %v7023_v38 = vrot.slane %v879_v35, %v7017_v36 }
 0x172   : > { %1517 = vmatmul.mubr.bf16.gmra.mxu1 %v785_v45 }
 0x173   : > { %1526 = vmatprep.mubr.bf16.mxu1 %v790_v47 }
 0x17a   : > { %1527 = vmatmul.mubr.bf16.gmra.mxu1 %v789_v57 }
 0x17b   : > { %1536 = vmatprep.mubr.bf16.mxu1 %v794_v59 }
 0x182   : > { %1537 = vmatmul.mubr.bf16.gmra.mxu1 %v793_v3 }
 0x183   : > { %1546 = vmatprep.mubr.bf16.mxu1 %v798_v4 }
 0x18a   : > { %1547 = vmatmul.mubr.bf16.gmra.mxu1 %v797_v9 }
 0x18b   : > { %1556 = vmatprep.mubr.bf16.mxu1 %v802_v10 }
 0x192   : > { %1557 = vmatmul.mubr.bf16.gmra.mxu1 %v801_v15 }
 0x193   : > { %1566 = vmatprep.mubr.bf16.mxu1 %v806_v16 }
 0x19a   : > { %1567 = vmatmul.mubr.bf16.gmra.mxu1 %v805_v21 }
 0x19b   : > { %1576 = vmatprep.mubr.bf16.mxu1 %v810_v22 }
 0x1a2   : > { %1577 = vmatmul.mubr.bf16.gmra.mxu1 %v809_v27 }
 0x1a3   : > { %1586 = vmatprep.mubr.bf16.mxu1 %v814_v28 }
 0x1aa   : > { %1587 = vmatmul.mubr.bf16.gmra.mxu1 %v813_v32 }
 0x1b2   : > { %v1325_v39 = vpop.f32.mrf.mxu1  ;;  %v7025_v40 = vpop.f32.mrf.mxu0 }
 0x1b3   : > { %v7028_v41 = vadd.f32 %v1325_v39, %v7020_v37 }
 0x1b4   : > { %v1327_v42 = vpop.f32.mrf.mxu1  ;;  %v7030_v43 = vpop.f32.mrf.mxu0 }
 0x1b5   : > { %v7033_v44 = vadd.f32 %v1327_v42, %v7023_v38  ;;  %v5509_v42 = vld [vmem:[#allocation11 + $0x74] ss:$8 sps:$4 sm:$0xff]  }
 0x1b6   : > { %v1329_v45 = vpop.f32.mrf.mxu1  ;;  %v7040_v48 = vpop.f32.mrf.mxu0  ;;  %2601 = vmatprep.subr.bf16.mxu0 %v5509_v42 }
 0x1b7   : > { %v7036_v46 = vadd.f32 %v1329_v45, %v7020_v37  ;;  %v1250_v42 = vadd.f32 %v7040_v48, %v7020_v37 }
 0x1b8   : > { %v7038_v47 = vpop.f32.mrf.mxu1  ;;  %v7045_v52 = vpop.f32.mrf.mxu0 }
 0x1ba   : > { %v1335_v49 = vpop.f32.mrf.mxu1  ;;  %v7055_v57 = vpop.f32.mrf.mxu0 }
 0x1bb   : > { %v7043_v50 = vadd.f32 %v1335_v49, %v7020_v37 }
 0x1bc   : > { %v1337_v51 = vpop.f32.mrf.mxu1  ;;  %v7060_v61 = vpop.f32.mrf.mxu0 }
 0x1bd   : > { %v7048_v53 = vadd.f32 %v1337_v51, %v7023_v38 }
 0x1be   : > { %v1339_v54 = vpop.f32.mrf.mxu1  ;;  %v7070_v2 = vpop.f32.mrf.mxu0 }
 0x1bf   : > { %v7051_v55 = vadd.f32 %v1339_v54, %v7020_v37 }
 0x1c0   : > { %v7053_v56 = vpop.f32.mrf.mxu1  ;;  %v7075_v6 = vpop.f32.mrf.mxu0 }
 0x1c2   : > { %v1345_v58 = vpop.f32.mrf.mxu1  ;;  %v7085_v11 = vpop.f32.mrf.mxu0 }
 0x1c3   : > { %v7058_v59 = vadd.f32 %v1345_v58, %v7020_v37 }
 0x1c4   : > { %v1347_v60 = vpop.f32.mrf.mxu1  ;;  %v7090_v15 = vpop.f32.mrf.mxu0 }
 0x1c5   : > { %v7063_v62 = vadd.f32 %v1347_v60, %v7023_v38 }
 0x1c6   : > { %v1349_v63 = vpop.f32.mrf.mxu1  ;;  %v7100_v20 = vpop.f32.mrf.mxu0 }
 0x1c7   : > { %v7066_v0 = vadd.f32 %v1349_v63, %v7020_v37 }
 0x1c8   : > { %v7068_v1 = vpop.f32.mrf.mxu1  ;;  %v7105_v24 = vpop.f32.mrf.mxu0 }
 0x1ca   : > { %v1355_v3 = vpop.f32.mrf.mxu1  ;;  %v7115_v29 = vpop.f32.mrf.mxu0 }
 0x1cb   : > { %v7073_v4 = vadd.f32 %v1355_v3, %v7020_v37 }
 0x1cc   : > { %v1357_v5 = vpop.f32.mrf.mxu1  ;;  %v7120_v35 = vpop.f32.mrf.mxu0 }
 0x1cd   : > { %v7078_v7 = vadd.f32 %v1357_v5, %v7023_v38 }
 0x1ce   : > { %v1359_v8 = vpop.f32.mrf.mxu1  ;;  %v7130_v54 = vpop.f32.mrf.mxu0 }
 0x1cf   : > { %v7081_v9 = vadd.f32 %v1359_v8, %v7020_v37 }
 0x1d0   : > { %v7083_v10 = vpop.f32.mrf.mxu1  ;;  %v7135_v3 = vpop.f32.mrf.mxu0 }
 0x1d2   : > { %v1365_v12 = vpop.f32.mrf.mxu1 }
 0x1d3   : > { %v7088_v13 = vadd.f32 %v1365_v12, %v7020_v37 }
 0x1d4   : > { %v1367_v14 = vpop.f32.mrf.mxu1 }
 0x1d5   : > { %v7093_v16 = vadd.f32 %v1367_v14, %v7023_v38 }
 0x1d6   : > { %v1369_v17 = vpop.f32.mrf.mxu1 }
 0x1d7   : > { %v7096_v18 = vadd.f32 %v1369_v17, %v7020_v37  ;;  %v7145_v17 = vpop.f32.mrf.mxu0 }
 0x1d8   : > { %v7098_v19 = vpop.f32.mrf.mxu1 }
 0x1da   : > { %v1375_v21 = vpop.f32.mrf.mxu1 }
 0x1db   : > { %v7103_v22 = vadd.f32 %v1375_v21, %v7020_v37 }
 0x1dc   : > { %v1377_v23 = vpop.f32.mrf.mxu1 }
 0x1dd   : > { %v7108_v25 = vadd.f32 %v1377_v23, %v7023_v38  ;;  %v1246_v23 = vadd.f32 %v7025_v40, %v7020_v37 }
 0x1de   : > { %v1379_v26 = vpop.f32.mrf.mxu1 }
 0x1df   : > { %v7111_v27 = vadd.f32 %v1379_v26, %v7020_v37 }
 0x1e0   : > { %v7113_v28 = vpop.f32.mrf.mxu1 }
 0x1e2   : > { %v1385_v30 = vpop.f32.mrf.mxu1 }
 0x1e3   : > { %v7118_v31 = vadd.f32 %v1385_v30, %v7020_v37  ;;  %v7149_v30 = vpop.f32.mrf.mxu0 }
 0x1e4   : > { %v1387_v32 = vpop.f32.mrf.mxu1 }
 0x1e5   : > { %v7123_v39 = vadd.f32 %v1387_v32, %v7023_v38  ;;  %v1248_v32 = vadd.f32 %v7030_v43, %v7023_v38  ;;  %v7157_v36 = vpop.f32.mrf.mxu0  ;;  %v1256_v43 = vadd.f32 %v7055_v57, %v7020_v37 }
 0x1e6   : > { %v1389_v45 = vpop.f32.mrf.mxu1 }
 0x1e7   : > { %8172 = vst [vmem:[#allocation32_spill] sm:$0xff] %v7123_v39  ;;  %v7126_v49 = vadd.f32 %v1389_v45, %v7020_v37  ;;  %v7161_v39 = vpop.f32.mrf.mxu0 }
 0x1e8   : > { %v7128_v51 = vpop.f32.mrf.mxu1 }
 0x1e9   : > { %8173 = vst [vmem:[#allocation33_spill] sm:$0xff] %v7126_v49 }
 0x1ea   : > { %v1395_v58 = vpop.f32.mrf.mxu1 }
 0x1eb   : > { %v7133_v60 = vadd.f32 %v1395_v58, %v7020_v37  ;;  %v1252_v58 = vadd.f32 %v7045_v52, %v7023_v38  ;;  %v1258_v52 = vadd.f32 %v7060_v61, %v7023_v38  ;;  %v7169_v61 = vpop.f32.mrf.mxu0 }
 0x1ec   : > { %v1397_v63 = vpop.f32.mrf.mxu1 }
 0x1ed   : > { %8174 = vst [vmem:[#allocation34_spill] sm:$0xff] %v7133_v60  ;;  %v7138_v5 = vadd.f32 %v1397_v63, %v7023_v38 }
 0x1ee   : > { %v1399_v8 = vpop.f32.mrf.mxu1 }
 0x1ef   : > { %8175 = vst [vmem:[#allocation35_spill] sm:$0xff] %v7138_v5  ;;  %v7141_v12 = vadd.f32 %v1399_v8, %v7020_v37 }
 0x1f0   : > { %v7143_v14 = vpop.f32.mrf.mxu1 }
 0x1f1   : > { %8176 = vst [vmem:[#allocation36_spill] sm:$0xff] %v7141_v12  ;;  %8177 = vst [vmem:[#allocation37_spill] sm:$0xff] %v7143_v14 }
 0x1f2   : > { %v1438_v21 = vpop.f32.mrf.mxu1 }
 0x1f3   : > { %v1439_v33 = vadd.f32 %v1438_v21, %v1246_v23  ;;  %v1260_v21 = vadd.f32 %v7070_v2, %v7020_v37  ;;  %v5510_v2 = vld [vmem:[#allocation11 + $0x60] ss:$8 sps:$4 sm:$0xff]  }
 0x1f4   : > { %v1440_v26 = vpop.f32.mrf.mxu1 }
 0x1f5   : > { %v1441_v63 = vadd.f32 %v1440_v26, %v1248_v32  ;;  %v1597_v49 = vmax.f32 %v1439_v33, 0.0  ;;  %v5507_v26 = vld [vmem:[#allocation11 + $0x70] ss:$8 sps:$4 sm:$0xff]   ;;  %v1262_v33 = vadd.f32 %v7075_v6, %v7023_v38 }
 0x1f6   : > { %v1442_v45 = vpop.f32.mrf.mxu1 }
 0x1f7   : > { %v1443_v8 = vadd.f32 %v1442_v45, %v1250_v42  ;;  %v1598_v14 = vmax.f32 %v1441_v63, 0.0  ;;  %v5512_v42 = vld [vmem:[#allocation11 + $0x64] ss:$8 sps:$4 sm:$0xff]  }
 0x1f8   : > { %v1444_v34 = vpop.f32.mrf.mxu1 }
 0x1f9   : > { %v1445_v40 = vadd.f32 %v1444_v34, %v1252_v58  ;;  %v1599_v12 = vmax.f32 %v1443_v8, 0.0 }
 0x1fa   : > { %v1448_v5 = vpop.f32.mrf.mxu1 }
 0x1fb   : > { %v1600_v60 = vmax.f32 %v1445_v40, 0.0  ;;  %v1661_v34 = vpack.c.bf16 %v1599_v12, %v1597_v49  ;;  %v1449_v57 = vadd.f32 %v1448_v5, %v1256_v43  ;;  %v5515_v12 = vld [vmem:[#allocation11 + $0x54] ss:$8 sps:$4 sm:$0xff]   ;;  %v7173_v5 = vpop.f32.mrf.mxu0  ;;  %v1268_v43 = vadd.f32 %v7090_v15, %v7023_v38 }
 0x1fc   : > { %v1450_v48 = vpop.f32.mrf.mxu1 }
 0x1fd   : > { %v1662_v23 = vpack.c.bf16 %v1600_v60, %v1598_v14  ;;  %v1451_v45 = vadd.f32 %v1450_v48, %v1258_v52  ;;  %v1601_v6 = vmax.f32 %v1449_v57, 0.0  ;;  %v1266_v48 = vadd.f32 %v7085_v11, %v7020_v37  ;;  %v7181_v15 = vpop.f32.mrf.mxu0 }
 0x1fe   : > { %v1452_v32 = vpop.f32.mrf.mxu1 }
 0x1ff   : > { %v1453_v58 = vadd.f32 %v1452_v32, %v1260_v21  ;;  %1860 = vmatprep.mubr.bf16.mxu0 %v1662_v23  ;;  %2156 = vmatprep.mubr.bf16.mxu1 %v1662_v23  ;;  %v1602_v14 = vmax.f32 %v1451_v45, 0.0  ;;  %v1270_v21 = vadd.f32 %v7100_v20, %v7020_v37 }
 0x200   : > { %v1454_v63 = vpop.f32.mrf.mxu1  ;;  %1861 = vmatmul.mubr.bf16.vlgmr.msra.gmra.mxu0 %v1661_v34  ;;  %2157 = vmatmul.mubr.bf16.vlgmr.msra.gmra.mxu1 %v1661_v34 }
 0x201   : > { %v1455_v8 = vadd.f32 %v1454_v63, %v1262_v33  ;;  %2602 = vmatpush1.bf16.msra.mxu0 %v5507_v26  ;;  %v1603_v60 = vmax.f32 %v1453_v58, 0.0  ;;  %v5513_v26 = vld [vmem:[#allocation11 + $0x50] ss:$8 sps:$4 sm:$0xff]   ;;  %v1272_v33 = vadd.f32 %v7105_v24, %v7023_v38  ;;  %v5516_v63 = vld [vmem:[#allocation11 + $0x40] ss:$8 sps:$4 sm:$0xff]  }
 0x202   : > { %v1458_v49 = vpop.f32.mrf.mxu1  ;;  %2603 = vmatprep.subr.bf16.mxu0 %v5512_v42  ;;  %v5518_v42 = vld [vmem:[#allocation11 + $0x44] ss:$8 sps:$4 sm:$0xff]  }
 0x203   : > { %v1604_v40 = vmax.f32 %v1455_v8, 0.0  ;;  %v1663_v34 = vpack.c.bf16 %v1603_v60, %v1601_v6  ;;  %v1459_v58 = vadd.f32 %v1458_v49, %v1266_v48  ;;  %v5521_v60 = vld [vmem:[#allocation11 + $0x34] ss:$8 sps:$4 sm:$0xff]   ;;  %v1301_v49 = vpop.f32.mrf.mxu0  ;;  %v1278_v48 = vadd.f32 %v7120_v35, %v7023_v38 }
 0x204   : > { %v1460_v52 = vpop.f32.mrf.mxu1 }
 0x205   : > { %v1664_v23 = vpack.c.bf16 %v1604_v40, %v1602_v14  ;;  %2604 = vmatpush1.bf16.msra.mxu0 %v5510_v2  ;;  %v1461_v11 = vadd.f32 %v1460_v52, %v1268_v43  ;;  %v1605_v24 = vmax.f32 %v1459_v58, 0.0  ;;  %v1276_v40 = vadd.f32 %v7115_v29, %v7020_v37  ;;  %v1305_v35 = vpop.f32.mrf.mxu0 }
 0x206   : > { %v1462_v32 = vpop.f32.mrf.mxu1  ;;  %2605 = vmatprep.subr.bf16.mxu0 %v5515_v12  ;;  %v1280_v52 = vadd.f32 %v7130_v54, %v7020_v37 }
 0x207   : > { %v1463_v45 = vadd.f32 %v1462_v32, %v1270_v21  ;;  %1868 = vmatprep.mubr.bf16.mxu0 %v1664_v23  ;;  %2164 = vmatprep.mubr.bf16.mxu1 %v1664_v23  ;;  %v1606_v12 = vmax.f32 %v1461_v11, 0.0  ;;  %v5519_v21 = vld [vmem:[#allocation11 + $0x30] ss:$8 sps:$4 sm:$0xff]   ;;  %v1282_v32 = vadd.f32 %v7135_v3, %v7023_v38  ;;  %v1286_v3 = vadd.f32 %v7145_v17, %v7020_v37 }
 0x208   : > { %v1464_v57 = vpop.f32.mrf.mxu1  ;;  %1869 = vmatmul.mubr.bf16.gmra.mxu0 %v1663_v34  ;;  %2165 = vmatmul.mubr.bf16.gmra.mxu1 %v1663_v34  ;;  %v5524_v34 = vld [vmem:[#allocation11 + $0x24] ss:$8 sps:$4 sm:$0xff]  }
 0x209   : > { %v1465_v20 = vadd.f32 %v1464_v57, %v1272_v33  ;;  %2606 = vmatpush1.bf16.msra.mxu0 %v5513_v26  ;;  %v1607_v8 = vmax.f32 %v1463_v45, 0.0  ;;  %v5522_v45 = vld [vmem:[#allocation11 + $0x20] ss:$8 sps:$4 sm:$0xff]  }
 0x20a   : > { %v1468_v2 = vpop.f32.mrf.mxu1  ;;  %2607 = vmatprep.subr.bf16.mxu0 %v5518_v42 }
 0x20b   : > { %v1608_v14 = vmax.f32 %v1465_v20, 0.0  ;;  %v1665_v23 = vpack.c.bf16 %v1607_v8, %v1605_v24  ;;  %v1469_v33 = vadd.f32 %v1468_v2, %v1276_v40  ;;  %v1288_v2 = vadd.f32 %v7149_v30, %v7023_v38 }
 0x20c   : > { %v1470_v6 = vpop.f32.mrf.mxu1 }
 0x20d   : > { %v1666_v43 = vpack.c.bf16 %v1608_v14, %v1606_v12  ;;  %2608 = vmatpush1.bf16.msra.mxu0 %v5516_v63  ;;  %v1471_v42 = vadd.f32 %v1470_v6, %v1278_v48  ;;  %v1609_v8 = vmax.f32 %v1469_v33, 0.0  ;;  %v1307_v12 = vpop.f32.mrf.mxu0  ;;  %v1290_v14 = vadd.f32 %v7157_v36, %v7020_v37 }
 0x20e   : > { %v1472_v26 = vpop.f32.mrf.mxu1  ;;  %2609 = vmatprep.subr.bf16.mxu0 %v5521_v60  ;;  %v1292_v48 = vadd.f32 %v7161_v39, %v7023_v38 }
 0x20f   : > { %v1473_v29 = vadd.f32 %v1472_v26, %v1280_v52  ;;  %1876 = vmatprep.mubr.bf16.mxu0 %v1666_v43  ;;  %2172 = vmatprep.mubr.bf16.mxu1 %v1666_v43  ;;  %v1610_v20 = vmax.f32 %v1471_v42, 0.0 }
 0x210   : > { %v1474_v11 = vpop.f32.mrf.mxu1  ;;  %1877 = vmatmul.mubr.bf16.gmra.mxu0 %v1665_v23  ;;  %2173 = vmatmul.mubr.bf16.gmra.mxu1 %v1665_v23  ;;  %v1309_v23 = vpop.f32.mrf.mxu0 }
 0x211   : > { %v1475_v54 = vadd.f32 %v1474_v11, %v1282_v32  ;;  %2610 = vmatpush1.bf16.msra.mxu0 %v5519_v21  ;;  %v1611_v58 = vmax.f32 %v1473_v29, 0.0  ;;  %v1296_v29 = vadd.f32 %v7169_v61, %v7020_v37  ;;  %v1298_v11 = vadd.f32 %v7173_v5, %v7023_v38 }
 0x212   : > { %v1478_v57 = vpop.f32.mrf.mxu1  ;;  %2611 = vmatprep.subr.bf16.mxu0 %v5524_v34  ;;  %v1311_v39 = vpop.f32.mrf.mxu0 }
 0x213   : > { %v1612_v63 = vmax.f32 %v1475_v54, 0.0  ;;  %v1667_v40 = vpack.c.bf16 %v1611_v58, %v1609_v8  ;;  %v1479_v17 = vadd.f32 %v1478_v57, %v1286_v3  ;;  %v1300_v54 = vadd.f32 %v7181_v15, %v7020_v37 }
 0x214   : > { %v1480_v60 = vpop.f32.mrf.mxu1  ;;  %v1315_v61 = vpop.f32.mrf.mxu0 }
 0x215   : > { %v1668_v24 = vpack.c.bf16 %v1612_v63, %v1610_v20  ;;  %2612 = vmatpush1.bf16.msra.mxu0 %v5522_v45  ;;  %v1481_v52 = vadd.f32 %v1480_v60, %v1288_v2  ;;  %v1613_v42 = vmax.f32 %v1479_v17, 0.0  ;;  %v1302_v20 = vadd.f32 %v1301_v49, %v7023_v38 }
 0x216   : > { %v1482_v6 = vpop.f32.mrf.mxu1  ;;  %v1308_v49 = vadd.f32 %v1307_v12, %v7023_v38 }
 0x217   : > { %v1483_v43 = vadd.f32 %v1482_v6, %v1290_v14  ;;  %1884 = vmatprep.mubr.bf16.mxu0 %v1668_v24  ;;  %2180 = vmatprep.mubr.bf16.mxu1 %v1668_v24  ;;  %v1614_v36 = vmax.f32 %v1481_v52, 0.0  ;;  %v1306_v6 = vadd.f32 %v1305_v35, %v7020_v37  ;;  %v1317_v52 = vpop.f32.mrf.mxu0 }
 0x218   : > { %v1484_v21 = vpop.f32.mrf.mxu1  ;;  %1885 = vmatmul.mubr.bf16.gmra.mxu0 %v1667_v40  ;;  %2181 = vmatmul.mubr.bf16.gmra.mxu1 %v1667_v40 }
 0x219   : > { %v1485_v30 = vadd.f32 %v1484_v21, %v1292_v48  ;;  %v1615_v26 = vmax.f32 %v1483_v43, 0.0  ;;  %v1310_v43 = vadd.f32 %v1309_v23, %v7020_v37 }
 0x21a   : > { %v1488_v34 = vpop.f32.mrf.mxu1 }
 0x21b   : > { %v1616_v32 = vmax.f32 %v1485_v30, 0.0  ;;  %v1669_v58 = vpack.c.bf16 %v1615_v26, %v1613_v42  ;;  %v1489_v3 = vadd.f32 %v1488_v34, %v1296_v29  ;;  %v1312_v26 = vadd.f32 %v1311_v39, %v7023_v38  ;;  %v1319_v42 = vpop.f32.mrf.mxu0 }
 0x21c   : > { %v1490_v33 = vpop.f32.mrf.mxu1  ;;  %v1318_v39 = vadd.f32 %v1317_v52, %v7023_v38 }
 0x21d   : > { %v1670_v45 = vpack.c.bf16 %v1616_v32, %v1614_v36  ;;  %v1491_v63 = vadd.f32 %v1490_v33, %v1298_v11  ;;  %v1617_v15 = vmax.f32 %v1489_v3, 0.0 }
 0x21e   : > { %v1492_v57 = vpop.f32.mrf.mxu1 }
 0x21f   : > { %v1493_v8 = vadd.f32 %v1492_v57, %v1300_v54  ;;  %1892 = vmatprep.mubr.bf16.mxu0 %v1670_v45  ;;  %2188 = vmatprep.mubr.bf16.mxu1 %v1670_v45  ;;  %v1618_v24 = vmax.f32 %v1491_v63, 0.0  ;;  %v1316_v45 = vadd.f32 %v1315_v61, %v7020_v37 }
 0x220   : > { %v1494_v60 = vpop.f32.mrf.mxu1  ;;  %1893 = vmatmul.mubr.bf16.gmra.mxu0 %v1669_v58  ;;  %2189 = vmatmul.mubr.bf16.gmra.mxu1 %v1669_v58  ;;  %v1321_v58 = vpop.f32.mrf.mxu0 }
 0x221   : > { %v1495_v2 = vadd.f32 %v1494_v60, %v1302_v20  ;;  %v1619_v14 = vmax.f32 %v1493_v8, 0.0  ;;  %v1320_v20 = vadd.f32 %v1319_v42, %v7020_v37  ;;  %v1322_v60 = vadd.f32 %v1321_v58, %v7023_v38 }
 0x222   : > { %v1498_v5 = vpop.f32.mrf.mxu1 }
 0x223   : > { %v1620_v40 = vmax.f32 %v1495_v2, 0.0  ;;  %v1671_v21 = vpack.c.bf16 %v1619_v14, %v1617_v15  ;;  %v1499_v32 = vadd.f32 %v1498_v5, %v1306_v6 }
 0x224   : > { %v1500_v48 = vpop.f32.mrf.mxu1 }
 0x225   : > { %v1672_v17 = vpack.c.bf16 %v1620_v40, %v1618_v24  ;;  %v1501_v34 = vadd.f32 %v1500_v48, %v1308_v49  ;;  %v1621_v23 = vmax.f32 %v1499_v32, 0.0 }
 0x226   : > { %v1502_v30 = vpop.f32.mrf.mxu1 }
 0x227   : > { %v1503_v36 = vadd.f32 %v1502_v30, %v1310_v43  ;;  %1900 = vmatprep.mubr.bf16.mxu0 %v1672_v17  ;;  %2196 = vmatprep.mubr.bf16.mxu1 %v1672_v17  ;;  %v1622_v12 = vmax.f32 %v1501_v34, 0.0  ;;  %v1332_v30 = vadd.f32 %v7038_v47, %v7023_v38 }
 0x228   : > { %v1504_v29 = vpop.f32.mrf.mxu1  ;;  %1901 = vmatmul.mubr.bf16.gmra.mxu0 %v1671_v21  ;;  %2197 = vmatmul.mubr.bf16.gmra.mxu1 %v1671_v21 }
 0x229   : > { %v1505_v35 = vadd.f32 %v1504_v29, %v1312_v26  ;;  %v1623_v33 = vmax.f32 %v1503_v36, 0.0 }
 0x22a   : > { %v1508_v11 = vpop.f32.mrf.mxu1 }
 0x22b   : > { %v1624_v54 = vmax.f32 %v1505_v35, 0.0  ;;  %v1673_v8 = vpack.c.bf16 %v1623_v33, %v1621_v23  ;;  %v1509_v5 = vadd.f32 %v1508_v11, %v1316_v45 }
 0x22c   : > { %v1510_v57 = vpop.f32.mrf.mxu1 }
 0x22d   : > { %v1674_v63 = vpack.c.bf16 %v1624_v54, %v1622_v12  ;;  %v1511_v2 = vadd.f32 %v1510_v57, %v1318_v39  ;;  %v1625_v52 = vmax.f32 %v1509_v5, 0.0 }
 0x22e   : > { %v1512_v3 = vpop.f32.mrf.mxu1 }
 0x22f   : > { %v1513_v14 = vadd.f32 %v1512_v3, %v1320_v20  ;;  %1908 = vmatprep.mubr.bf16.mxu0 %v1674_v63  ;;  %2204 = vmatprep.mubr.bf16.mxu1 %v1674_v63  ;;  %v1626_v6 = vmax.f32 %v1511_v2, 0.0 }
 0x230   : > { %v1514_v24 = vpop.f32.mrf.mxu1  ;;  %1909 = vmatmul.mubr.bf16.gmra.mxu0 %v1673_v8  ;;  %2205 = vmatmul.mubr.bf16.gmra.mxu1 %v1673_v8 }
 0x231   : > { %v1515_v61 = vadd.f32 %v1514_v24, %v1322_v60  ;;  %v1627_v40 = vmax.f32 %v1513_v14, 0.0 }
 0x232   : > { %v1518_v15 = vpop.f32.mrf.mxu1 }
 0x233   : > { %v1628_v48 = vmax.f32 %v1515_v61, 0.0  ;;  %v1519_v49 = vadd.f32 %v1518_v15, %v7028_v41  ;;  %v1675_v17 = vpack.c.bf16 %v1627_v40, %v1625_v52 }
 0x234   : > { %v1520_v37 = vpop.f32.mrf.mxu1 }
 0x235   : > { %v1676_v43 = vpack.c.bf16 %v1628_v48, %v1626_v6  ;;  %v1521_v26 = vadd.f32 %v1520_v37, %v7033_v44  ;;  %v1629_v32 = vmax.f32 %v1519_v49, 0.0  ;;  %v1342_v44 = vadd.f32 %v7053_v56, %v7023_v38  ;;  %v5525_v37 = vld [vmem:[#allocation11 + $0x10] ss:$8 sps:$4 sm:$0xff]   ;;  %v5527_v49 = vld [vmem:[#allocation11 + $0x14] ss:$8 sps:$4 sm:$0xff]  }
 0x236   : > { %v1522_v21 = vpop.f32.mrf.mxu1  ;;  %2613 = vmatprep.subr.bf16.mxu0 %v5527_v49 }
 0x237   : > { %v1523_v34 = vadd.f32 %v1522_v21, %v7036_v46  ;;  %1916 = vmatprep.mubr.bf16.mxu0 %v1676_v43  ;;  %2212 = vmatprep.mubr.bf16.mxu1 %v1676_v43  ;;  %v1630_v41 = vmax.f32 %v1521_v26, 0.0 }
 0x238   : > { %v1524_v36 = vpop.f32.mrf.mxu1  ;;  %1917 = vmatmul.mubr.bf16.gmra.mxu0 %v1675_v17  ;;  %2213 = vmatmul.mubr.bf16.gmra.mxu1 %v1675_v17  ;;  %v1362_v17 = vadd.f32 %v7083_v10, %v7023_v38 }
 0x239   : > { %v1631_v42 = vmax.f32 %v1523_v34, 0.0  ;;  %v1525_v29 = vadd.f32 %v1524_v36, %v1332_v30  ;;  %2614 = vmatpush1.bf16.msra.mxu0 %v5525_v37 }
 0x23a   : > { %v1528_v35 = vpop.f32.mrf.mxu1 }
 0x23b   : > { %v1677_v33 = vpack.c.bf16 %v1631_v42, %v1629_v32  ;;  %v1632_v11 = vmax.f32 %v1525_v29, 0.0  ;;  %v1529_v54 = vadd.f32 %v1528_v35, %v7043_v50 }
 0x23c   : > { %v1530_v12 = vpop.f32.mrf.mxu1 }
 0x23d   : > { %v1678_v47 = vpack.c.bf16 %v1632_v11, %v1630_v41  ;;  %v1531_v46 = vadd.f32 %v1530_v12, %v7048_v53  ;;  %v1633_v57 = vmax.f32 %v1529_v54, 0.0  ;;  %v1352_v53 = vadd.f32 %v7068_v1, %v7023_v38 }
 0x23e   : > { %v1532_v23 = vpop.f32.mrf.mxu1 }
 0x23f   : > { %v1533_v45 = vadd.f32 %v1532_v23, %v7051_v55  ;;  %1924 = vmatprep.mubr.bf16.mxu0 %v1678_v47  ;;  %2220 = vmatprep.mubr.bf16.mxu1 %v1678_v47  ;;  %v1634_v8 = vmax.f32 %v1531_v46, 0.0 }
 0x240   : > { %v1534_v58 = vpop.f32.mrf.mxu1  ;;  %1925 = vmatmul.mubr.bf16.gmra.mxu0 %v1677_v33  ;;  %2221 = vmatmul.mubr.bf16.gmra.mxu1 %v1677_v33 }
 0x241   : > { %v1635_v39 = vmax.f32 %v1533_v45, 0.0  ;;  %v1535_v20 = vadd.f32 %v1534_v58, %v1342_v44 }
 0x242   : > { %v1538_v63 = vpop.f32.mrf.mxu1 }
 0x243   : > { %v1679_v50 = vpack.c.bf16 %v1635_v39, %v1633_v57  ;;  %v1636_v3 = vmax.f32 %v1535_v20, 0.0  ;;  %v1539_v2 = vadd.f32 %v1538_v63, %v7058_v59  ;;  %v5528_v57 = vld [vmem:[#allocation11] ss:$8 sps:$4 sm:$0xff]   ;;  %v5530_v39 = vld [vmem:[#allocation11 + $0x4] ss:$8 sps:$4 sm:$0xff]   ;;  %v1382_v63 = vadd.f32 %v7113_v28, %v7023_v38 }
 0x244   : > { %v1540_v60 = vpop.f32.mrf.mxu1  ;;  %2615 = vmatprep.subr.bf16.mxu0 %v5530_v39 }
 0x245   : > { %v1680_v56 = vpack.c.bf16 %v1636_v3, %v1634_v8  ;;  %v1541_v55 = vadd.f32 %v1540_v60, %v7063_v62  ;;  %v1637_v61 = vmax.f32 %v1539_v2, 0.0  ;;  %2616 = vmatpush1.bf16.msra.mxu0 %v5528_v57 }
 0x246   : > { %v1542_v14 = vpop.f32.mrf.mxu1 }
 0x247   : > { %v1543_v5 = vadd.f32 %v1542_v14, %v7066_v0  ;;  %1932 = vmatprep.mubr.bf16.mxu0 %v1680_v56  ;;  %2228 = vmatprep.mubr.bf16.mxu1 %v1680_v56  ;;  %v1638_v48 = vmax.f32 %v1541_v55, 0.0 }
 0x248   : > { %v1544_v24 = vpop.f32.mrf.mxu1  ;;  %1933 = vmatmul.mubr.bf16.gmra.mxu0 %v1679_v50  ;;  %2229 = vmatmul.mubr.bf16.gmra.mxu1 %v1679_v50 }
 0x249   : > { %v1639_v40 = vmax.f32 %v1543_v5, 0.0  ;;  %v1545_v15 = vadd.f32 %v1544_v24, %v1352_v53 }
 0x24a   : > { %v1548_v6 = vpop.f32.mrf.mxu1 }
 0x24b   : > { %v1681_v59 = vpack.c.bf16 %v1639_v40, %v1637_v61  ;;  %v1640_v52 = vmax.f32 %v1545_v15, 0.0  ;;  %v1549_v1 = vadd.f32 %v1548_v6, %v7073_v4  ;;  %v8179_v15 = vld [vmem:[#allocation33_spill] sm:$0xff] }
 0x24c   : > { %v1550_v43 = vpop.f32.mrf.mxu1 }
 0x24d   : > { %v1682_v62 = vpack.c.bf16 %v1640_v52, %v1638_v48  ;;  %v1551_v21 = vadd.f32 %v1550_v43, %v7078_v7  ;;  %v1641_v34 = vmax.f32 %v1549_v1, 0.0  ;;  %v1372_v7 = vadd.f32 %v7098_v19, %v7023_v38 }
 0x24e   : > { %v1552_v0 = vpop.f32.mrf.mxu1 }
 0x24f   : > { %v1553_v30 = vadd.f32 %v1552_v0, %v7081_v9  ;;  %1940 = vmatprep.mubr.bf16.mxu0 %v1682_v62  ;;  %2236 = vmatprep.mubr.bf16.mxu1 %v1682_v62  ;;  %v1642_v42 = vmax.f32 %v1551_v21, 0.0  ;;  %v8180_v0 = vld [vmem:[#allocation34_spill] sm:$0xff] }
 0x250   : > { %v1554_v26 = vpop.f32.mrf.mxu1  ;;  %1941 = vmatmul.mubr.bf16.gmra.mxu0 %v1681_v59  ;;  %2237 = vmatmul.mubr.bf16.gmra.mxu1 %v1681_v59 }
 0x251   : > { %v1643_v36 = vmax.f32 %v1553_v30, 0.0  ;;  %v1555_v32 = vadd.f32 %v1554_v26, %v1362_v17  ;;  %v8181_v30 = vld [vmem:[#allocation37_spill] sm:$0xff] }
 0x252   : > { %v1558_v4 = vpop.f32.mrf.mxu1  ;;  %v1402_v26 = vadd.f32 %v8181_v30, %v7023_v38 }
 0x253   : > { %v1683_v29 = vpack.c.bf16 %v1643_v36, %v1641_v34  ;;  %v1644_v35 = vmax.f32 %v1555_v32, 0.0  ;;  %v1559_v33 = vadd.f32 %v1558_v4, %v7088_v13  ;;  %v8182_v34 = vld [vmem:[#allocation35_spill] sm:$0xff]  ;;  %v8183_v32 = vld [vmem:[#allocation36_spill] sm:$0xff] }
 0x254   : > { %v1560_v41 = vpop.f32.mrf.mxu1 }
 0x255   : > { %v1684_v10 = vpack.c.bf16 %v1644_v35, %v1642_v42  ;;  %v1561_v9 = vadd.f32 %v1560_v41, %v7093_v16  ;;  %v1645_v47 = vmax.f32 %v1559_v33, 0.0 }
 0x256   : > { %v1562_v11 = vpop.f32.mrf.mxu1 }
 0x257   : > { %v1563_v12 = vadd.f32 %v1562_v11, %v7096_v18  ;;  %1948 = vmatprep.mubr.bf16.mxu0 %v1684_v10  ;;  %2244 = vmatprep.mubr.bf16.mxu1 %v1684_v10  ;;  %v1646_v45 = vmax.f32 %v1561_v9, 0.0  ;;  %v5531_v9 = vld [vmem:[#allocation13 + $0xe0] ss:$16 sps:$4 sm:$0xff]  }
 0x258   : > { %v1564_v54 = vpop.f32.mrf.mxu1  ;;  %1949 = vmatmul.mubr.bf16.gmra.mxu0 %v1683_v29  ;;  %2245 = vmatmul.mubr.bf16.gmra.mxu1 %v1683_v29 }
 0x259   : > { %v1647_v23 = vmax.f32 %v1563_v12, 0.0  ;;  %v1565_v44 = vadd.f32 %v1564_v54, %v1372_v7  ;;  %v5533_v12 = vld [vmem:[#allocation13 + $0xe4] ss:$16 sps:$4 sm:$0xff]   ;;  %v5536_v54 = vld [vmem:[#allocation13 + $0xec] ss:$16 sps:$4 sm:$0xff]  }
 0x25a   : > { %v1568_v46 = vpop.f32.mrf.mxu1  ;;  %3296 = vmatprep.subr.bf16.mxu1 %v5533_v12  ;;  %3489 = vmatprep.subr.bf16.mxu0 %v5536_v54 }
 0x25b   : > { %v1685_v13 = vpack.c.bf16 %v1647_v23, %v1645_v47  ;;  %v1648_v58 = vmax.f32 %v1565_v44, 0.0  ;;  %v1569_v19 = vadd.f32 %v1568_v46, %v7103_v22  ;;  %3297 = vmatpush1.bf16.msra.mxu1 %v5531_v9  ;;  %v5537_v47 = vld [vmem:[#allocation13 + $0xc0] ss:$16 sps:$4 sm:$0xff]   ;;  %v5539_v23 = vld [vmem:[#allocation13 + $0xc4] ss:$16 sps:$4 sm:$0xff]  }
 0x25c   : > { %v1570_v20 = vpop.f32.mrf.mxu1  ;;  %3298 = vmatprep.subr.bf16.mxu1 %v5539_v23 }
 0x25d   : > { %v1686_v16 = vpack.c.bf16 %v1648_v58, %v1646_v45  ;;  %v1571_v8 = vadd.f32 %v1570_v20, %v7108_v25  ;;  %v1649_v60 = vmax.f32 %v1569_v19, 0.0  ;;  %v1392_v25 = vadd.f32 %v7128_v51, %v7023_v38  ;;  %v7258_v45 = vld [vmem:[%s8102_s5] ss:$0 sm:$0xff] }
 0x25e   : > { %v1572_v18 = vpop.f32.mrf.mxu1  ;;  %v6544_v38 = vmov 0   ;;  %v7263_v58 = vld [vmem:[%s8104_s7] ss:$0 sm:$0xff] }
 0x25f   : > { %v1573_v50 = vadd.f32 %v1572_v18, %v7111_v27  ;;  %1956 = vmatprep.mubr.bf16.mxu0 %v1686_v16  ;;  %2252 = vmatprep.mubr.bf16.mxu1 %v1686_v16  ;;  %v1650_v14 = vmax.f32 %v1571_v8, 0.0  ;;  %v8178_v27 = vld [vmem:[#allocation32_spill] sm:$0xff] }
 0x260   : > { %v1574_v3 = vpop.f32.mrf.mxu1  ;;  %1957 = vmatmul.mubr.bf16.gmra.mxu0 %v1685_v13  ;;  %2253 = vmatmul.mubr.bf16.gmra.mxu1 %v1685_v13 }
 0x261   : > { %v1651_v2 = vmax.f32 %v1573_v50, 0.0  ;;  %v1575_v56 = vadd.f32 %v1574_v3, %v1382_v63  ;;  %3299 = vmatpush1.bf16.msra.mxu1 %v5537_v47 }
 0x262   : > { %v1578_v22 = vpop.f32.mrf.mxu1 }
 0x263   : > { %v1687_v53 = vpack.c.bf16 %v1651_v2, %v1649_v60  ;;  %v1652_v55 = vmax.f32 %v1575_v56, 0.0  ;;  %v1579_v24 = vadd.f32 %v1578_v22, %v7118_v31  ;;  %v5543_v56 = vld [vmem:[#allocation13 + $0xa0] ss:$16 sps:$4 sm:$0xff]   ;;  %v5545_v22 = vld [vmem:[#allocation13 + $0xa4] ss:$16 sps:$4 sm:$0xff]  }
 0x264   : > { %v1580_v5 = vpop.f32.mrf.mxu1  ;;  %3300 = vmatprep.subr.bf16.mxu1 %v5545_v22 }
 0x265   : > { %v1688_v28 = vpack.c.bf16 %v1652_v55, %v1650_v14  ;;  %v1581_v40 = vadd.f32 %v1580_v5, %v8178_v27  ;;  %v1653_v59 = vmax.f32 %v1579_v24, 0.0  ;;  %3301 = vmatpush1.bf16.msra.mxu1 %v5543_v56  ;;  %v5549_v27 = vld [vmem:[#allocation13 + $0x80] ss:$16 sps:$4 sm:$0xff]  }
 0x266   : > { %v1582_v61 = vpop.f32.mrf.mxu1 }
 0x267   : > { %v1583_v6 = vadd.f32 %v1582_v61, %v8179_v15  ;;  %1964 = vmatprep.mubr.bf16.mxu0 %v1688_v28  ;;  %2260 = vmatprep.mubr.bf16.mxu1 %v1688_v28  ;;  %v1654_v43 = vmax.f32 %v1581_v40, 0.0  ;;  %v5551_v28 = vld [vmem:[#allocation13 + $0x84] ss:$16 sps:$4 sm:$0xff]  }
 0x268   : > { %v1584_v48 = vpop.f32.mrf.mxu1  ;;  %1965 = vmatmul.mubr.bf16.gmra.mxu0 %v1687_v53  ;;  %2261 = vmatmul.mubr.bf16.gmra.mxu1 %v1687_v53 }
 0x269   : > { %v1655_v52 = vmax.f32 %v1583_v6, 0.0  ;;  %v1585_v37 = vadd.f32 %v1584_v48, %v1392_v25  ;;  %3302 = vmatprep.subr.bf16.mxu1 %v5551_v28  ;;  %v5569_v28 = vld [vmem:[#allocation13 + $0x24] ss:$16 sps:$4 sm:$0xff]  }
 0x26a   : > { %v1588_v49 = vpop.f32.mrf.mxu1  ;;  %3303 = vmatpush1.bf16.msra.mxu1 %v5549_v27 }
 0x26b   : > { %v1689_v31 = vpack.c.bf16 %v1655_v52, %v1653_v59  ;;  %v1656_v1 = vmax.f32 %v1585_v37, 0.0  ;;  %v1589_v17 = vadd.f32 %v1588_v49, %v8180_v0  ;;  %v5557_v52 = vld [vmem:[#allocation13 + $0x64] ss:$16 sps:$4 sm:$0xff]  }
 0x26c   : > { %v1590_v62 = vpop.f32.mrf.mxu1  ;;  %3304 = vmatprep.subr.bf16.mxu1 %v5557_v52 }
 0x26d   : > { %v1690_v51 = vpack.c.bf16 %v1656_v1, %v1654_v43  ;;  %v1591_v36 = vadd.f32 %v1590_v62, %v8182_v34  ;;  %v1657_v29 = vmax.f32 %v1589_v17, 0.0  ;;  %v5555_v62 = vld [vmem:[#allocation13 + $0x60] ss:$16 sps:$4 sm:$0xff]  }
 0x26e   : > { %v1592_v21 = vpop.f32.mrf.mxu1  ;;  %3305 = vmatpush1.bf16.msra.mxu1 %v5555_v62 }
 0x26f   : > { %v1593_v4 = vadd.f32 %v1592_v21, %v8183_v32  ;;  %1972 = vmatprep.mubr.bf16.mxu0 %v1690_v51  ;;  %2268 = vmatprep.mubr.bf16.mxu1 %v1690_v51  ;;  %v1658_v33 = vmax.f32 %v1591_v36, 0.0 }
 0x270   : > { %v1594_v42 = vpop.f32.mrf.mxu1  ;;  %1973 = vmatmul.mubr.bf16.gmra.mxu0 %v1689_v31  ;;  %2269 = vmatmul.mubr.bf16.gmra.mxu1 %v1689_v31 }
 0x271   : > { %v1659_v35 = vmax.f32 %v1593_v4, 0.0  ;;  %v1595_v41 = vadd.f32 %v1594_v42, %v1402_v26 }
 0x273   : > { %v1691_v10 = vpack.c.bf16 %v1659_v35, %v1657_v29  ;;  %v1660_v11 = vmax.f32 %v1595_v41, 0.0 }
 0x275   : > { %v1692_v7 = vpack.c.bf16 %v1660_v11, %v1658_v33  ;;  %v5563_v11 = vld [vmem:[#allocation13 + $0x44] ss:$16 sps:$4 sm:$0xff]  }
 0x276   : > { %3306 = vmatprep.subr.bf16.mxu1 %v5563_v11 }
 0x277   : > { %1980 = vmatprep.mubr.bf16.mxu0 %v1692_v7  ;;  %2276 = vmatprep.mubr.bf16.mxu1 %v1692_v7 }
 0x278   : > { %1981 = vmatmul.mubr.bf16.gmra.mxu0 %v1691_v10  ;;  %2277 = vmatmul.mubr.bf16.gmra.mxu1 %v1691_v10  ;;  %v5561_v10 = vld [vmem:[#allocation13 + $0x40] ss:$16 sps:$4 sm:$0xff]  }
 0x279   : > { %2633 = vmatprep.mubr.bf16.mxu0 %v6544_v38  ;;  %3307 = vmatpush1.bf16.msra.mxu1 %v5561_v10  ;;  %v5579_v10 = vld [vmem:[#allocation13 + $0x1e0] ss:$16 sps:$4 sm:$0xff]  }
 0x27a   : > { %3308 = vmatprep.subr.bf16.mxu1 %v5569_v28 }
 0x2c0   : > { %v5014_v44 = vpop.f32.mrf.mxu0  ;;  %v5126_v46 = vpop.f32.mrf.mxu1 }
 0x2c2   : > { %v5015_v13 = vpop.f32.mrf.mxu0  ;;  %v5127_v57 = vpop.f32.mrf.mxu1 }
 0x2c3   : > { %v5016_v39 = vadd.f32 %v5015_v13, %v5014_v44  ;;  %v5128_v20 = vadd.f32 %v5127_v57, %v5126_v46 }
 0x2c4   : > { %v5017_v19 = vpop.f32.mrf.mxu0  ;;  %v5129_v16 = vpop.f32.mrf.mxu1 }
 0x2c5   : > { %v7266_v18 = vadd.f32 %v5016_v39, %v7258_v45  ;;  %v2159_v63 = vadd.f32 %v5128_v20, %v7263_v58 }
 0x2c6   : > { %v5018_v8 = vpop.f32.mrf.mxu0  ;;  %v5130_v50 = vpop.f32.mrf.mxu1 }
 0x2c7   : > { %4450 = vst [vmem:[%s7270_s2] sm:$0xff] %v7266_v18  ;;  %v2317_v3 = vmul.f32 0.5, %v2159_v63  ;;  %4482 = vst [vmem:[%s7275_s25] sm:$0xff] %v2159_v63  ;;  %v5019_v60 = vadd.f32 %v5018_v8, %v5017_v19  ;;  %v5131_v2 = vadd.f32 %v5130_v50, %v5129_v16  ;;  %v2285_v63 = vld [vmem:[%s6862_s10] sm:$0xff] }
 0x2c8   : > { %v5020_v14 = vpop.f32.mrf.mxu0  ;;  %v5132_v53 = vpop.f32.mrf.mxu1 }
 0x2c9   : > { %v2349_v55 = vmul.f32 1.442695, %v2317_v3  ;;  %v7279_v5 = vadd.f32 %v5019_v60, %v7258_v45  ;;  %v2162_v24 = vadd.f32 %v5131_v2, %v7263_v58  ;;  %v2286_v3 = vld [vmem:[%s6862_s10 + $0x8] sm:$0xff] }
 0x2ca   : > { %v5021_v61 = vpop.f32.mrf.mxu0  ;;  %v5133_v25 = vpop.f32.mrf.mxu1 }
 0x2cb   : > { %4451 = vst [vmem:[%s7270_s2 + $0x8] sm:$0xff] %v7279_v5  ;;  %v2318_v40 = vmul.f32 0.5, %v2162_v24  ;;  %4483 = vst [vmem:[%s7275_s25 + $0x8] sm:$0xff] %v2162_v24  ;;  %v5022_v15 = vadd.f32 %v5021_v61, %v5020_v14  ;;  %v5134_v6 = vadd.f32 %v5133_v25, %v5132_v53  ;;  %5627 = vpow2.f32 %v2349_v55  ;;  %v5567_v24 = vld [vmem:[#allocation13 + $0x20] ss:$16 sps:$4 sm:$0xff]  }
 0x2cc   : > { %v5023_v48 = vpop.f32.mrf.mxu0  ;;  %v5135_v59 = vpop.f32.mrf.mxu1  ;;  %3309 = vmatpush1.bf16.msra.mxu1 %v5567_v24 }
 0x2cd   : > { %v2351_v37 = vmul.f32 1.442695, %v2318_v40  ;;  %v7286_v49 = vadd.f32 %v5022_v15, %v7258_v45  ;;  %v2167_v43 = vadd.f32 %v5134_v6, %v7263_v58 }
 0x2ce   : > { %v5024_v31 = vpop.f32.mrf.mxu0  ;;  %v5136_v1 = vpop.f32.mrf.mxu1 }
 0x2cf   : > { %5629 = vpow2.f32 %v2351_v37  ;;  %4452 = vst [vmem:[%s7270_s2 + $0x10] sm:$0xff] %v7286_v49  ;;  %v2319_v0 = vmul.f32 0.5, %v2167_v43  ;;  %4484 = vst [vmem:[%s7275_s25 + $0x10] sm:$0xff] %v2167_v43  ;;  %v5025_v17 = vadd.f32 %v5024_v31, %v5023_v48  ;;  %v5137_v51 = vadd.f32 %v5136_v1, %v5135_v59  ;;  %v5575_v48 = vld [vmem:[#allocation13 + $0x4] ss:$16 sps:$4 sm:$0xff]  }
 0x2d0   : > { %v5026_v21 = vpop.f32.mrf.mxu0  ;;  %v5138_v30 = vpop.f32.mrf.mxu1  ;;  %v5573_v43 = vld [vmem:[#allocation13] ss:$16 sps:$4 sm:$0xff]   ;;  %3310 = vmatprep.subr.bf16.mxu1 %v5575_v48 }
 0x2d1   : > { %v2353_v26 = vmul.f32 1.442695, %v2319_v0  ;;  %v7293_v34 = vadd.f32 %v5025_v17, %v7258_v45  ;;  %v2170_v36 = vadd.f32 %v5137_v51, %v7263_v58  ;;  %v5581_v17 = vld [vmem:[#allocation13 + $0x1e4] ss:$16 sps:$4 sm:$0xff]   ;;  %3311 = vmatpush1.bf16.msra.mxu1 %v5573_v43 }
 0x2d2   : > { %v5027_v32 = vpop.f32.mrf.mxu0  ;;  %v5139_v4 = vpop.f32.mrf.mxu1  ;;  %3312 = vmatprep.subr.bf16.mxu1 %v5581_v17 }
 0x2d3   : > { %4453 = vst [vmem:[%s7270_s2 + $0x18] sm:$0xff] %v7293_v34  ;;  %v2320_v42 = vmul.f32 0.5, %v2170_v36  ;;  %4485 = vst [vmem:[%s7275_s25 + $0x18] sm:$0xff] %v2170_v36  ;;  %v5028_v29 = vadd.f32 %v5027_v32, %v5026_v21  ;;  %v5140_v35 = vadd.f32 %v5139_v4, %v5138_v30  ;;  %5631 = vpow2.f32 %v2353_v26  ;;  %v2287_v36 = vld [vmem:[%s6862_s10 + $0x10] sm:$0xff]  ;;  %v5534_v32 = vld [vmem:[#allocation13 + $0xe8] ss:$16 sps:$4 sm:$0xff]  }
 0x2d4   : > { %v5029_v41 = vpop.f32.mrf.mxu0  ;;  %v5141_v33 = vpop.f32.mrf.mxu1 }
 0x2d5   : > { %v2355_v7 = vmul.f32 1.442695, %v2320_v42  ;;  %v7300_v9 = vadd.f32 %v5028_v29, %v7258_v45  ;;  %v2175_v12 = vadd.f32 %v5140_v35, %v7263_v58  ;;  %v2288_v35 = vld [vmem:[%s6862_s10 + $0x18] sm:$0xff]  ;;  %3313 = vmatpush2.bf16.msra.mxu1 %v5579_v10 }
 0x2d6   : > { %v5030_v54 = vpop.f32.mrf.mxu0  ;;  %v5142_v47 = vpop.f32.mrf.mxu1 }
 0x2d7   : > { %5633 = vpow2.f32 %v2355_v7  ;;  %4454 = vst [vmem:[%s7270_s2 + $0x20] sm:$0xff] %v7300_v9  ;;  %v2321_v23 = vmul.f32 0.5, %v2175_v12  ;;  %4486 = vst [vmem:[%s7275_s25 + $0x20] sm:$0xff] %v2175_v12  ;;  %v5031_v44 = vadd.f32 %v5030_v54, %v5029_v41  ;;  %v5143_v46 = vadd.f32 %v5142_v47, %v5141_v33  ;;  %v5542_v41 = vld [vmem:[#allocation13 + $0xcc] ss:$16 sps:$4 sm:$0xff]  }
 0x2d8   : > { %v5032_v13 = vpop.f32.mrf.mxu0  ;;  %v5144_v57 = vpop.f32.mrf.mxu1  ;;  %v5587_v47 = vld [vmem:[#allocation13 + $0x1c4] ss:$16 sps:$4 sm:$0xff]  }
 0x2d9   : > { %v5628_v39 = vpop.eup %5627  ;;  %v2357_v20 = vmul.f32 1.442695, %v2321_v23  ;;  %v7307_v19 = vadd.f32 %v5031_v44, %v7258_v45  ;;  %v2178_v16 = vadd.f32 %v5143_v46, %v7263_v58  ;;  %3314 = vmatprep.subr.bf16.mxu1 %v5587_v47 }
 0x2da   : > { %v5033_v8 = vpop.f32.mrf.mxu0  ;;  %v5145_v50 = vpop.f32.mrf.mxu1  ;;  %v2413_v55 = vmul.f32 %v5628_v39, %v2285_v63 }
 0x2db   : > { %4455 = vst [vmem:[%s7270_s2 + $0x28] sm:$0xff] %v7307_v19  ;;  %v2322_v60 = vmul.f32 0.5, %v2178_v16  ;;  %4487 = vst [vmem:[%s7275_s25 + $0x28] sm:$0xff] %v2178_v16  ;;  %v5034_v2 = vadd.f32 %v5033_v8, %v5032_v13  ;;  %v5146_v56 = vadd.f32 %v5145_v50, %v5144_v57  ;;  %5635 = vpow2.f32 %v2357_v20  ;;  %v5540_v57 = vld [vmem:[#allocation13 + $0xc8] ss:$16 sps:$4 sm:$0xff]  }
 0x2dc   : > { %v5630_v22 = vpop.eup %5629  ;;  %v5035_v14 = vpop.f32.mrf.mxu0  ;;  %v2445_v62 = vadd.f32 %v2413_v55, %v7266_v18  ;;  %v5548_v16 = vld [vmem:[#allocation13 + $0xac] ss:$16 sps:$4 sm:$0xff]  }
 0x2dd   : > { %v5147_v53 = vpop.f32.mrf.mxu1  ;;  %v2359_v61 = vmul.f32 1.442695, %v2322_v60  ;;  %v7316_v25 = vadd.f32 %v5034_v2, %v7258_v45  ;;  %v2183_v27 = vadd.f32 %v5146_v56, %v7263_v58  ;;  %v2414_v40 = vmul.f32 %v5630_v22, %v2286_v3  ;;  %v5585_v3 = vld [vmem:[#allocation13 + $0x1c0] ss:$16 sps:$4 sm:$0xff]  }
 0x2de   : > { %v5036_v15 = vpop.f32.mrf.mxu0  ;;  %3315 = vmatpush2.bf16.msra.mxu1 %v5585_v3 }
 0x2df   : > { %v5148_v6 = vpop.f32.mrf.mxu1  ;;  %5637 = vpow2.f32 %v2359_v61  ;;  %4456 = vst [vmem:[%s7270_s2 + $0x30] sm:$0xff] %v7316_v25  ;;  %v2323_v59 = vmul.f32 0.5, %v2183_v27  ;;  %4488 = vst [vmem:[%s7275_s25 + $0x30] sm:$0xff] %v2183_v27  ;;  %v5037_v52 = vadd.f32 %v5036_v15, %v5035_v14  ;;  %v2446_v0 = vadd.f32 %v2414_v40, %v7279_v5  ;;  %v5593_v14 = vld [vmem:[#allocation13 + $0x1a4] ss:$16 sps:$4 sm:$0xff]  }
 0x2e0   : > { %v5149_v37 = vadd.f32 %v5148_v6, %v5147_v53  ;;  %v5038_v31 = vpop.f32.mrf.mxu0  ;;  %v5632_v51 = vpop.eup %5631  ;;  %v2289_v61 = vld [vmem:[%s6862_s10 + $0x20] sm:$0xff]  ;;  %v5546_v27 = vld [vmem:[#allocation13 + $0xa8] ss:$16 sps:$4 sm:$0xff]   ;;  %3316 = vmatprep.subr.bf16.mxu1 %v5593_v14 }
 0x2e1   : > { %v5150_v1 = vpop.f32.mrf.mxu1  ;;  %v2361_v21 = vmul.f32 1.442695, %v2323_v59  ;;  %v7325_v30 = vadd.f32 %v5037_v52, %v7258_v45  ;;  %v2477_v29 = vpack.c.bf16 %v2446_v0, %v2445_v62  ;;  %v2415_v54 = vmul.f32 %v5632_v51, %v2287_v36  ;;  %v5599_v0 = vld [vmem:[#allocation13 + $0x184] ss:$16 sps:$4 sm:$0xff]   ;;  %v5552_v36 = vld [vmem:[#allocation13 + $0x88] ss:$16 sps:$4 sm:$0xff]  }
 0x2e2   : > { %v2186_v26 = vadd.f32 %v5149_v37, %v7263_v58  ;;  %v5039_v4 = vpop.f32.mrf.mxu0  ;;  %v5591_v37 = vld [vmem:[#allocation13 + $0x1a0] ss:$16 sps:$4 sm:$0xff]  }
 0x2e3   : > { %v5151_v42 = vpop.f32.mrf.mxu1  ;;  %4457 = vst [vmem:[%s7270_s2 + $0x38] sm:$0xff] %v7325_v30  ;;  %v5040_v5 = vadd.f32 %v5039_v4, %v5038_v31  ;;  %5639 = vpow2.f32 %v2361_v21  ;;  %2634 = vmatmul.mubr.bf16.vlgmr.msra.gmra.mxu0 %v2477_v29  ;;  %v2447_v56 = vadd.f32 %v2415_v54, %v7286_v49  ;;  %v2290_v49 = vld [vmem:[%s6862_s10 + $0x28] sm:$0xff]  ;;  %3317 = vmatpush2.bf16.msra.mxu1 %v5591_v37 }
 0x2e4   : > { %v2324_v18 = vmul.f32 0.5, %v2186_v26  ;;  %4489 = vst [vmem:[%s7275_s25 + $0x38] sm:$0xff] %v2186_v26  ;;  %v5152_v33 = vadd.f32 %v5151_v42, %v5150_v1  ;;  %v5634_v11 = vpop.eup %5633  ;;  %v5041_v7 = vpop.f32.mrf.mxu0  ;;  %2643 = vmatprep.mubr.bf16.mxu0 %v6544_v38  ;;  %3490 = vmatpush1.bf16.msra.mxu0 %v5534_v32  ;;  %v5560_v42 = vld [vmem:[#allocation13 + $0x6c] ss:$16 sps:$4 sm:$0xff]  }
 0x2e5   : > { %v5153_v12 = vpop.f32.mrf.mxu1  ;;  %v7334_v44 = vadd.f32 %v5040_v5, %v7258_v45  ;;  %v2416_v13 = vmul.f32 %v5634_v11, %v2288_v35  ;;  %3491 = vmatprep.subr.bf16.mxu0 %v5542_v41  ;;  %3318 = vmatprep.subr.bf16.mxu1 %v5599_v0 }
 0x2e6   : > { %v2363_v23 = vmul.f32 1.442695, %v2324_v18  ;;  %v2191_v46 = vadd.f32 %v5152_v33, %v7263_v58  ;;  %v5042_v39 = vpop.f32.mrf.mxu0  ;;  %v5597_v18 = vld [vmem:[#allocation13 + $0x180] ss:$16 sps:$4 sm:$0xff]  }
 0x2e7   : > { %v5154_v20 = vpop.f32.mrf.mxu1  ;;  %4458 = vst [vmem:[%s7270_s2 + $0x40] sm:$0xff] %v7334_v44  ;;  %v5043_v8 = vadd.f32 %v5042_v39, %v5041_v7  ;;  %v2448_v22 = vadd.f32 %v2416_v13, %v7293_v34  ;;  %v5554_v34 = vld [vmem:[#allocation13 + $0x8c] ss:$16 sps:$4 sm:$0xff]   ;;  %v5605_v7 = vld [vmem:[#allocation13 + $0x164] ss:$16 sps:$4 sm:$0xff]   ;;  %3319 = vmatpush2.bf16.msra.mxu1 %v5597_v18 }
 0x2e8   : > { %5641 = vpow2.f32 %v2363_v23  ;;  %v2325_v63 = vmul.f32 0.5, %v2191_v46  ;;  %4490 = vst [vmem:[%s7275_s25 + $0x40] sm:$0xff] %v2191_v46  ;;  %v5155_v50 = vadd.f32 %v5154_v20, %v5153_v12  ;;  %v5044_v60 = vpop.f32.mrf.mxu0  ;;  %v5636_v53 = vpop.eup %5635  ;;  %3492 = vmatpush1.bf16.msra.mxu0 %v5540_v57  ;;  %v2291_v46 = vld [vmem:[%s6862_s10 + $0x30] sm:$0xff]  ;;  %v5558_v13 = vld [vmem:[#allocation13 + $0x68] ss:$16 sps:$4 sm:$0xff]   ;;  %3320 = vmatprep.subr.bf16.mxu1 %v5605_v7 }
 0x2e9   : > { %v5156_v2 = vpop.f32.mrf.mxu1  ;;  %v7344_v24 = vadd.f32 %v5043_v8, %v7258_v45  ;;  %v2478_v6 = vpack.c.bf16 %v2448_v22, %v2447_v56  ;;  %3493 = vmatprep.subr.bf16.mxu0 %v5548_v16  ;;  %v2417_v62 = vmul.f32 %v5636_v53, %v2289_v61  ;;  %v5611_v22 = vld [vmem:[#allocation13 + $0x144] ss:$16 sps:$4 sm:$0xff]   ;;  %v5564_v61 = vld [vmem:[#allocation13 + $0x48] ss:$16 sps:$4 sm:$0xff]  }
 0x2ea   : > { %v2365_v55 = vmul.f32 1.442695, %v2325_v63  ;;  %v2194_v28 = vadd.f32 %v5155_v50, %v7263_v58  ;;  %v5045_v40 = vpop.f32.mrf.mxu0  ;;  %v5603_v50 = vld [vmem:[#allocation13 + $0x160] ss:$16 sps:$4 sm:$0xff]  }
 0x2eb   : > { %v5157_v15 = vpop.f32.mrf.mxu1  ;;  %4459 = vst [vmem:[%s7270_s2 + $0x48] sm:$0xff] %v7344_v24  ;;  %v5046_v59 = vadd.f32 %v5045_v40, %v5044_v60  ;;  %2644 = vmatmul.mubr.bf16.gmra.mxu0 %v2478_v6  ;;  %v2449_v10 = vadd.f32 %v2417_v62, %v7300_v9  ;;  %v2292_v9 = vld [vmem:[%s6862_s10 + $0x38] sm:$0xff]  ;;  %3321 = vmatpush2.bf16.msra.mxu1 %v5603_v50 }
 0x2ec   : > { %v2326_v48 = vmul.f32 0.5, %v2194_v28  ;;  %4491 = vst [vmem:[%s7275_s25 + $0x48] sm:$0xff] %v2194_v28  ;;  %v5158_v52 = vadd.f32 %v5157_v15, %v5156_v2  ;;  %v5638_v43 = vpop.eup %5637  ;;  %5643 = vpow2.f32 %v2365_v55  ;;  %v5047_v31 = vpop.f32.mrf.mxu0  ;;  %2653 = vmatprep.mubr.bf16.mxu0 %v6544_v38  ;;  %3494 = vmatpush1.bf16.msra.mxu0 %v5546_v27  ;;  %v5572_v15 = vld [vmem:[#allocation13 + $0x2c] ss:$16 sps:$4 sm:$0xff]  }
 0x2ed   : > { %v5159_v1 = vpop.f32.mrf.mxu1  ;;  %v7353_v51 = vadd.f32 %v5046_v59, %v7258_v45  ;;  %v2418_v26 = vmul.f32 %v5638_v43, %v2290_v49  ;;  %3495 = vmatprep.subr.bf16.mxu0 %v5554_v34  ;;  %3322 = vmatprep.subr.bf16.mxu1 %v5611_v22  ;;  %v5582_v22 = vld [vmem:[#allocation13 + $0x1e8] ss:$16 sps:$4 sm:$0xff]  }
 0x2ee   : > { %v2367_v17 = vmul.f32 1.442695, %v2326_v48  ;;  %v2199_v21 = vadd.f32 %v5158_v52, %v7263_v58  ;;  %v5048_v32 = vpop.f32.mrf.mxu0  ;;  %v5609_v48 = vld [vmem:[#allocation13 + $0x140] ss:$16 sps:$4 sm:$0xff]  }
 0x2ef   : > { %v5160_v4 = vpop.f32.mrf.mxu1  ;;  %4460 = vst [vmem:[%s7270_s2 + $0x50] sm:$0xff] %v7353_v51  ;;  %v5049_v35 = vadd.f32 %v5048_v32, %v5047_v31  ;;  %v2450_v11 = vadd.f32 %v2418_v26, %v7307_v19  ;;  %v5566_v19 = vld [vmem:[#allocation13 + $0x4c] ss:$16 sps:$4 sm:$0xff]   ;;  %v5617_v31 = vld [vmem:[#allocation13 + $0x124] ss:$16 sps:$4 sm:$0xff]   ;;  %3323 = vmatpush2.bf16.msra.mxu1 %v5609_v48 }
 0x2f0   : > { %5645 = vpow2.f32 %v2367_v17  ;;  %v2327_v29 = vmul.f32 0.5, %v2199_v21  ;;  %4492 = vst [vmem:[%s7275_s25 + $0x50] sm:$0xff] %v2199_v21  ;;  %v5161_v41 = vadd.f32 %v5160_v4, %v5159_v1  ;;  %v5050_v5 = vpop.f32.mrf.mxu0  ;;  %v5640_v12 = vpop.eup %5639  ;;  %3496 = vmatpush1.bf16.msra.mxu0 %v5552_v36  ;;  %v2293_v21 = vld [vmem:[%s6862_s10 + $0x40] sm:$0xff]  ;;  %v5570_v26 = vld [vmem:[#allocation13 + $0x28] ss:$16 sps:$4 sm:$0xff]   ;;  %3324 = vmatprep.subr.bf16.mxu1 %v5617_v31 }
 0x2f1   : > { %v5162_v33 = vpop.f32.mrf.mxu1  ;;  %v7363_v47 = vadd.f32 %v5049_v35, %v7258_v45  ;;  %v2479_v20 = vpack.c.bf16 %v2450_v11, %v2449_v10  ;;  %3497 = vmatprep.subr.bf16.mxu0 %v5560_v42  ;;  %v2419_v56 = vmul.f32 %v5640_v12, %v2291_v46 }
 0x2f2   : > { %v2369_v54 = vmul.f32 1.442695, %v2327_v29  ;;  %v2202_v23 = vadd.f32 %v5161_v41, %v7263_v58  ;;  %v5051_v57 = vpop.f32.mrf.mxu0  ;;  %v5615_v41 = vld [vmem:[#allocation13 + $0x120] ss:$16 sps:$4 sm:$0xff]  }
 0x2f3   : > { %v5163_v39 = vpop.f32.mrf.mxu1  ;;  %4461 = vst [vmem:[%s7270_s2 + $0x58] sm:$0xff] %v7363_v47  ;;  %v5052_v63 = vadd.f32 %v5051_v57, %v5050_v5  ;;  %2654 = vmatmul.mubr.bf16.gmra.mxu0 %v2479_v20  ;;  %v2451_v37 = vadd.f32 %v2419_v56, %v7316_v25  ;;  %v2294_v25 = vld [vmem:[%s6862_s10 + $0x48] sm:$0xff]  ;;  %3325 = vmatpush2.bf16.msra.mxu1 %v5615_v41  ;;  %v2295_v56 = vld [vmem:[%s6862_s10 + $0x50] sm:$0xff]  ;;  %v2297_v41 = vld [vmem:[%s6862_s10 + $0x60] sm:$0xff] }
 0x2f4   : > { %v2328_v16 = vmul.f32 0.5, %v2202_v23  ;;  %4493 = vst [vmem:[%s7275_s25 + $0x58] sm:$0xff] %v2202_v23  ;;  %v5164_v8 = vadd.f32 %v5163_v39, %v5162_v33  ;;  %5647 = vpow2.f32 %v2369_v54  ;;  %v5053_v60 = vpop.f32.mrf.mxu0  ;;  %2663 = vmatprep.mubr.bf16.mxu0 %v6544_v38  ;;  %3498 = vmatpush1.bf16.msra.mxu0 %v5558_v13  ;;  %v5576_v23 = vld [vmem:[#allocation13 + $0x8] ss:$16 sps:$4 sm:$0xff]   ;;  %v5584_v57 = vld [vmem:[#allocation13 + $0x1ec] ss:$16 sps:$4 sm:$0xff]  }
 0x2f5   : > { %v5642_v3 = vpop.eup %5641  ;;  %v5165_v2 = vpop.f32.mrf.mxu1  ;;  %v7372_v53 = vadd.f32 %v5052_v63, %v7258_v45  ;;  %3499 = vmatprep.subr.bf16.mxu0 %v5566_v19 }
 0x2f6   : > { %v2371_v14 = vmul.f32 1.442695, %v2328_v16  ;;  %v2207_v55 = vadd.f32 %v5164_v8, %v7263_v58  ;;  %v2420_v28 = vmul.f32 %v5642_v3, %v2292_v9  ;;  %v5054_v27 = vpop.f32.mrf.mxu0 }
 0x2f7   : > { %v5166_v40 = vpop.f32.mrf.mxu1  ;;  %4462 = vst [vmem:[%s7270_s2 + $0x60] sm:$0xff] %v7372_v53  ;;  %v5055_v49 = vadd.f32 %v5054_v27, %v5053_v60  ;;  %v5590_v27 = vld [vmem:[#allocation13 + $0x1cc] ss:$16 sps:$4 sm:$0xff]  }
 0x2f8   : > { %5649 = vpow2.f32 %v2371_v14  ;;  %v2329_v6 = vmul.f32 0.5, %v2207_v55  ;;  %4494 = vst [vmem:[%s7275_s25 + $0x60] sm:$0xff] %v2207_v55  ;;  %v5167_v34 = vadd.f32 %v5166_v40, %v5165_v2  ;;  %v5056_v59 = vpop.f32.mrf.mxu0  ;;  %v2452_v43 = vadd.f32 %v2420_v28, %v7325_v30  ;;  %3500 = vmatpush1.bf16.msra.mxu0 %v5564_v61  ;;  %v5578_v30 = vld [vmem:[#allocation13 + $0xc] ss:$16 sps:$4 sm:$0xff]  }
 0x2f9   : > { %v5168_v52 = vpop.f32.mrf.mxu1  ;;  %v5644_v1 = vpop.eup %5643  ;;  %v7382_v0 = vadd.f32 %v5055_v49, %v7258_v45  ;;  %3501 = vmatprep.subr.bf16.mxu0 %v5572_v15  ;;  %v2296_v61 = vld [vmem:[%s6862_s10 + $0x58] sm:$0xff] }
 0x2fa   : > { %v2373_v62 = vmul.f32 1.442695, %v2329_v6  ;;  %v2210_v17 = vadd.f32 %v5167_v34, %v7263_v58  ;;  %v5057_v36 = vpop.f32.mrf.mxu0  ;;  %v2480_v4 = vpack.c.bf16 %v2452_v43, %v2451_v37  ;;  %v2421_v10 = vmul.f32 %v5644_v1, %v2293_v21  ;;  %v5588_v43 = vld [vmem:[#allocation13 + $0x1c8] ss:$16 sps:$4 sm:$0xff]  }
 0x2fb   : > { %v5169_v32 = vpop.f32.mrf.mxu1  ;;  %4463 = vst [vmem:[%s7270_s2 + $0x68] sm:$0xff] %v7382_v0  ;;  %v5058_v29 = vadd.f32 %v5057_v36, %v5056_v59 }
 0x2fc   : > { %v2330_v42 = vmul.f32 0.5, %v2210_v17  ;;  %4495 = vst [vmem:[%s7275_s25 + $0x68] sm:$0xff] %v2210_v17  ;;  %v5170_v35 = vadd.f32 %v5169_v32, %v5168_v52  ;;  %5651 = vpow2.f32 %v2373_v62  ;;  %2664 = vmatmul.mubr.bf16.gmra.mxu0 %v2480_v4  ;;  %v5059_v5 = vpop.f32.mrf.mxu0  ;;  %v2453_v63 = vadd.f32 %v2421_v10, %v7334_v44  ;;  %v5596_v62 = vld [vmem:[#allocation13 + $0x1ac] ss:$16 sps:$4 sm:$0xff]  }
 0x2fd   : > { %v5646_v18 = vpop.eup %5645  ;;  %v5171_v33 = vpop.f32.mrf.mxu1  ;;  %v7391_v7 = vadd.f32 %v5058_v29, %v7258_v45  ;;  %2673 = vmatprep.mubr.bf16.mxu0 %v6544_v38  ;;  %3502 = vmatpush1.bf16.msra.mxu0 %v5570_v26 }
 0x2fe   : > { %v2375_v11 = vmul.f32 1.442695, %v2330_v42  ;;  %v2215_v12 = vadd.f32 %v5170_v35, %v7263_v58  ;;  %v2422_v54 = vmul.f32 %v5646_v18, %v2294_v25  ;;  %v5060_v46 = vpop.f32.mrf.mxu0  ;;  %3503 = vmatprep.subr.bf16.mxu0 %v5578_v30  ;;  %v5594_v18 = vld [vmem:[#allocation13 + $0x1a8] ss:$16 sps:$4 sm:$0xff]  }
 0x2ff   : > { %v5172_v13 = vpop.f32.mrf.mxu1  ;;  %4464 = vst [vmem:[%s7270_s2 + $0x70] sm:$0xff] %v7391_v7  ;;  %v5061_v20 = vadd.f32 %v5060_v46, %v5059_v5 }
 0x300   : > { %5653 = vpow2.f32 %v2375_v11  ;;  %v2331_v39 = vmul.f32 0.5, %v2215_v12  ;;  %4496 = vst [vmem:[%s7275_s25 + $0x70] sm:$0xff] %v2215_v12  ;;  %v5173_v9 = vadd.f32 %v5172_v13, %v5171_v33  ;;  %v5062_v19 = vpop.f32.mrf.mxu0  ;;  %v2454_v8 = vadd.f32 %v2422_v54, %v7344_v24  ;;  %v2298_v11 = vld [vmem:[%s6862_s10 + $0x68] sm:$0xff] }
 0x301   : > { %v5174_v16 = vpop.f32.mrf.mxu1  ;;  %v5648_v50 = vpop.eup %5647  ;;  %v7401_v60 = vadd.f32 %v5061_v20, %v7258_v45  ;;  %3504 = vmatpush1.bf16.msra.mxu0 %v5576_v23  ;;  %v5602_v12 = vld [vmem:[#allocation13 + $0x18c] ss:$16 sps:$4 sm:$0xff]  }
 0x302   : > { %v2377_v3 = vmul.f32 1.442695, %v2331_v39  ;;  %v2218_v2 = vadd.f32 %v5173_v9, %v7263_v58  ;;  %v5063_v14 = vpop.f32.mrf.mxu0  ;;  %v2481_v28 = vpack.c.bf16 %v2454_v8, %v2453_v63  ;;  %3505 = vmatprep.subr.bf16.mxu0 %v5584_v57  ;;  %v2423_v34 = vmul.f32 %v5648_v50, %v2295_v56  ;;  %v5608_v50 = vld [vmem:[#allocation13 + $0x16c] ss:$16 sps:$4 sm:$0xff]  }
 0x303   : > { %v5175_v55 = vpop.f32.mrf.mxu1  ;;  %4465 = vst [vmem:[%s7270_s2 + $0x78] sm:$0xff] %v7401_v60  ;;  %v5064_v24 = vadd.f32 %v5063_v14, %v5062_v19 }
 0x304   : > { %v2332_v44 = vmul.f32 0.5, %v2218_v2  ;;  %4497 = vst [vmem:[%s7275_s25 + $0x78] sm:$0xff] %v2218_v2  ;;  %v5176_v40 = vadd.f32 %v5175_v55, %v5174_v16  ;;  %5655 = vpow2.f32 %v2377_v3  ;;  %2674 = vmatmul.mubr.bf16.gmra.mxu0 %v2481_v28  ;;  %v5065_v6 = vpop.f32.mrf.mxu0  ;;  %v2455_v4 = vadd.f32 %v2423_v34, %v7353_v51  ;;  %v5600_v16 = vld [vmem:[#allocation13 + $0x188] ss:$16 sps:$4 sm:$0xff]  }
 0x305   : > { %v5650_v15 = vpop.eup %5649  ;;  %v5177_v49 = vpop.f32.mrf.mxu1  ;;  %v7410_v59 = vadd.f32 %v5064_v24, %v7258_v45  ;;  %2683 = vmatprep.mubr.bf16.mxu0 %v6544_v38  ;;  %3506 = vmatpush2.bf16.msra.mxu0 %v5582_v22 }
 0x306   : > { %v2379_v48 = vmul.f32 1.442695, %v2332_v44  ;;  %v2223_v52 = vadd.f32 %v5176_v40, %v7263_v58  ;;  %v2424_v37 = vmul.f32 %v5650_v15, %v2296_v61  ;;  %v5066_v31 = vpop.f32.mrf.mxu0  ;;  %3507 = vmatprep.subr.bf16.mxu0 %v5590_v27  ;;  %v2299_v40 = vld [vmem:[%s6862_s10 + $0x70] sm:$0xff]  ;;  %v5606_v15 = vld [vmem:[#allocation13 + $0x168] ss:$16 sps:$4 sm:$0xff]  }
 0x307   : > { %v5178_v1 = vpop.f32.mrf.mxu1  ;;  %4466 = vst [vmem:[%s7270_s2 + $0x80] sm:$0xff] %v7410_v59  ;;  %v5067_v21 = vadd.f32 %v5066_v31, %v5065_v6 }
 0x308   : > { %5657 = vpow2.f32 %v2379_v48  ;;  %v2333_v17 = vmul.f32 0.5, %v2223_v52  ;;  %4498 = vst [vmem:[%s7275_s25 + $0x80] sm:$0xff] %v2223_v52  ;;  %v5179_v26 = vadd.f32 %v5178_v1, %v5177_v49  ;;  %v5068_v36 = vpop.f32.mrf.mxu0  ;;  %v2456_v25 = vadd.f32 %v2424_v37, %v7363_v47  ;;  %v2300_v48 = vld [vmem:[%s6862_s10 + $0x78] sm:$0xff] }
 0x309   : > { %v5180_v32 = vpop.f32.mrf.mxu1  ;;  %v5652_v30 = vpop.eup %5651  ;;  %v7420_v29 = vadd.f32 %v5067_v21, %v7258_v45  ;;  %3508 = vmatpush2.bf16.msra.mxu0 %v5588_v43  ;;  %v5614_v52 = vld [vmem:[#allocation13 + $0x14c] ss:$16 sps:$4 sm:$0xff]  }
 0x30a   : > { %v2381_v42 = vmul.f32 1.442695, %v2333_v17  ;;  %v2226_v35 = vadd.f32 %v5179_v26, %v7263_v58  ;;  %v5069_v5 = vpop.f32.mrf.mxu0  ;;  %v2482_v10 = vpack.c.bf16 %v2456_v25, %v2455_v4  ;;  %3509 = vmatprep.subr.bf16.mxu0 %v5596_v62  ;;  %v2425_v57 = vmul.f32 %v5652_v30, %v2297_v41  ;;  %v5620_v30 = vld [vmem:[#allocation13 + $0x12c] ss:$16 sps:$4 sm:$0xff]  }
 0x30b   : > { %v5181_v33 = vpop.f32.mrf.mxu1  ;;  %4467 = vst [vmem:[%s7270_s2 + $0x88] sm:$0xff] %v7420_v29  ;;  %v5070_v47 = vadd.f32 %v5069_v5, %v5068_v36 }
 0x30c   : > { %v2334_v51 = vmul.f32 0.5, %v2226_v35  ;;  %4499 = vst [vmem:[%s7275_s25 + $0x88] sm:$0xff] %v2226_v35  ;;  %v5182_v54 = vadd.f32 %v5181_v33, %v5180_v32  ;;  %5659 = vpow2.f32 %v2381_v42  ;;  %2684 = vmatmul.mubr.bf16.gmra.mxu0 %v2482_v10  ;;  %v5071_v46 = vpop.f32.mrf.mxu0  ;;  %v2457_v55 = vadd.f32 %v2425_v57, %v7372_v53  ;;  %v5612_v32 = vld [vmem:[#allocation13 + $0x148] ss:$16 sps:$4 sm:$0xff]  }
 0x30d   : > { %v5654_v23 = vpop.eup %5653  ;;  %v5183_v13 = vpop.f32.mrf.mxu1  ;;  %v7429_v20 = vadd.f32 %v5070_v47, %v7258_v45  ;;  %2693 = vmatprep.mubr.bf16.mxu0 %v6544_v38  ;;  %3510 = vmatpush2.bf16.msra.mxu0 %v5594_v18 }
 0x30e   : > { %v2383_v39 = vmul.f32 1.442695, %v2334_v51  ;;  %v2231_v9 = vadd.f32 %v5182_v54, %v7263_v58  ;;  %v2426_v19 = vmul.f32 %v5654_v23, %v2298_v11  ;;  %v5072_v63 = vpop.f32.mrf.mxu0  ;;  %3511 = vmatprep.subr.bf16.mxu0 %v5602_v12  ;;  %v2301_v54 = vld [vmem:[%s6862_s10 + $0x80] sm:$0xff]  ;;  %v5618_v23 = vld [vmem:[#allocation13 + $0x128] ss:$16 sps:$4 sm:$0xff]  }
 0x30f   : > { %v5184_v8 = vpop.f32.mrf.mxu1  ;;  %4468 = vst [vmem:[%s7270_s2 + $0x90] sm:$0xff] %v7429_v20  ;;  %v5073_v2 = vadd.f32 %v5072_v63, %v5071_v46 }
 0x310   : > { %5661 = vpow2.f32 %v2383_v39  ;;  %v2335_v3 = vmul.f32 0.5, %v2231_v9  ;;  %4500 = vst [vmem:[%s7275_s25 + $0x90] sm:$0xff] %v2231_v9  ;;  %v5185_v56 = vadd.f32 %v5184_v8, %v5183_v13  ;;  %v5074_v22 = vpop.f32.mrf.mxu0  ;;  %v2458_v28 = vadd.f32 %v2426_v19, %v7382_v0  ;;  %v2302_v39 = vld [vmem:[%s6862_s10 + $0x88] sm:$0xff] }
 0x311   : > { %v5186_v14 = vpop.f32.mrf.mxu1  ;;  %v5656_v61 = vpop.eup %5655  ;;  %v7439_v44 = vadd.f32 %v5073_v2, %v7258_v45  ;;  %3512 = vmatpush2.bf16.msra.mxu0 %v5600_v16 }
 0x312   : > { %v2385_v27 = vmul.f32 1.442695, %v2335_v3  ;;  %v2234_v24 = vadd.f32 %v5185_v56, %v7263_v58  ;;  %v5075_v6 = vpop.f32.mrf.mxu0  ;;  %v2483_v34 = vpack.c.bf16 %v2458_v28, %v2457_v55  ;;  %3513 = vmatprep.subr.bf16.mxu0 %v5608_v50  ;;  %v2427_v62 = vmul.f32 %v5656_v61, %v2299_v40 }
 0x313   : > { %v5187_v49 = vpop.f32.mrf.mxu1  ;;  %4469 = vst [vmem:[%s7270_s2 + $0x98] sm:$0xff] %v7439_v44  ;;  %v5076_v0 = vadd.f32 %v5075_v6, %v5074_v22  ;;  %v7479_v6 = vld [vmem:[%s8102_s5] ss:$0 sm:$0xff] }
 0x314   : > { %v2336_v53 = vmul.f32 0.5, %v2234_v24  ;;  %4501 = vst [vmem:[%s7275_s25 + $0x98] sm:$0xff] %v2234_v24  ;;  %v5188_v37 = vadd.f32 %v5187_v49, %v5186_v14  ;;  %5663 = vpow2.f32 %v2385_v27  ;;  %2694 = vmatmul.mubr.bf16.gmra.mxu0 %v2483_v34  ;;  %v5077_v31 = vpop.f32.mrf.mxu0  ;;  %v2459_v33 = vadd.f32 %v2427_v62, %v7391_v7  ;;  %v7487_v34 = vld [vmem:[%s8104_s7] ss:$0 sm:$0xff] }
 0x315   : > { %v5658_v43 = vpop.eup %5657  ;;  %v5189_v1 = vpop.f32.mrf.mxu1  ;;  %v7448_v21 = vadd.f32 %v5076_v0, %v7258_v45  ;;  %2703 = vmatprep.mubr.bf16.mxu0 %v6544_v38  ;;  %3514 = vmatpush2.bf16.msra.mxu0 %v5606_v15  ;;  %v2304_v0 = vld [vmem:[%s6862_s10 + $0x98] sm:$0xff] }
 0x316   : > { %v2387_v17 = vmul.f32 1.442695, %v2336_v53  ;;  %v2239_v26 = vadd.f32 %v5188_v37, %v7263_v58  ;;  %v2428_v36 = vmul.f32 %v5658_v43, %v2300_v48  ;;  %v5078_v4 = vpop.f32.mrf.mxu0  ;;  %3515 = vmatprep.subr.bf16.mxu0 %v5614_v52 }
 0x317   : > { %v5190_v25 = vpop.f32.mrf.mxu1  ;;  %4470 = vst [vmem:[%s7270_s2 + $0xa0] sm:$0xff] %v7448_v21  ;;  %v5079_v35 = vadd.f32 %v5078_v4, %v5077_v31 }
 0x318   : > { %5665 = vpow2.f32 %v2387_v17  ;;  %v2337_v42 = vmul.f32 0.5, %v2239_v26  ;;  %4502 = vst [vmem:[%s7275_s25 + $0xa0] sm:$0xff] %v2239_v26  ;;  %v5191_v41 = vadd.f32 %v5190_v25, %v5189_v1  ;;  %v5080_v18 = vpop.f32.mrf.mxu0  ;;  %v2460_v10 = vadd.f32 %v2428_v36, %v7401_v60 }
 0x319   : > { %v5192_v5 = vpop.f32.mrf.mxu1  ;;  %v5660_v11 = vpop.eup %5659  ;;  %v7458_v51 = vadd.f32 %v5079_v35, %v7258_v45  ;;  %3516 = vmatpush2.bf16.msra.mxu0 %v5612_v32 }
 0x31a   : > { %v2389_v12 = vmul.f32 1.442695, %v2337_v42  ;;  %v2242_v47 = vadd.f32 %v5191_v41, %v7263_v58  ;;  %v5081_v46 = vpop.f32.mrf.mxu0  ;;  %v2484_v57 = vpack.c.bf16 %v2460_v10, %v2459_v33  ;;  %3517 = vmatprep.subr.bf16.mxu0 %v5620_v30  ;;  %v2429_v8 = vmul.f32 %v5660_v11, %v2301_v54 }
 0x31b   : > { %v5193_v13 = vpop.f32.mrf.mxu1  ;;  %4471 = vst [vmem:[%s7270_s2 + $0xa8] sm:$0xff] %v7458_v51  ;;  %v5082_v60 = vadd.f32 %v5081_v46, %v5080_v18  ;;  %v2305_v46 = vld [vmem:[%s6862_s10 + $0xa0] sm:$0xff] }
 0x31c   : > { %v2338_v7 = vmul.f32 0.5, %v2242_v47  ;;  %4503 = vst [vmem:[%s7275_s25 + $0xa8] sm:$0xff] %v2242_v47  ;;  %v5194_v9 = vadd.f32 %v5193_v13, %v5192_v5  ;;  %5667 = vpow2.f32 %v2389_v12  ;;  %2704 = vmatmul.mubr.bf16.gmra.mxu0 %v2484_v57  ;;  %v5083_v16 = vpop.f32.mrf.mxu0 }
 0x31d   : > { %v5662_v19 = vpop.eup %5661  ;;  %v5195_v63 = vpop.f32.mrf.mxu1  ;;  %v7467_v3 = vadd.f32 %v5082_v60, %v7258_v45  ;;  %2713 = vmatprep.mubr.bf16.mxu0 %v6544_v38  ;;  %3518 = vmatpush2.bf16.msra.mxu0 %v5618_v23 }
 0x31e   : > { %v2391_v50 = vmul.f32 1.442695, %v2338_v7  ;;  %v2247_v2 = vadd.f32 %v5194_v9, %v7263_v58  ;;  %v2430_v56 = vmul.f32 %v5662_v19, %v2302_v39  ;;  %v5084_v22 = vpop.f32.mrf.mxu0  ;;  %v2461_v58 = vadd.f32 %v2429_v8, %v7410_v59  ;;  %v2303_v59 = vld [vmem:[%s6862_s10 + $0x90] sm:$0xff]  ;;  %v2306_v7 = vld [vmem:[%s6862_s10 + $0xa8] sm:$0xff] }
 0x31f   : > { %v5196_v14 = vpop.f32.mrf.mxu1  ;;  %4472 = vst [vmem:[%s7270_s2 + $0xb0] sm:$0xff] %v7467_v3  ;;  %v5085_v28 = vadd.f32 %v5084_v22, %v5083_v16  ;;  %v5623_v8 = vld [vmem:[#allocation13 + $0x104] ss:$16 sps:$4 sm:$0xff]  }
 0x320   : > { %5669 = vpow2.f32 %v2391_v50  ;;  %v2339_v55 = vmul.f32 0.5, %v2247_v2  ;;  %4504 = vst [vmem:[%s7275_s25 + $0xb0] sm:$0xff] %v2247_v2  ;;  %v5197_v61 = vadd.f32 %v5196_v14, %v5195_v63  ;;  %v5086_v45 = vpop.f32.mrf.mxu0  ;;  %v2462_v24 = vadd.f32 %v2430_v56, %v7420_v29  ;;  %v5626_v50 = vld [vmem:[#allocation13 + $0x10c] ss:$16 sps:$4 sm:$0xff]   ;;  %3326 = vmatprep.subr.bf16.mxu1 %v5623_v8 }
 0x321   : > { %v5198_v27 = vpop.f32.mrf.mxu1  ;;  %v5664_v40 = vpop.eup %5663  ;;  %v7482_v49 = vadd.f32 %v7479_v6, %v5085_v28  ;;  %v5624_v28 = vld [vmem:[#allocation13 + $0x108] ss:$16 sps:$4 sm:$0xff]   ;;  %3519 = vmatprep.subr.bf16.mxu0 %v5626_v50 }
 0x322   : > { %v2393_v15 = vmul.f32 1.442695, %v2339_v55  ;;  %v2250_v48 = vadd.f32 %v7487_v34, %v5197_v61  ;;  %v5087_v52 = vpop.f32.mrf.mxu0  ;;  %v2485_v53 = vpack.c.bf16 %v2462_v24, %v2461_v58  ;;  %v2431_v26 = vmul.f32 %v5664_v40, %v2303_v59  ;;  %v5621_v55 = vld [vmem:[#allocation13 + $0x100] ss:$16 sps:$4 sm:$0xff]   ;;  %3520 = vmatpush2.bf16.msra.mxu0 %v5624_v28 }
 0x323   : > { %v5199_v29 = vpop.f32.mrf.mxu1  ;;  %4473 = vst [vmem:[%s7270_s2 + $0xb8] sm:$0xff] %v7482_v49  ;;  %v5088_v43 = vadd.f32 %v5087_v52, %v5086_v45  ;;  %3327 = vmatpush2.bf16.msra.mxu1 %v5621_v55 }
 0x324   : > { %v2340_v37 = vmul.f32 0.5, %v2250_v48  ;;  %4505 = vst [vmem:[%s7275_s25 + $0xb8] sm:$0xff] %v2250_v48  ;;  %v5200_v31 = vadd.f32 %v5199_v29, %v5198_v27  ;;  %5671 = vpow2.f32 %v2393_v15  ;;  %2714 = vmatmul.mubr.bf16.gmra.mxu0 %v2485_v53  ;;  %v5089_v62 = vpop.f32.mrf.mxu0  ;;  %v2463_v10 = vadd.f32 %v2431_v26, %v7429_v20 }
 0x325   : > { %v5666_v1 = vpop.eup %5665  ;;  %v5201_v17 = vpop.f32.mrf.mxu1  ;;  %v7496_v32 = vadd.f32 %v7479_v6, %v5088_v43  ;;  %2723 = vmatprep.mubr.bf16.mxu0 %v6544_v38 }
 0x326   : > { %v2395_v36 = vmul.f32 1.442695, %v2340_v37  ;;  %v2255_v4 = vadd.f32 %v7487_v34, %v5200_v31  ;;  %v2432_v25 = vmul.f32 %v5666_v1, %v2304_v0  ;;  %v5090_v30 = vpop.f32.mrf.mxu0  ;;  %v2307_v37 = vld [vmem:[%s6862_s10 + $0xb0] sm:$0xff] }
 0x327   : > { %v5202_v42 = vpop.f32.mrf.mxu1  ;;  %4474 = vst [vmem:[%s7270_s2 + $0xc0] sm:$0xff] %v7496_v32  ;;  %v5091_v41 = vadd.f32 %v5090_v30, %v5089_v62  ;;  %v2308_v62 = vld [vmem:[%s6862_s10 + $0xb8] sm:$0xff] }
 0x328   : > { %5673 = vpow2.f32 %v2395_v36  ;;  %v2341_v35 = vmul.f32 0.5, %v2255_v4  ;;  %4506 = vst [vmem:[%s7275_s25 + $0xc0] sm:$0xff] %v2255_v4  ;;  %v5203_v18 = vadd.f32 %v5202_v42, %v5201_v17  ;;  %v5092_v5 = vpop.f32.mrf.mxu0  ;;  %v2464_v11 = vadd.f32 %v2432_v25, %v7439_v44 }
 0x329   : > { %v5204_v33 = vpop.f32.mrf.mxu1  ;;  %v5668_v12 = vpop.eup %5667  ;;  %v7506_v54 = vadd.f32 %v7479_v6, %v5091_v41 }
 0x32a   : > { %v2397_v47 = vmul.f32 1.442695, %v2341_v35  ;;  %v2258_v23 = vadd.f32 %v7487_v34, %v5203_v18  ;;  %v5093_v13 = vpop.f32.mrf.mxu0  ;;  %v2486_v39 = vpack.c.bf16 %v2464_v11, %v2463_v10  ;;  %v2433_v63 = vmul.f32 %v5668_v12, %v2305_v46 }
 0x32b   : > { %v5205_v57 = vpop.f32.mrf.mxu1  ;;  %4475 = vst [vmem:[%s7270_s2 + $0xc8] sm:$0xff] %v7506_v54  ;;  %v5094_v9 = vadd.f32 %v5093_v13, %v5092_v5 }
 0x32c   : > { %v2342_v60 = vmul.f32 0.5, %v2258_v23  ;;  %4507 = vst [vmem:[%s7275_s25 + $0xc8] sm:$0xff] %v2258_v23  ;;  %v5206_v20 = vadd.f32 %v5205_v57, %v5204_v33  ;;  %5675 = vpow2.f32 %v2397_v47  ;;  %2724 = vmatmul.mubr.bf16.gmra.mxu0 %v2486_v39  ;;  %v5095_v44 = vpop.f32.mrf.mxu0  ;;  %v2465_v48 = vadd.f32 %v2433_v63, %v7448_v21 }
 0x32d   : > { %v5670_v19 = vpop.eup %5669  ;;  %v5207_v16 = vpop.f32.mrf.mxu1  ;;  %v7515_v56 = vadd.f32 %v7479_v6, %v5094_v9  ;;  %2733 = vmatprep.mubr.bf16.mxu0 %v6544_v38 }
 0x32e   : > { %v2399_v2 = vmul.f32 1.442695, %v2342_v60  ;;  %v2263_v22 = vadd.f32 %v7487_v34, %v5206_v20  ;;  %v2434_v14 = vmul.f32 %v5670_v19, %v2306_v7  ;;  %v5096_v61 = vpop.f32.mrf.mxu0  ;;  %v2309_v60 = vld [vmem:[%s6862_s10 + $0xc0] sm:$0xff] }
 0x32f   : > { %v5208_v45 = vpop.f32.mrf.mxu1  ;;  %4476 = vst [vmem:[%s7270_s2 + $0xd0] sm:$0xff] %v7515_v56  ;;  %v5097_v58 = vadd.f32 %v5096_v61, %v5095_v44  ;;  %v2310_v44 = vld [vmem:[%s6862_s10 + $0xc8] sm:$0xff] }
 0x330   : > { %5677 = vpow2.f32 %v2399_v2  ;;  %v2343_v27 = vmul.f32 0.5, %v2263_v22  ;;  %4508 = vst [vmem:[%s7275_s25 + $0xd0] sm:$0xff] %v2263_v22  ;;  %v5209_v24 = vadd.f32 %v5208_v45, %v5207_v16  ;;  %v5098_v40 = vpop.f32.mrf.mxu0  ;;  %v2466_v59 = vadd.f32 %v2434_v14, %v7458_v51 }
 0x331   : > { %v5210_v15 = vpop.f32.mrf.mxu1  ;;  %v5672_v52 = vpop.eup %5671  ;;  %v7525_v53 = vadd.f32 %v7479_v6, %v5097_v58 }
 0x332   : > { %v2401_v29 = vmul.f32 1.442695, %v2343_v27  ;;  %v2266_v0 = vadd.f32 %v7487_v34, %v5209_v24  ;;  %v5099_v43 = vpop.f32.mrf.mxu0  ;;  %v2487_v1 = vpack.c.bf16 %v2466_v59, %v2465_v48  ;;  %v2435_v25 = vmul.f32 %v5672_v52, %v2307_v37  ;;  %v2311_v59 = vld [vmem:[%s6862_s10 + $0xd0] sm:$0xff] }
 0x333   : > { %v5211_v31 = vpop.f32.mrf.mxu1  ;;  %4477 = vst [vmem:[%s7270_s2 + $0xd8] sm:$0xff] %v7525_v53  ;;  %v5100_v21 = vadd.f32 %v5099_v43, %v5098_v40  ;;  %v2312_v43 = vld [vmem:[%s6862_s10 + $0xd8] sm:$0xff] }
 0x334   : > { %5679 = vpow2.f32 %v2401_v29  ;;  %v2344_v17 = vmul.f32 0.5, %v2266_v0  ;;  %4509 = vst [vmem:[%s7275_s25 + $0xd8] sm:$0xff] %v2266_v0  ;;  %v5212_v51 = vadd.f32 %v5211_v31, %v5210_v15  ;;  %2734 = vmatmul.mubr.bf16.gmra.mxu0 %v2487_v1  ;;  %v5101_v36 = vpop.f32.mrf.mxu0  ;;  %v2467_v23 = vadd.f32 %v2435_v25, %v7467_v3 }
 0x335   : > { %v5674_v26 = vpop.eup %5673  ;;  %v5213_v4 = vpop.f32.mrf.mxu1  ;;  %v7534_v42 = vadd.f32 %v7479_v6, %v5100_v21  ;;  %2743 = vmatprep.mubr.bf16.mxu0 %v6544_v38  ;;  %v2313_v21 = vld [vmem:[%s6862_s10 + $0xe0] sm:$0xff] }
 0x336   : > { %v2403_v30 = vmul.f32 1.442695, %v2344_v17  ;;  %v2271_v35 = vadd.f32 %v7487_v34, %v5212_v51  ;;  %v2436_v41 = vmul.f32 %v5674_v26, %v2308_v62  ;;  %v5102_v18 = vpop.f32.mrf.mxu0  ;;  %v2314_v26 = vld [vmem:[%s6862_s10 + $0xe8] sm:$0xff] }
 0x337   : > { %v5214_v5 = vpop.f32.mrf.mxu1  ;;  %4478 = vst [vmem:[%s7270_s2 + $0xe0] sm:$0xff] %v7534_v42  ;;  %v5103_v10 = vadd.f32 %v5102_v18, %v5101_v36  ;;  %v2315_v18 = vld [vmem:[%s6862_s10 + $0xf0] sm:$0xff] }
 0x338   : > { %5681 = vpow2.f32 %v2403_v30  ;;  %v2345_v33 = vmul.f32 0.5, %v2271_v35  ;;  %4510 = vst [vmem:[%s7275_s25 + $0xe0] sm:$0xff] %v2271_v35  ;;  %v5215_v11 = vadd.f32 %v5214_v5, %v5213_v4  ;;  %v5104_v12 = vpop.f32.mrf.mxu0  ;;  %v2468_v46 = vadd.f32 %v2436_v41, %v7482_v49  ;;  %v2316_v5 = vld [vmem:[%s6862_s10 + $0xf8] sm:$0xff] }
 0x339   : > { %v5216_v47 = vpop.f32.mrf.mxu1  ;;  %v5676_v13 = vpop.eup %5675  ;;  %v7544_v39 = vadd.f32 %v7479_v6, %v5103_v10 }
 0x33a   : > { %v2405_v57 = vmul.f32 1.442695, %v2345_v33  ;;  %v2274_v7 = vadd.f32 %v7487_v34, %v5215_v11  ;;  %v5105_v9 = vpop.f32.mrf.mxu0  ;;  %v2488_v19 = vpack.c.bf16 %v2468_v46, %v2467_v23  ;;  %v2437_v2 = vmul.f32 %v5676_v13, %v2309_v60  ;;  %v8184_v46 = vld [vmem:[#allocation31_spill] sm:$0xff] }
 0x33b   : > { %v5217_v20 = vpop.f32.mrf.mxu1  ;;  %4479 = vst [vmem:[%s7270_s2 + $0xe8] sm:$0xff] %v7544_v39  ;;  %v5106_v3 = vadd.f32 %v5105_v9, %v5104_v12 }
 0x33c   : > { %5683 = vpow2.f32 %v2405_v57  ;;  %v2346_v16 = vmul.f32 0.5, %v2274_v7  ;;  %4511 = vst [vmem:[%s7275_s25 + $0xe8] sm:$0xff] %v2274_v7  ;;  %v5218_v49 = vadd.f32 %v5217_v20, %v5216_v47  ;;  %2744 = vmatmul.mubr.bf16.gmra.mxu0 %v2488_v19  ;;  %v5107_v8 = vpop.f32.mrf.mxu0  ;;  %v2469_v15 = vadd.f32 %v2437_v2, %v7496_v32  ;;  %v8185_v57 = vld [vmem:[#allocation30_spill] sm:$0xff] }
 0x33d   : > { %v5678_v63 = vpop.eup %5677  ;;  %v5219_v50 = vpop.f32.mrf.mxu1  ;;  %v1983_v14 = vadd.f32 %v7479_v6, %v5106_v3  ;;  %2753 = vmatprep.mubr.bf16.mxu0 %v6544_v38 }
 0x33e   : > { %v2407_v22 = vmul.f32 1.442695, %v2346_v16  ;;  %v2279_v55 = vadd.f32 %v7487_v34, %v5218_v49  ;;  %v2438_v28 = vmul.f32 %v5678_v63, %v2310_v44  ;;  %v5108_v61 = vpop.f32.mrf.mxu0 }
 0x33f   : > { %v5220_v45 = vpop.f32.mrf.mxu1  ;;  %4480 = vst [vmem:[%s7270_s2 + $0xf0] sm:$0xff] %v1983_v14  ;;  %v5109_v58 = vadd.f32 %v5108_v61, %v5107_v8 }
 0x340   : > { %5685 = vpow2.f32 %v2407_v22  ;;  %v2347_v27 = vmul.f32 0.5, %v2279_v55  ;;  %4512 = vst [vmem:[%s7275_s25 + $0xf0] sm:$0xff] %v2279_v55  ;;  %v5221_v24 = vadd.f32 %v5220_v45, %v5219_v50  ;;  %v2470_v48 = vadd.f32 %v2438_v28, %v7506_v54 }
 0x341   : > { %v5680_v40 = vpop.eup %5679  ;;  %v1986_v29 = vadd.f32 %v7479_v6, %v5109_v58 }
 0x342   : > { %v2409_v52 = vmul.f32 1.442695, %v2347_v27  ;;  %v2282_v0 = vadd.f32 %v7487_v34, %v5221_v24  ;;  %v2489_v37 = vpack.c.bf16 %v2470_v48, %v2469_v15  ;;  %v2439_v1 = vmul.f32 %v5680_v40, %v2311_v59 }
 0x343   : > { %4481 = vst [vmem:[%s7270_s2 + $0xf8] sm:$0xff] %v1986_v29  ;;  %s6391_s2 = scalar_lea.vmem %s7837_s17, 4096 }
 0x344   : > { %5687 = vpow2.f32 %v2409_v52  ;;  %v2348_v31 = vmul.f32 0.5, %v2282_v0  ;;  %4513 = vst [vmem:[%s7275_s25 + $0xf8] sm:$0xff] %v2282_v0  ;;  %2754 = vmatmul.mubr.bf16.gmra.mxu0 %v2489_v37  ;;  %v2471_v6 = vadd.f32 %v2439_v1, %v7515_v56  ;;  %p6392_p13 = scmp.ne.s32.totalorder %s7837_s17, %s6391_s2  ;;  %p6399_p4 = scmp.lt.s32.totalorder %s6397_s21, %s6391_s2 }
 0x345   : > { %v5682_v62 = vpop.eup %5681  ;;  %2763 = vmatprep.mubr.bf16.mxu0 %v6544_v38 }
 0x346   : > { %v2411_v32 = vmul.f32 1.442695, %v2348_v31  ;;  %v2440_v54 = vmul.f32 %v5682_v62, %v2312_v43  ;;  %p6393_p9 = pnand %p6392_p13, %p8187_p5  ;;  %p6400_p6 = por %p6399_p4, %p6398_p1 }
 0x348   : > { %5689 = vpow2.f32 %v2411_v32  ;;  %v2472_v34 = vadd.f32 %v2440_v54, %v7525_v53  ;;  %p6394_p11 = pneg %p6393_p9 }
 0x349   : > { %v5684_v17 = vpop.eup %5683 }
 0x34a   : > { %v2490_v51 = vpack.c.bf16 %v2472_v34, %v2471_v6  ;;  %v2441_v36 = vmul.f32 %v5684_v17, %v2313_v21  ;;  %p6401_p8 = pnand %p6400_p6, %p6394_p11 }
 0x34c   : > { %2764 = vmatmul.mubr.bf16.gmra.mxu0 %v2490_v51  ;;  %v2473_v30 = vadd.f32 %v2441_v36, %v7534_v42  ;;  %v2509_v42 = vld [vmem:[%s8106_s9] sm:$0x3] }
 0x34d   : > { %v5686_v4 = vpop.eup %5685  ;;  %2773 = vmatprep.mubr.bf16.mxu0 %v6544_v38  ;;  %v7580_v13 = vrot.slane %v2509_v42, %v8184_v46 }
 0x34e   : > { %v2442_v25 = vmul.f32 %v5686_v4, %v2314_v26 }
 0x350   : > { %v2474_v35 = vadd.f32 %v2442_v25, %v7544_v39  ;;  %v7583_v39 = vrot.slane %v2509_v42, %v8185_v57 }
 0x351   : > { %v5688_v41 = vpop.eup %5687 }
 0x352   : > { %v2491_v56 = vpack.c.bf16 %v2474_v35, %v2473_v30  ;;  %v2443_v33 = vmul.f32 %v5688_v41, %v2315_v18 }
 0x354   : > { %2774 = vmatmul.mubr.bf16.gmra.mxu0 %v2491_v56  ;;  %v2475_v11 = vadd.f32 %v2443_v33, %v1983_v14 }
 0x355   : > { %v5690_v53 = vpop.eup %5689  ;;  %2783 = vmatprep.mubr.bf16.mxu0 %v6544_v38 }
 0x356   : > { %v2444_v10 = vmul.f32 %v5690_v53, %v2316_v5 }
 0x358   : > { %v2476_v12 = vadd.f32 %v2444_v10, %v1986_v29 }
 0x35a   : > { %v2492_v47 = vpack.c.bf16 %v2476_v12, %v2475_v11 }
 0x35c   : > { %2784 = vmatmul.mubr.bf16.gmra.mxu0 %v2492_v47 }
 0x3a3   : > { %v2635_v23 = vpop.f32.mrf.mxu0 }
 0x3a4   : > { %v2636_v20 = vadd.f32 %v2635_v23, %v7583_v39 }
 0x3a5   : > { %v2637_v7 = vpop.f32.mrf.mxu0 }
 0x3a6   : > { %v2638_v38 = vadd.f32 %v2637_v7, %v7580_v13  ;;  %v2794_v8 = vmax.f32 %v2636_v20, 0.0 }
 0x3a7   : > { %v2639_v60 = vpop.f32.mrf.mxu0 }
 0x3a8   : > { %v2640_v9 = vadd.f32 %v2639_v60, %v7583_v39  ;;  %v2795_v49 = vmax.f32 %v2638_v38, 0.0 }
 0x3a9   : > { %v2641_v19 = vpop.f32.mrf.mxu0 }
 0x3aa   : > { %v2642_v44 = vadd.f32 %v2641_v19, %v7580_v13  ;;  %v2796_v16 = vmax.f32 %v2640_v9, 0.0 }
 0x3ab   : > { %v2645_v3 = vpop.f32.mrf.mxu0 }
 0x3ac   : > { %v2797_v63 = vmax.f32 %v2642_v44, 0.0  ;;  %v2858_v22 = vpack.c.bf16 %v2796_v16, %v2794_v8  ;;  %v2646_v61 = vadd.f32 %v2645_v3, %v7583_v39 }
 0x3ad   : > { %v2647_v50 = vpop.f32.mrf.mxu0 }
 0x3ae   : > { %v2859_v2 = vpack.c.bf16 %v2797_v63, %v2795_v49  ;;  %v2648_v55 = vadd.f32 %v2647_v50, %v7580_v13  ;;  %v2798_v48 = vmax.f32 %v2646_v61, 0.0 }
 0x3af   : > { %v2649_v14 = vpop.f32.mrf.mxu0 }
 0x3b0   : > { %v2650_v28 = vadd.f32 %v2649_v14, %v7583_v39  ;;  %3328 = vmatprep.mubr.bf16.mxu1 %v2859_v2  ;;  %3521 = vmatprep.mubr.bf16.mxu0 %v2859_v2  ;;  %v2799_v40 = vmax.f32 %v2648_v55, 0.0 }
 0x3b1   : > { %v2651_v45 = vpop.f32.mrf.mxu0  ;;  %3329 = vmatmul.mubr.bf16.vlgmr.msra.gmra.mxu1 %v2858_v22  ;;  %3522 = vmatmul.mubr.bf16.vlgmr.msra.gmra.mxu0 %v2858_v22 }
 0x3b2   : > { %v2652_v27 = vadd.f32 %v2651_v45, %v7580_v13  ;;  %v2800_v58 = vmax.f32 %v2650_v28, 0.0 }
 0x3b3   : > { %v2655_v24 = vpop.f32.mrf.mxu0 }
 0x3b4   : > { %v2801_v15 = vmax.f32 %v2652_v27, 0.0  ;;  %v2860_v29 = vpack.c.bf16 %v2800_v58, %v2798_v48  ;;  %v2656_v31 = vadd.f32 %v2655_v24, %v7583_v39 }
 0x3b5   : > { %v2657_v59 = vpop.f32.mrf.mxu0 }
 0x3b6   : > { %v2861_v52 = vpack.c.bf16 %v2801_v15, %v2799_v40  ;;  %v2658_v37 = vadd.f32 %v2657_v59, %v7580_v13  ;;  %v2802_v17 = vmax.f32 %v2656_v31, 0.0 }
 0x3b7   : > { %v2659_v0 = vpop.f32.mrf.mxu0 }
 0x3b8   : > { %v2660_v43 = vadd.f32 %v2659_v0, %v7583_v39  ;;  %3338 = vmatprep.mubr.bf16.mxu1 %v2861_v52  ;;  %3531 = vmatprep.mubr.bf16.mxu0 %v2861_v52  ;;  %v2803_v6 = vmax.f32 %v2658_v37, 0.0 }
 0x3b9   : > { %v2661_v1 = vpop.f32.mrf.mxu0  ;;  %3339 = vmatmul.mubr.bf16.gmra.mxu1 %v2860_v29  ;;  %3532 = vmatmul.mubr.bf16.gmra.mxu0 %v2860_v29 }
 0x3ba   : > { %v2662_v62 = vadd.f32 %v2661_v1, %v7580_v13  ;;  %v2804_v32 = vmax.f32 %v2660_v43, 0.0 }
 0x3bc   : > { %v2665_v54 = vpop.f32.mrf.mxu0  ;;  %v2805_v34 = vmax.f32 %v2662_v62, 0.0  ;;  %v2862_v26 = vpack.c.bf16 %v2804_v32, %v2802_v17 }
 0x3bd   : > { %v2666_v30 = vadd.f32 %v2665_v54, %v7583_v39 }
 0x3be   : > { %v2667_v21 = vpop.f32.mrf.mxu0  ;;  %v2863_v51 = vpack.c.bf16 %v2805_v34, %v2803_v6 }
 0x3bf   : > { %v2668_v4 = vadd.f32 %v2667_v21, %v7580_v13  ;;  %v2806_v53 = vmax.f32 %v2666_v30, 0.0 }
 0x3c0   : > { %v2669_v36 = vpop.f32.mrf.mxu0  ;;  %3348 = vmatprep.mubr.bf16.mxu1 %v2863_v51  ;;  %3541 = vmatprep.mubr.bf16.mxu0 %v2863_v51 }
 0x3c1   : > { %v2670_v25 = vadd.f32 %v2669_v36, %v7583_v39  ;;  %3349 = vmatmul.mubr.bf16.gmra.mxu1 %v2862_v26  ;;  %3542 = vmatmul.mubr.bf16.gmra.mxu0 %v2862_v26  ;;  %v2807_v5 = vmax.f32 %v2668_v4, 0.0 }
 0x3c2   : > { %v2671_v35 = vpop.f32.mrf.mxu0 }
 0x3c3   : > { %v2672_v41 = vadd.f32 %v2671_v35, %v7580_v13  ;;  %v2808_v18 = vmax.f32 %v2670_v25, 0.0 }
 0x3c4   : > { %v2675_v56 = vpop.f32.mrf.mxu0 }
 0x3c5   : > { %v2809_v33 = vmax.f32 %v2672_v41, 0.0  ;;  %v2864_v12 = vpack.c.bf16 %v2808_v18, %v2806_v53  ;;  %v2676_v7 = vadd.f32 %v2675_v56, %v7583_v39 }
 0x3c6   : > { %v2677_v10 = vpop.f32.mrf.mxu0 }
 0x3c7   : > { %v2865_v11 = vpack.c.bf16 %v2809_v33, %v2807_v5  ;;  %v2678_v42 = vadd.f32 %v2677_v10, %v7580_v13  ;;  %v2810_v16 = vmax.f32 %v2676_v7, 0.0 }
 0x3c8   : > { %v2679_v47 = vpop.f32.mrf.mxu0 }
 0x3c9   : > { %v2680_v23 = vadd.f32 %v2679_v47, %v7583_v39  ;;  %3358 = vmatprep.mubr.bf16.mxu1 %v2865_v11  ;;  %3551 = vmatprep.mubr.bf16.mxu0 %v2865_v11  ;;  %v2811_v19 = vmax.f32 %v2678_v42, 0.0 }
 0x3ca   : > { %v2681_v60 = vpop.f32.mrf.mxu0  ;;  %3359 = vmatmul.mubr.bf16.gmra.mxu1 %v2864_v12  ;;  %3552 = vmatmul.mubr.bf16.gmra.mxu0 %v2864_v12 }
 0x3cb   : > { %v2682_v38 = vadd.f32 %v2681_v60, %v7580_v13  ;;  %v2812_v9 = vmax.f32 %v2680_v23, 0.0 }
 0x3cc   : > { %v2685_v20 = vpop.f32.mrf.mxu0 }
 0x3cd   : > { %v2813_v44 = vmax.f32 %v2682_v38, 0.0  ;;  %v2866_v63 = vpack.c.bf16 %v2812_v9, %v2810_v16  ;;  %v2686_v22 = vadd.f32 %v2685_v20, %v7583_v39 }
 0x3ce   : > { %v2687_v3 = vpop.f32.mrf.mxu0 }
 0x3cf   : > { %v2867_v49 = vpack.c.bf16 %v2813_v44, %v2811_v19  ;;  %v2688_v50 = vadd.f32 %v2687_v3, %v7580_v13  ;;  %v2814_v58 = vmax.f32 %v2686_v22, 0.0 }
 0x3d0   : > { %v2689_v8 = vpop.f32.mrf.mxu0 }
 0x3d1   : > { %v2690_v2 = vadd.f32 %v2689_v8, %v7583_v39  ;;  %3368 = vmatprep.mubr.bf16.mxu1 %v2867_v49  ;;  %3561 = vmatprep.mubr.bf16.mxu0 %v2867_v49  ;;  %v2815_v45 = vmax.f32 %v2688_v50, 0.0 }
 0x3d2   : > { %v2691_v14 = vpop.f32.mrf.mxu0  ;;  %3369 = vmatmul.mubr.bf16.gmra.mxu1 %v2866_v63  ;;  %3562 = vmatmul.mubr.bf16.gmra.mxu0 %v2866_v63 }
 0x3d3   : > { %v2692_v55 = vadd.f32 %v2691_v14, %v7580_v13  ;;  %v2816_v28 = vmax.f32 %v2690_v2, 0.0 }
 0x3d4   : > { %v2695_v61 = vpop.f32.mrf.mxu0 }
 0x3d5   : > { %v2817_v27 = vmax.f32 %v2692_v55, 0.0  ;;  %v2868_v15 = vpack.c.bf16 %v2816_v28, %v2814_v58  ;;  %v2696_v29 = vadd.f32 %v2695_v61, %v7583_v39 }
 0x3d6   : > { %v2697_v24 = vpop.f32.mrf.mxu0 }
 0x3d7   : > { %v2869_v40 = vpack.c.bf16 %v2817_v27, %v2815_v45  ;;  %v2698_v59 = vadd.f32 %v2697_v24, %v7580_v13  ;;  %v2818_v32 = vmax.f32 %v2696_v29, 0.0 }
 0x3d8   : > { %v2699_v48 = vpop.f32.mrf.mxu0 }
 0x3d9   : > { %v2700_v52 = vadd.f32 %v2699_v48, %v7583_v39  ;;  %3378 = vmatprep.mubr.bf16.mxu1 %v2869_v40  ;;  %3571 = vmatprep.mubr.bf16.mxu0 %v2869_v40  ;;  %v2819_v1 = vmax.f32 %v2698_v59, 0.0 }
 0x3da   : > { %v2701_v0 = vpop.f32.mrf.mxu0  ;;  %3379 = vmatmul.mubr.bf16.gmra.mxu1 %v2868_v15  ;;  %3572 = vmatmul.mubr.bf16.gmra.mxu0 %v2868_v15 }
 0x3db   : > { %v2702_v37 = vadd.f32 %v2701_v0, %v7580_v13  ;;  %v2820_v43 = vmax.f32 %v2700_v52, 0.0 }
 0x3dc   : > { %v2705_v31 = vpop.f32.mrf.mxu0 }
 0x3dd   : > { %v2821_v62 = vmax.f32 %v2702_v37, 0.0  ;;  %v2870_v34 = vpack.c.bf16 %v2820_v43, %v2818_v32  ;;  %v2706_v26 = vadd.f32 %v2705_v31, %v7583_v39 }
 0x3de   : > { %v2707_v54 = vpop.f32.mrf.mxu0 }
 0x3df   : > { %v2871_v6 = vpack.c.bf16 %v2821_v62, %v2819_v1  ;;  %v2708_v21 = vadd.f32 %v2707_v54, %v7580_v13  ;;  %v2822_v18 = vmax.f32 %v2706_v26, 0.0 }
 0x3e0   : > { %v2709_v17 = vpop.f32.mrf.mxu0 }
 0x3e1   : > { %v2710_v51 = vadd.f32 %v2709_v17, %v7583_v39  ;;  %3388 = vmatprep.mubr.bf16.mxu1 %v2871_v6  ;;  %3581 = vmatprep.mubr.bf16.mxu0 %v2871_v6  ;;  %v2823_v35 = vmax.f32 %v2708_v21, 0.0 }
 0x3e2   : > { %v2711_v36 = vpop.f32.mrf.mxu0  ;;  %3389 = vmatmul.mubr.bf16.gmra.mxu1 %v2870_v34  ;;  %3582 = vmatmul.mubr.bf16.gmra.mxu0 %v2870_v34 }
 0x3e3   : > { %v2712_v4 = vadd.f32 %v2711_v36, %v7580_v13  ;;  %v2824_v25 = vmax.f32 %v2710_v51, 0.0 }
 0x3e4   : > { %v2715_v30 = vpop.f32.mrf.mxu0 }
 0x3e5   : > { %v2825_v41 = vmax.f32 %v2712_v4, 0.0  ;;  %v2872_v33 = vpack.c.bf16 %v2824_v25, %v2822_v18  ;;  %v2716_v12 = vadd.f32 %v2715_v30, %v7583_v39 }
 0x3e6   : > { %v2717_v56 = vpop.f32.mrf.mxu0 }
 0x3e7   : > { %v2873_v5 = vpack.c.bf16 %v2825_v41, %v2823_v35  ;;  %v2718_v10 = vadd.f32 %v2717_v56, %v7580_v13  ;;  %v2826_v9 = vmax.f32 %v2716_v12, 0.0 }
 0x3e8   : > { %v2719_v53 = vpop.f32.mrf.mxu0 }
 0x3e9   : > { %v2720_v11 = vadd.f32 %v2719_v53, %v7583_v39  ;;  %3398 = vmatprep.mubr.bf16.mxu1 %v2873_v5  ;;  %3591 = vmatprep.mubr.bf16.mxu0 %v2873_v5  ;;  %v2827_v60 = vmax.f32 %v2718_v10, 0.0 }
 0x3ea   : > { %v2721_v47 = vpop.f32.mrf.mxu0  ;;  %3399 = vmatmul.mubr.bf16.gmra.mxu1 %v2872_v33  ;;  %3592 = vmatmul.mubr.bf16.gmra.mxu0 %v2872_v33 }
 0x3eb   : > { %v2722_v42 = vadd.f32 %v2721_v47, %v7580_v13  ;;  %v2828_v23 = vmax.f32 %v2720_v11, 0.0 }
 0x3ec   : > { %v2725_v7 = vpop.f32.mrf.mxu0 }
 0x3ed   : > { %v2829_v38 = vmax.f32 %v2722_v42, 0.0  ;;  %v2874_v44 = vpack.c.bf16 %v2828_v23, %v2826_v9  ;;  %v2726_v63 = vadd.f32 %v2725_v7, %v7583_v39 }
 0x3ee   : > { %v2727_v20 = vpop.f32.mrf.mxu0 }
 0x3ef   : > { %v2875_v19 = vpack.c.bf16 %v2829_v38, %v2827_v60  ;;  %v2728_v3 = vadd.f32 %v2727_v20, %v7580_v13  ;;  %v2830_v28 = vmax.f32 %v2726_v63, 0.0 }
 0x3f0   : > { %v2729_v16 = vpop.f32.mrf.mxu0 }
 0x3f1   : > { %v2730_v49 = vadd.f32 %v2729_v16, %v7583_v39  ;;  %3408 = vmatprep.mubr.bf16.mxu1 %v2875_v19  ;;  %3601 = vmatprep.mubr.bf16.mxu0 %v2875_v19  ;;  %v2831_v14 = vmax.f32 %v2728_v3, 0.0 }
 0x3f2   : > { %v2731_v8 = vpop.f32.mrf.mxu0  ;;  %3409 = vmatmul.mubr.bf16.gmra.mxu1 %v2874_v44  ;;  %3602 = vmatmul.mubr.bf16.gmra.mxu0 %v2874_v44 }
 0x3f3   : > { %v2732_v50 = vadd.f32 %v2731_v8, %v7580_v13  ;;  %v2832_v2 = vmax.f32 %v2730_v49, 0.0 }
 0x3f4   : > { %v2735_v22 = vpop.f32.mrf.mxu0 }
 0x3f5   : > { %v2833_v55 = vmax.f32 %v2732_v50, 0.0  ;;  %v2876_v27 = vpack.c.bf16 %v2832_v2, %v2830_v28  ;;  %v2736_v15 = vadd.f32 %v2735_v22, %v7583_v39 }
 0x3f6   : > { %v2737_v61 = vpop.f32.mrf.mxu0 }
 0x3f7   : > { %v2877_v45 = vpack.c.bf16 %v2833_v55, %v2831_v14  ;;  %v2738_v24 = vadd.f32 %v2737_v61, %v7580_v13  ;;  %v2834_v43 = vmax.f32 %v2736_v15, 0.0 }
 0x3f8   : > { %v2739_v58 = vpop.f32.mrf.mxu0 }
 0x3f9   : > { %v2740_v40 = vadd.f32 %v2739_v58, %v7583_v39  ;;  %3418 = vmatprep.mubr.bf16.mxu1 %v2877_v45  ;;  %3611 = vmatprep.mubr.bf16.mxu0 %v2877_v45  ;;  %v2835_v0 = vmax.f32 %v2738_v24, 0.0 }
 0x3fa   : > { %v2741_v48 = vpop.f32.mrf.mxu0  ;;  %3419 = vmatmul.mubr.bf16.gmra.mxu1 %v2876_v27  ;;  %3612 = vmatmul.mubr.bf16.gmra.mxu0 %v2876_v27 }
 0x3fb   : > { %v2742_v59 = vadd.f32 %v2741_v48, %v7580_v13  ;;  %v2836_v52 = vmax.f32 %v2740_v40, 0.0 }
 0x3fc   : > { %v2745_v29 = vpop.f32.mrf.mxu0 }
 0x3fd   : > { %v2837_v37 = vmax.f32 %v2742_v59, 0.0  ;;  %v2878_v62 = vpack.c.bf16 %v2836_v52, %v2834_v43  ;;  %v2746_v34 = vadd.f32 %v2745_v29, %v7583_v39 }
 0x3fe   : > { %v2747_v31 = vpop.f32.mrf.mxu0 }
 0x3ff   : > { %v2879_v1 = vpack.c.bf16 %v2837_v37, %v2835_v0  ;;  %v2748_v54 = vadd.f32 %v2747_v31, %v7580_v13  ;;  %v2838_v25 = vmax.f32 %v2746_v34, 0.0 }
 0x400   : > { %v2749_v32 = vpop.f32.mrf.mxu0 }
 0x401   : > { %v2750_v6 = vadd.f32 %v2749_v32, %v7583_v39  ;;  %3428 = vmatprep.mubr.bf16.mxu1 %v2879_v1  ;;  %3621 = vmatprep.mubr.bf16.mxu0 %v2879_v1  ;;  %v2839_v36 = vmax.f32 %v2748_v54, 0.0 }
 0x402   : > { %v2751_v17 = vpop.f32.mrf.mxu0  ;;  %3429 = vmatmul.mubr.bf16.gmra.mxu1 %v2878_v62  ;;  %3622 = vmatmul.mubr.bf16.gmra.mxu0 %v2878_v62 }
 0x403   : > { %v2752_v21 = vadd.f32 %v2751_v17, %v7580_v13  ;;  %v2840_v51 = vmax.f32 %v2750_v6, 0.0 }
 0x404   : > { %v2755_v26 = vpop.f32.mrf.mxu0 }
 0x405   : > { %v2841_v4 = vmax.f32 %v2752_v21, 0.0  ;;  %v2880_v41 = vpack.c.bf16 %v2840_v51, %v2838_v25  ;;  %v2756_v33 = vadd.f32 %v2755_v26, %v7583_v39 }
 0x406   : > { %v2757_v30 = vpop.f32.mrf.mxu0 }
 0x407   : > { %v2881_v35 = vpack.c.bf16 %v2841_v4, %v2839_v36  ;;  %v2758_v56 = vadd.f32 %v2757_v30, %v7580_v13  ;;  %v2842_v23 = vmax.f32 %v2756_v33, 0.0  ;;  %v8186_v36 = vld [vmem:[#allocation29_spill] sm:$0xff] }
 0x408   : > { %v2759_v18 = vpop.f32.mrf.mxu0  ;;  %v2966_v4 = vsub.s32 2, %v8186_v36  ;;  %v2970_v25 = vsub.s32 3, %v8186_v36 }
 0x409   : > { %v2760_v5 = vadd.f32 %v2759_v18, %v7583_v39  ;;  %3438 = vmatprep.mubr.bf16.mxu1 %v2881_v35  ;;  %3631 = vmatprep.mubr.bf16.mxu0 %v2881_v35  ;;  %v2843_v47 = vmax.f32 %v2758_v56, 0.0 }
 0x40a   : > { %v2761_v53 = vpop.f32.mrf.mxu0  ;;  %3439 = vmatmul.mubr.bf16.gmra.mxu1 %v2880_v41  ;;  %3632 = vmatmul.mubr.bf16.gmra.mxu0 %v2880_v41 }
 0x40b   : > { %v2762_v10 = vadd.f32 %v2761_v53, %v7580_v13  ;;  %v2844_v11 = vmax.f32 %v2760_v5, 0.0 }
 0x40c   : > { %v2765_v12 = vpop.f32.mrf.mxu0 }
 0x40d   : > { %v2845_v42 = vmax.f32 %v2762_v10, 0.0  ;;  %v2882_v38 = vpack.c.bf16 %v2844_v11, %v2842_v23  ;;  %v2766_v44 = vadd.f32 %v2765_v12, %v7583_v39 }
 0x40e   : > { %v2767_v7 = vpop.f32.mrf.mxu0 }
 0x40f   : > { %v2883_v60 = vpack.c.bf16 %v2845_v42, %v2843_v47  ;;  %v2768_v20 = vadd.f32 %v2767_v7, %v7580_v13  ;;  %v2846_v2 = vmax.f32 %v2766_v44, 0.0 }
 0x410   : > { %v2769_v9 = vpop.f32.mrf.mxu0 }
 0x411   : > { %v2770_v19 = vadd.f32 %v2769_v9, %v7583_v39  ;;  %3448 = vmatprep.mubr.bf16.mxu1 %v2883_v60  ;;  %3641 = vmatprep.mubr.bf16.mxu0 %v2883_v60  ;;  %v2847_v8 = vmax.f32 %v2768_v20, 0.0 }
 0x412   : > { %v2771_v16 = vpop.f32.mrf.mxu0  ;;  %3449 = vmatmul.mubr.bf16.gmra.mxu1 %v2882_v38  ;;  %3642 = vmatmul.mubr.bf16.gmra.mxu0 %v2882_v38 }
 0x413   : > { %v2772_v3 = vadd.f32 %v2771_v16, %v7580_v13  ;;  %v2848_v49 = vmax.f32 %v2770_v19, 0.0 }
 0x414   : > { %v2775_v63 = vpop.f32.mrf.mxu0 }
 0x415   : > { %v2849_v50 = vmax.f32 %v2772_v3, 0.0  ;;  %v2884_v55 = vpack.c.bf16 %v2848_v49, %v2846_v2  ;;  %v2776_v27 = vadd.f32 %v2775_v63, %v7583_v39 }
 0x416   : > { %v2777_v22 = vpop.f32.mrf.mxu0 }
 0x417   : > { %v2885_v14 = vpack.c.bf16 %v2849_v50, %v2847_v8  ;;  %v2778_v61 = vadd.f32 %v2777_v22, %v7580_v13  ;;  %v2850_v52 = vmax.f32 %v2776_v27, 0.0 }
 0x418   : > { %v2779_v28 = vpop.f32.mrf.mxu0 }
 0x419   : > { %v2780_v45 = vadd.f32 %v2779_v28, %v7583_v39  ;;  %3458 = vmatprep.mubr.bf16.mxu1 %v2885_v14  ;;  %3651 = vmatprep.mubr.bf16.mxu0 %v2885_v14  ;;  %v2851_v48 = vmax.f32 %v2778_v61, 0.0 }
 0x41a   : > { %v2781_v58 = vpop.f32.mrf.mxu0  ;;  %3459 = vmatmul.mubr.bf16.gmra.mxu1 %v2884_v55  ;;  %3652 = vmatmul.mubr.bf16.gmra.mxu0 %v2884_v55 }
 0x41b   : > { %v2782_v24 = vadd.f32 %v2781_v58, %v7580_v13  ;;  %v2852_v40 = vmax.f32 %v2780_v45, 0.0 }
 0x41c   : > { %v2785_v15 = vpop.f32.mrf.mxu0 }
 0x41d   : > { %v2853_v59 = vmax.f32 %v2782_v24, 0.0  ;;  %v2886_v37 = vpack.c.bf16 %v2852_v40, %v2850_v52  ;;  %v2786_v62 = vadd.f32 %v2785_v15, %v7583_v39 }
 0x41e   : > { %v2787_v29 = vpop.f32.mrf.mxu0 }
 0x41f   : > { %v2887_v0 = vpack.c.bf16 %v2853_v59, %v2851_v48  ;;  %v2788_v31 = vadd.f32 %v2787_v29, %v7580_v13  ;;  %v2854_v21 = vmax.f32 %v2786_v62, 0.0 }
 0x420   : > { %v2789_v43 = vpop.f32.mrf.mxu0 }
 0x421   : > { %v2790_v1 = vadd.f32 %v2789_v43, %v7583_v39  ;;  %3468 = vmatprep.mubr.bf16.mxu1 %v2887_v0  ;;  %3661 = vmatprep.mubr.bf16.mxu0 %v2887_v0  ;;  %v2855_v34 = vmax.f32 %v2788_v31, 0.0  ;;  %v2954_v39 = vld [vmem:[%s8108_s11] sm:$0xf] }
 0x422   : > { %v2791_v32 = vpop.f32.mrf.mxu0  ;;  %3469 = vmatmul.mubr.bf16.gmra.mxu1 %v2886_v37  ;;  %3662 = vmatmul.mubr.bf16.gmra.mxu0 %v2886_v37  ;;  %v7657_v30 = vrot.slane %v2954_v39, %v2966_v4  ;;  %v7660_v35 = vrot.slane %v2954_v39, %v8184_v46  ;;  %v7662_v41 = vrot.slane %v2954_v39, %v2970_v25 }
 0x423   : > { %v2792_v54 = vadd.f32 %v2791_v32, %v7580_v13  ;;  %v2856_v6 = vmax.f32 %v2790_v1, 0.0  ;;  %v7655_v13 = vrot.slane %v2954_v39, %v8185_v57 }
 0x425   : > { %v2857_v17 = vmax.f32 %v2792_v54, 0.0  ;;  %v2888_v26 = vpack.c.bf16 %v2856_v6, %v2854_v21 }
 0x427   : > { %v2889_v51 = vpack.c.bf16 %v2857_v17, %v2855_v34 }
 0x429   : > { %3478 = vmatprep.mubr.bf16.mxu1 %v2889_v51  ;;  %3671 = vmatprep.mubr.bf16.mxu0 %v2889_v51 }
 0x42a   : > { %3479 = vmatmul.mubr.bf16.gmra.mxu1 %v2888_v26  ;;  %3672 = vmatmul.mubr.bf16.gmra.mxu0 %v2888_v26 }
 0x471   : > { %v3330_v18 = vpop.f32.mrf.mxu1  ;;  %v3523_v56 = vpop.f32.mrf.mxu0 }
 0x472   : > { %v3331_v5 = vadd.f32 %v3330_v18, %v7655_v13  ;;  %v3524_v33 = vadd.f32 %v3523_v56, %v7657_v30 }
 0x473   : > { %v3332_v53 = vpop.f32.mrf.mxu1  ;;  %v3525_v10 = vpop.f32.mrf.mxu0 }
 0x474   : > { %v3682_v11 = vsub.f32 0.0, %v3331_v5  ;;  %v3684_v12 = vsub.f32 0.0, %v3524_v33  ;;  %v3333_v57 = vadd.f32 %v3332_v53, %v7660_v35  ;;  %v3526_v47 = vadd.f32 %v3525_v10, %v7662_v41 }
 0x475   : > { %v3334_v42 = vpop.f32.mrf.mxu1  ;;  %v3527_v23 = vpop.f32.mrf.mxu0 }
 0x476   : > { %v3810_v46 = vmul.f32 1.442695, %v3682_v11  ;;  %v3814_v7 = vmul.f32 1.442695, %v3684_v12  ;;  %v3683_v60 = vsub.f32 0.0, %v3333_v57  ;;  %v3685_v38 = vsub.f32 0.0, %v3526_v47 }
 0x477   : > { %v3335_v9 = vadd.f32 %v3334_v42, %v7655_v13  ;;  %v3528_v20 = vadd.f32 %v3527_v23, %v7657_v30  ;;  %v3336_v19 = vpop.f32.mrf.mxu1  ;;  %v3529_v44 = vpop.f32.mrf.mxu0 }
 0x478   : > { %5691 = vpow2.f32 %v3810_v46  ;;  %v3812_v16 = vmul.f32 1.442695, %v3683_v60  ;;  %v3816_v3 = vmul.f32 1.442695, %v3685_v38  ;;  %v3337_v49 = vadd.f32 %v3336_v19, %v7660_v35 }
 0x479   : > { %5693 = vpow2.f32 %v3814_v7  ;;  %v3686_v63 = vsub.f32 0.0, %v3335_v9  ;;  %v3688_v8 = vsub.f32 0.0, %v3528_v20  ;;  %v3530_v50 = vadd.f32 %v3529_v44, %v7662_v41  ;;  %v3340_v2 = vpop.f32.mrf.mxu1  ;;  %v3533_v22 = vpop.f32.mrf.mxu0 }
 0x47a   : > { %5695 = vpow2.f32 %v3812_v16  ;;  %v3687_v14 = vsub.f32 0.0, %v3337_v49  ;;  %v3341_v55 = vadd.f32 %v3340_v2, %v7655_v13  ;;  %v3534_v28 = vadd.f32 %v3533_v22, %v7657_v30 }
 0x47b   : > { %5697 = vpow2.f32 %v3816_v3  ;;  %v3818_v61 = vmul.f32 1.442695, %v3686_v63  ;;  %v3822_v45 = vmul.f32 1.442695, %v3688_v8  ;;  %v3689_v27 = vsub.f32 0.0, %v3530_v50  ;;  %v3342_v58 = vpop.f32.mrf.mxu1  ;;  %v3535_v24 = vpop.f32.mrf.mxu0 }
 0x47c   : > { %v3820_v40 = vmul.f32 1.442695, %v3687_v14  ;;  %v3690_v15 = vsub.f32 0.0, %v3341_v55  ;;  %v3692_v48 = vsub.f32 0.0, %v3534_v28  ;;  %v3343_v59 = vadd.f32 %v3342_v58, %v7660_v35 }
 0x47d   : > { %5699 = vpow2.f32 %v3818_v61  ;;  %v3824_v52 = vmul.f32 1.442695, %v3689_v27  ;;  %v3536_v29 = vadd.f32 %v3535_v24, %v7662_v41  ;;  %v3344_v0 = vpop.f32.mrf.mxu1  ;;  %v3537_v37 = vpop.f32.mrf.mxu0 }
 0x47e   : > { %5701 = vpow2.f32 %v3822_v45  ;;  %v3826_v43 = vmul.f32 1.442695, %v3690_v15  ;;  %v3830_v31 = vmul.f32 1.442695, %v3692_v48  ;;  %v3691_v1 = vsub.f32 0.0, %v3343_v59 }
 0x47f   : > { %5703 = vpow2.f32 %v3820_v40  ;;  %v3693_v62 = vsub.f32 0.0, %v3536_v29  ;;  %v3345_v32 = vadd.f32 %v3344_v0, %v7655_v13  ;;  %v3538_v54 = vadd.f32 %v3537_v37, %v7657_v30  ;;  %v3346_v6 = vpop.f32.mrf.mxu1  ;;  %v3539_v34 = vpop.f32.mrf.mxu0 }
 0x480   : > { %5705 = vpow2.f32 %v3824_v52  ;;  %v3828_v17 = vmul.f32 1.442695, %v3691_v1  ;;  %v3347_v21 = vadd.f32 %v3346_v6, %v7660_v35  ;;  %v3540_v51 = vadd.f32 %v3539_v34, %v7662_v41 }
 0x481   : > { %5707 = vpow2.f32 %v3826_v43  ;;  %v3832_v26 = vmul.f32 1.442695, %v3693_v62  ;;  %v3694_v36 = vsub.f32 0.0, %v3345_v32  ;;  %v3696_v4 = vsub.f32 0.0, %v3538_v54  ;;  %v3350_v39 = vpop.f32.mrf.mxu1  ;;  %v3543_v25 = vpop.f32.mrf.mxu0 }
 0x482   : > { %5709 = vpow2.f32 %v3830_v31  ;;  %v3695_v18 = vsub.f32 0.0, %v3347_v21  ;;  %v3697_v11 = vsub.f32 0.0, %v3540_v51  ;;  %v3351_v44 = vadd.f32 %v3350_v39, %v7655_v13 }
 0x483   : > { %5711 = vpow2.f32 %v3828_v17  ;;  %v3834_v56 = vmul.f32 1.442695, %v3694_v36  ;;  %v3838_v5 = vmul.f32 1.442695, %v3696_v4  ;;  %v3352_v33 = vpop.f32.mrf.mxu1  ;;  %v3545_v53 = vpop.f32.mrf.mxu0  ;;  %v3544_v3 = vadd.f32 %v3543_v25, %v7657_v30 }
 0x484   : > { %5713 = vpow2.f32 %v3832_v26  ;;  %v3836_v10 = vmul.f32 1.442695, %v3695_v18  ;;  %v3840_v9 = vmul.f32 1.442695, %v3697_v11  ;;  %v3698_v28 = vsub.f32 0.0, %v3351_v44 }
 0x485   : > { %v5692_v12 = vpop.eup %5691  ;;  %5715 = vpow2.f32 %v3834_v56  ;;  %v3354_v57 = vpop.f32.mrf.mxu1  ;;  %v3700_v27 = vsub.f32 0.0, %v3544_v3  ;;  %v3353_v58 = vadd.f32 %v3352_v33, %v7660_v35  ;;  %v3546_v15 = vadd.f32 %v3545_v53, %v7662_v41 }
 0x486   : > { %v5694_v47 = vpop.eup %5693  ;;  %v4066_v42 = vadd.f32 1.0, %v5692_v12  ;;  %5717 = vpow2.f32 %v3838_v5  ;;  %v3547_v7 = vpop.f32.mrf.mxu0  ;;  %v3355_v29 = vadd.f32 %v3354_v57, %v7655_v13  ;;  %v3842_v31 = vmul.f32 1.442695, %v3698_v28 }
 0x487   : > { %v5696_v23 = vpop.eup %5695  ;;  %v4068_v46 = vadd.f32 1.0, %v5694_v47  ;;  %5719 = vpow2.f32 %v3836_v10  ;;  %v3356_v20 = vpop.f32.mrf.mxu1  ;;  %v3548_v1 = vadd.f32 %v3547_v7, %v7657_v30  ;;  %v3846_v54 = vmul.f32 1.442695, %v3700_v27 }
 0x488   : > { %v5698_v60 = vpop.eup %5697  ;;  %5721 = vrcp.f32 %v4066_v42  ;;  %v4067_v38 = vadd.f32 1.0, %v5696_v23  ;;  %v3549_v8 = vpop.f32.mrf.mxu0  ;;  %v3699_v6 = vsub.f32 0.0, %v3353_v58  ;;  %v3701_v21 = vsub.f32 0.0, %v3546_v15 }
 0x489   : > { %5723 = vrcp.f32 %v4068_v46  ;;  %v4069_v19 = vadd.f32 1.0, %v5698_v60  ;;  %v3357_v51 = vadd.f32 %v3356_v20, %v7660_v35  ;;  %v3702_v39 = vsub.f32 0.0, %v3355_v29 }
 0x48a   : > { %v5700_v16 = vpop.eup %5699  ;;  %5725 = vrcp.f32 %v4067_v38  ;;  %v3360_v22 = vpop.f32.mrf.mxu1  ;;  %v3550_v25 = vadd.f32 %v3549_v8, %v7662_v41  ;;  %v3704_v33 = vsub.f32 0.0, %v3548_v1  ;;  %v3844_v11 = vmul.f32 1.442695, %v3699_v6 }
 0x48b   : > { %v5702_v49 = vpop.eup %5701  ;;  %5727 = vrcp.f32 %v4069_v19  ;;  %v4070_v63 = vadd.f32 1.0, %v5700_v16  ;;  %v3553_v48 = vpop.f32.mrf.mxu0  ;;  %v3361_v53 = vadd.f32 %v3360_v22, %v7655_v13  ;;  %v3848_v47 = vmul.f32 1.442695, %v3701_v21 }
 0x48c   : > { %v5704_v50 = vpop.eup %5703  ;;  %v4072_v2 = vadd.f32 1.0, %v5702_v49  ;;  %5729 = vpow2.f32 %v3840_v9  ;;  %v3362_v0 = vpop.f32.mrf.mxu1  ;;  %v3554_v12 = vadd.f32 %v3553_v48, %v7657_v30  ;;  %v3703_v42 = vsub.f32 0.0, %v3357_v51 }
 0x48d   : > { %v5706_v14 = vpop.eup %5705  ;;  %5731 = vrcp.f32 %v4070_v63  ;;  %v4071_v55 = vadd.f32 1.0, %v5704_v50  ;;  %v3555_v26 = vpop.f32.mrf.mxu0  ;;  %v3363_v23 = vadd.f32 %v3362_v0, %v7660_v35  ;;  %v3850_v60 = vmul.f32 1.442695, %v3702_v39 }
 0x48e   : > { %v5708_v61 = vpop.eup %5707  ;;  %5733 = vrcp.f32 %v4072_v2  ;;  %v4073_v45 = vadd.f32 1.0, %v5706_v14  ;;  %v3364_v18 = vpop.f32.mrf.mxu1  ;;  %v3705_v38 = vsub.f32 0.0, %v3550_v25  ;;  %v3556_v9 = vadd.f32 %v3555_v26, %v7662_v41 }
 0x48f   : > { %v5710_v24 = vpop.eup %5709  ;;  %5735 = vrcp.f32 %v4071_v55  ;;  %v4074_v40 = vadd.f32 1.0, %v5708_v61  ;;  %v3557_v46 = vpop.f32.mrf.mxu0  ;;  %v3854_v44 = vmul.f32 1.442695, %v3704_v33  ;;  %v3706_v16 = vsub.f32 0.0, %v3361_v53 }
 0x490   : > { %v5712_v59 = vpop.eup %5711  ;;  %5737 = vrcp.f32 %v4073_v45  ;;  %v4076_v52 = vadd.f32 1.0, %v5710_v24  ;;  %v3366_v20 = vpop.f32.mrf.mxu1  ;;  %v3365_v3 = vadd.f32 %v3364_v18, %v7655_v13  ;;  %v3708_v8 = vsub.f32 0.0, %v3554_v12 }
 0x491   : > { %v5714_v37 = vpop.eup %5713  ;;  %5739 = vrcp.f32 %v4074_v40  ;;  %v4075_v43 = vadd.f32 1.0, %v5712_v59  ;;  %v3558_v50 = vadd.f32 %v3557_v46, %v7657_v30  ;;  %v3852_v22 = vmul.f32 1.442695, %v3703_v42  ;;  %v3559_v28 = vpop.f32.mrf.mxu0 }
 0x492   : > { %v5716_v62 = vpop.eup %5715  ;;  %5741 = vrcp.f32 %v4076_v52  ;;  %v4077_v32 = vadd.f32 1.0, %v5714_v37  ;;  %v3707_v14 = vsub.f32 0.0, %v3363_v23  ;;  %v3367_v55 = vadd.f32 %v3366_v20, %v7660_v35  ;;  %v3370_v58 = vpop.f32.mrf.mxu1 }
 0x493   : > { %v5718_v34 = vpop.eup %5717  ;;  %5743 = vrcp.f32 %v4075_v43  ;;  %v4078_v17 = vadd.f32 1.0, %v5716_v62  ;;  %v3856_v45 = vmul.f32 1.442695, %v3705_v38  ;;  %v3709_v27 = vsub.f32 0.0, %v3556_v9  ;;  %v3563_v43 = vpop.f32.mrf.mxu0 }
 0x494   : > { %v5720_v36 = vpop.eup %5719  ;;  %5745 = vrcp.f32 %v4077_v32  ;;  %v4080_v4 = vadd.f32 1.0, %v5718_v34  ;;  %v3858_v40 = vmul.f32 1.442695, %v3706_v16  ;;  %v3710_v15 = vsub.f32 0.0, %v3365_v3  ;;  %v3372_v32 = vpop.f32.mrf.mxu1 }
 0x495   : > { %v5722_v56 = vpop.eup %5721  ;;  %5747 = vrcp.f32 %v4078_v17  ;;  %v4079_v5 = vadd.f32 1.0, %v5720_v36  ;;  %v3862_v59 = vmul.f32 1.442695, %v3708_v8  ;;  %v3712_v52 = vsub.f32 0.0, %v3558_v50  ;;  %v3565_v26 = vpop.f32.mrf.mxu0 }
 0x496   : > { %v5724_v10 = vpop.eup %5723  ;;  %4322 = vst [vmem:[%s7691_s23] sm:$0xff] %v5722_v56  ;;  %5749 = vrcp.f32 %v4080_v4  ;;  %v3860_v0 = vmul.f32 1.442695, %v3707_v14  ;;  %v3711_v37 = vsub.f32 0.0, %v3367_v55  ;;  %v3864_v1 = vmul.f32 1.442695, %v3709_v27  ;;  %v3374_v39 = vpop.f32.mrf.mxu1 }
 0x497   : > { %v5726_v57 = vpop.eup %5725  ;;  %4324 = vst [vmem:[%s7691_s23 + $0x10] sm:$0xff] %v5724_v10  ;;  %5751 = vrcp.f32 %v4079_v5  ;;  %v3560_v62 = vadd.f32 %v3559_v28, %v7662_v41  ;;  %v3866_v6 = vmul.f32 1.442695, %v3710_v15  ;;  %v3870_v17 = vmul.f32 1.442695, %v3712_v52  ;;  %v3567_v53 = vpop.f32.mrf.mxu0 }
 0x498   : > { %v5728_v7 = vpop.eup %5727  ;;  %4323 = vst [vmem:[%s7691_s23 + $0x8] sm:$0xff] %v5726_v57  ;;  %5753 = vpow2.f32 %v3842_v31  ;;  %v3868_v51 = vmul.f32 1.442695, %v3711_v37  ;;  %v3376_v57 = vpop.f32.mrf.mxu1  ;;  %v3371_v23 = vadd.f32 %v3370_v58, %v7655_v13  ;;  %v3566_v55 = vadd.f32 %v3565_v26, %v7662_v41 }
 0x499   : > { %v5730_v19 = vpop.eup %5729  ;;  %4325 = vst [vmem:[%s7691_s23 + $0x18] sm:$0xff] %v5728_v7  ;;  %5755 = vpow2.f32 %v3846_v54  ;;  %v3713_v4 = vsub.f32 0.0, %v3560_v62  ;;  %v3564_v7 = vadd.f32 %v3563_v43, %v7657_v30  ;;  %v3569_v9 = vpop.f32.mrf.mxu0  ;;  %v3375_v27 = vadd.f32 %v3374_v39, %v7655_v13 }
 0x49a   : > { %v5732_v49 = vpop.eup %5731  ;;  %v4081_v63 = vadd.f32 1.0, %v5730_v19  ;;  %5757 = vpow2.f32 %v3844_v11 }
 0x49b   : > { %v5734_v2 = vpop.eup %5733  ;;  %4326 = vst [vmem:[%s7691_s23 + $0x20] sm:$0xff] %v5732_v49  ;;  %5759 = vpow2.f32 %v3848_v47  ;;  %v3872_v12 = vmul.f32 1.442695, %v3713_v4  ;;  %v3714_v49 = vsub.f32 0.0, %v3371_v23  ;;  %v3716_v50 = vsub.f32 0.0, %v3564_v7  ;;  %v3573_v28 = vpop.f32.mrf.mxu0 }
 0x49c   : > { %v5736_v61 = vpop.eup %5735  ;;  %4328 = vst [vmem:[%s7691_s23 + $0x30] sm:$0xff] %v5734_v2  ;;  %5761 = vrcp.f32 %v4081_v63  ;;  %v3373_v2 = vadd.f32 %v3372_v32, %v7660_v35 }
 0x49d   : > { %v5738_v24 = vpop.eup %5737  ;;  %4327 = vst [vmem:[%s7691_s23 + $0x28] sm:$0xff] %v5736_v61  ;;  %5763 = vpow2.f32 %v3850_v60  ;;  %v3874_v15 = vmul.f32 1.442695, %v3714_v49  ;;  %v3575_v62 = vpop.f32.mrf.mxu0 }
 0x49e   : > { %v5740_v48 = vpop.eup %5739  ;;  %4329 = vst [vmem:[%s7691_s23 + $0x38] sm:$0xff] %v5738_v24  ;;  %5765 = vpow2.f32 %v3854_v44  ;;  %v3380_v44 = vpop.f32.mrf.mxu1 }
 0x49f   : > { %v5742_v29 = vpop.eup %5741  ;;  %4330 = vst [vmem:[%s7691_s23 + $0x40] sm:$0xff] %v5740_v48  ;;  %5767 = vpow2.f32 %v3852_v22  ;;  %v3568_v48 = vadd.f32 %v3567_v53, %v7657_v30  ;;  %v3577_v53 = vpop.f32.mrf.mxu0 }
 0x4a0   : > { %v5744_v31 = vpop.eup %5743  ;;  %4332 = vst [vmem:[%s7691_s23 + $0x50] sm:$0xff] %v5742_v29  ;;  %5769 = vpow2.f32 %v3856_v45  ;;  %v3382_v58 = vpop.f32.mrf.mxu1  ;;  %v3878_v29 = vmul.f32 1.442695, %v3716_v50 }
 0x4a1   : > { %v5746_v54 = vpop.eup %5745  ;;  %4331 = vst [vmem:[%s7691_s23 + $0x48] sm:$0xff] %v5744_v31  ;;  %5771 = vpow2.f32 %v3858_v40  ;;  %v3717_v31 = vsub.f32 0.0, %v3566_v55  ;;  %v3720_v26 = vsub.f32 0.0, %v3568_v48  ;;  %v3579_v49 = vpop.f32.mrf.mxu0 }
 0x4a2   : > { %v5748_v34 = vpop.eup %5747  ;;  %4333 = vst [vmem:[%s7691_s23 + $0x58] sm:$0xff] %v5746_v54  ;;  %5773 = vpow2.f32 %v3862_v59 }
 0x4a3   : > { %v5750_v21 = vpop.eup %5749  ;;  %4334 = vst [vmem:[%s7691_s23 + $0x60] sm:$0xff] %v5748_v34  ;;  %5775 = vpow2.f32 %v3860_v0  ;;  %v3715_v0 = vsub.f32 0.0, %v3373_v2  ;;  %v3570_v34 = vadd.f32 %v3569_v9, %v7662_v41  ;;  %v3886_v23 = vmul.f32 1.442695, %v3720_v26 }
 0x4a4   : > { %v5752_v36 = vpop.eup %5751  ;;  %4336 = vst [vmem:[%s7691_s23 + $0x70] sm:$0xff] %v5750_v21  ;;  %5777 = vpow2.f32 %v3864_v1  ;;  %v3377_v1 = vadd.f32 %v3376_v57, %v7660_v35  ;;  %v3576_v57 = vadd.f32 %v3575_v62, %v7662_v41 }
 0x4a5   : > { %v5754_v25 = vpop.eup %5753  ;;  %4335 = vst [vmem:[%s7691_s23 + $0x68] sm:$0xff] %v5752_v36  ;;  %5779 = vpow2.f32 %v3866_v6  ;;  %v3718_v6 = vsub.f32 0.0, %v3375_v27  ;;  %v3381_v36 = vadd.f32 %v3380_v44, %v7655_v13  ;;  %v3876_v39 = vmul.f32 1.442695, %v3715_v0 }
 0x4a6   : > { %v5756_v18 = vpop.eup %5755  ;;  %v4082_v56 = vadd.f32 1.0, %v5754_v25  ;;  %5781 = vpow2.f32 %v3870_v17  ;;  %v3384_v17 = vpop.f32.mrf.mxu1  ;;  %v3574_v25 = vadd.f32 %v3573_v28, %v7657_v30  ;;  %v3725_v50 = vsub.f32 0.0, %v3576_v57 }
 0x4a7   : > { %v5758_v5 = vpop.eup %5757  ;;  %v4084_v33 = vadd.f32 1.0, %v5756_v18  ;;  %5783 = vpow2.f32 %v3868_v51  ;;  %v3385_v7 = vadd.f32 %v3384_v17, %v7655_v13 }
 0x4a8   : > { %v5760_v10 = vpop.eup %5759  ;;  %5785 = vrcp.f32 %v4082_v56  ;;  %v4083_v11 = vadd.f32 1.0, %v5758_v5  ;;  %v3880_v56 = vmul.f32 1.442695, %v3717_v31  ;;  %v3719_v5 = vsub.f32 0.0, %v3377_v1 }
 0x4a9   : > { %v5762_v47 = vpop.eup %5761  ;;  %5787 = vrcp.f32 %v4084_v33  ;;  %v4085_v42 = vadd.f32 1.0, %v5760_v10  ;;  %v3383_v33 = vadd.f32 %v3382_v58, %v7660_v35  ;;  %v3724_v9 = vsub.f32 0.0, %v3574_v25 }
 0x4aa   : > { %v5764_v46 = vpop.eup %5763  ;;  %4337 = vst [vmem:[%s7691_s23 + $0x78] sm:$0xff] %v5762_v47  ;;  %5789 = vrcp.f32 %v4083_v11  ;;  %v3882_v11 = vmul.f32 1.442695, %v3718_v6  ;;  %v3386_v47 = vpop.f32.mrf.mxu1  ;;  %v3884_v44 = vmul.f32 1.442695, %v3719_v5  ;;  %v3726_v55 = vsub.f32 0.0, %v3385_v7 }
 0x4ab   : > { %v5766_v60 = vpop.eup %5765  ;;  %5791 = vrcp.f32 %v4085_v42  ;;  %v4086_v38 = vadd.f32 1.0, %v5764_v46  ;;  %v3722_v46 = vsub.f32 0.0, %v3381_v36  ;;  %v3896_v48 = vmul.f32 1.442695, %v3725_v50 }
 0x4ac   : > { %v5768_v20 = vpop.eup %5767  ;;  %v4088_v19 = vadd.f32 1.0, %v5766_v60  ;;  %5793 = vpow2.f32 %v3872_v12  ;;  %v3721_v12 = vsub.f32 0.0, %v3570_v34  ;;  %v3390_v2 = vpop.f32.mrf.mxu1  ;;  %v3898_v0 = vmul.f32 1.442695, %v3726_v55 }
 0x4ad   : > { %v5770_v16 = vpop.eup %5769  ;;  %5795 = vrcp.f32 %v4086_v38  ;;  %v4087_v3 = vadd.f32 1.0, %v5768_v20  ;;  %v3578_v20 = vadd.f32 %v3577_v53, %v7657_v30  ;;  %v3391_v53 = vadd.f32 %v3390_v2, %v7655_v13 }
 0x4ae   : > { %v5772_v63 = vpop.eup %5771  ;;  %5797 = vrcp.f32 %v4088_v19  ;;  %v4089_v8 = vadd.f32 1.0, %v5770_v16  ;;  %v3723_v16 = vsub.f32 0.0, %v3383_v33 }
 0x4af   : > { %v5774_v22 = vpop.eup %5773  ;;  %5799 = vrcp.f32 %v4087_v3  ;;  %v4090_v14 = vadd.f32 1.0, %v5772_v63  ;;  %v3387_v3 = vadd.f32 %v3386_v47, %v7660_v35 }
 0x4b0   : > { %v5776_v61 = vpop.eup %5775  ;;  %5801 = vrcp.f32 %v4089_v8  ;;  %v4092_v45 = vadd.f32 1.0, %v5774_v22  ;;  %v3888_v8 = vmul.f32 1.442695, %v3721_v12  ;;  %v3892_v58 = vmul.f32 1.442695, %v3723_v16 }
 0x4b1   : > { %v5778_v24 = vpop.eup %5777  ;;  %5803 = vrcp.f32 %v4090_v14  ;;  %v4091_v40 = vadd.f32 1.0, %v5776_v61  ;;  %v3890_v14 = vmul.f32 1.442695, %v3722_v46  ;;  %v3894_v61 = vmul.f32 1.442695, %v3724_v9 }
 0x4b2   : > { %v5780_v59 = vpop.eup %5779  ;;  %5805 = vrcp.f32 %v4092_v45  ;;  %v4093_v52 = vadd.f32 1.0, %v5778_v24  ;;  %v3728_v45 = vsub.f32 0.0, %v3578_v20  ;;  %v3727_v24 = vsub.f32 0.0, %v3387_v3 }
 0x4b3   : > { %v5782_v37 = vpop.eup %5781  ;;  %5807 = vrcp.f32 %v4091_v40  ;;  %v4094_v43 = vadd.f32 1.0, %v5780_v59  ;;  %v3583_v40 = vpop.f32.mrf.mxu0  ;;  %v3580_v59 = vadd.f32 %v3579_v49, %v7662_v41  ;;  %v3730_v20 = vsub.f32 0.0, %v3391_v53 }
 0x4b4   : > { %v5784_v32 = vpop.eup %5783  ;;  %5809 = vrcp.f32 %v4093_v52  ;;  %v4096_v54 = vadd.f32 1.0, %v5782_v37  ;;  %v3392_v52 = vpop.f32.mrf.mxu1  ;;  %v3900_v1 = vmul.f32 1.442695, %v3727_v24 }
 0x4b5   : > { %v5786_v21 = vpop.eup %5785  ;;  %5811 = vrcp.f32 %v4094_v43  ;;  %v4095_v51 = vadd.f32 1.0, %v5784_v32  ;;  %v3902_v43 = vmul.f32 1.442695, %v3728_v45  ;;  %v3585_v62 = vpop.f32.mrf.mxu0 }
 0x4b6   : > { %v5788_v4 = vpop.eup %5787  ;;  %4338 = vst [vmem:[%s7691_s23 + $0x80] sm:$0xff] %v5786_v21  ;;  %5813 = vrcp.f32 %v4096_v54  ;;  %v3729_v54 = vsub.f32 0.0, %v3580_v59  ;;  %v3394_v6 = vpop.f32.mrf.mxu1  ;;  %v3586_v3 = vadd.f32 %v3585_v62, %v7662_v41 }
 0x4b7   : > { %v5790_v18 = vpop.eup %5789  ;;  %4340 = vst [vmem:[%s7691_s23 + $0x90] sm:$0xff] %v5788_v4  ;;  %5815 = vrcp.f32 %v4095_v51  ;;  %v3587_v36 = vpop.f32.mrf.mxu0  ;;  %v3395_v50 = vadd.f32 %v3394_v6, %v7655_v13 }
 0x4b8   : > { %v5792_v10 = vpop.eup %5791  ;;  %4339 = vst [vmem:[%s7691_s23 + $0x88] sm:$0xff] %v5790_v18  ;;  %5817 = vpow2.f32 %v3874_v15  ;;  %v3904_v25 = vmul.f32 1.442695, %v3729_v54  ;;  %v3396_v18 = vpop.f32.mrf.mxu1 }
 0x4b9   : > { %v5794_v42 = vpop.eup %5793  ;;  %4341 = vst [vmem:[%s7691_s23 + $0x98] sm:$0xff] %v5792_v10  ;;  %5819 = vpow2.f32 %v3878_v29  ;;  %v3584_v10 = vadd.f32 %v3583_v40, %v7657_v30  ;;  %v3589_v57 = vpop.f32.mrf.mxu0 }
 0x4ba   : > { %v5796_v60 = vpop.eup %5795  ;;  %v4097_v38 = vadd.f32 1.0, %v5794_v42  ;;  %5821 = vpow2.f32 %v3876_v39 }
 0x4bb   : > { %v5798_v19 = vpop.eup %5797  ;;  %4342 = vst [vmem:[%s7691_s23 + $0xa0] sm:$0xff] %v5796_v60  ;;  %5823 = vpow2.f32 %v3880_v56  ;;  %v3393_v60 = vadd.f32 %v3392_v52, %v7660_v35  ;;  %v3593_v49 = vpop.f32.mrf.mxu0 }
 0x4bc   : > { %v5800_v63 = vpop.eup %5799  ;;  %4344 = vst [vmem:[%s7691_s23 + $0xb0] sm:$0xff] %v5798_v19  ;;  %5825 = vrcp.f32 %v4097_v38  ;;  %v3732_v19 = vsub.f32 0.0, %v3584_v10 }
 0x4bd   : > { %v5802_v22 = vpop.eup %5801  ;;  %4343 = vst [vmem:[%s7691_s23 + $0xa8] sm:$0xff] %v5800_v63  ;;  %5827 = vpow2.f32 %v3882_v11  ;;  %v3731_v55 = vsub.f32 0.0, %v3393_v60  ;;  %v3595_v59 = vpop.f32.mrf.mxu0 }
 0x4be   : > { %v5804_v28 = vpop.eup %5803  ;;  %4345 = vst [vmem:[%s7691_s23 + $0xb8] sm:$0xff] %v5802_v22  ;;  %5829 = vpow2.f32 %v3886_v23  ;;  %v3400_v23 = vpop.f32.mrf.mxu1 }
 0x4bf   : > { %v5806_v27 = vpop.eup %5805  ;;  %4346 = vst [vmem:[%s7691_s23 + $0xc0] sm:$0xff] %v5804_v28  ;;  %5831 = vpow2.f32 %v3884_v44  ;;  %v3588_v28 = vadd.f32 %v3587_v36, %v7657_v30  ;;  %v3908_v6 = vmul.f32 1.442695, %v3731_v55  ;;  %v3597_v36 = vpop.f32.mrf.mxu0 }
 0x4c0   : > { %v5808_v15 = vpop.eup %5807  ;;  %4348 = vst [vmem:[%s7691_s23 + $0xd0] sm:$0xff] %v5806_v27  ;;  %5833 = vpow2.f32 %v3888_v8  ;;  %v3402_v2 = vpop.f32.mrf.mxu1  ;;  %v3906_v27 = vmul.f32 1.442695, %v3730_v20 }
 0x4c1   : > { %v5810_v29 = vpop.eup %5809  ;;  %4347 = vst [vmem:[%s7691_s23 + $0xc8] sm:$0xff] %v5808_v15  ;;  %5835 = vpow2.f32 %v3890_v14  ;;  %v3733_v15 = vsub.f32 0.0, %v3586_v3  ;;  %v3736_v62 = vsub.f32 0.0, %v3588_v28  ;;  %v3599_v60 = vpop.f32.mrf.mxu0 }
 0x4c2   : > { %v5812_v37 = vpop.eup %5811  ;;  %4349 = vst [vmem:[%s7691_s23 + $0xd8] sm:$0xff] %v5810_v29  ;;  %5837 = vpow2.f32 %v3894_v61 }
 0x4c3   : > { %v5814_v31 = vpop.eup %5813  ;;  %4350 = vst [vmem:[%s7691_s23 + $0xe0] sm:$0xff] %v5812_v37  ;;  %5839 = vpow2.f32 %v3892_v58  ;;  %v3910_v58 = vmul.f32 1.442695, %v3732_v19  ;;  %v3590_v37 = vadd.f32 %v3589_v57, %v7662_v41 }
 0x4c4   : > { %v5816_v32 = vpop.eup %5815  ;;  %4352 = vst [vmem:[%s7691_s23 + $0xf0] sm:$0xff] %v5814_v31  ;;  %5841 = vpow2.f32 %v3896_v48  ;;  %v3397_v48 = vadd.f32 %v3396_v18, %v7660_v35  ;;  %v3596_v18 = vadd.f32 %v3595_v59, %v7662_v41 }
 0x4c5   : > { %v5818_v34 = vpop.eup %5817  ;;  %4351 = vst [vmem:[%s7691_s23 + $0xe8] sm:$0xff] %v5816_v32  ;;  %5843 = vpow2.f32 %v3898_v0  ;;  %v3734_v0 = vsub.f32 0.0, %v3395_v50  ;;  %v3401_v32 = vadd.f32 %v3400_v23, %v7655_v13 }
 0x4c6   : > { %v5820_v17 = vpop.eup %5819  ;;  %v4098_v21 = vadd.f32 1.0, %v5818_v34  ;;  %5845 = vpow2.f32 %v3902_v43  ;;  %v3404_v43 = vpop.f32.mrf.mxu1  ;;  %v3594_v34 = vadd.f32 %v3593_v49, %v7657_v30  ;;  %v3741_v20 = vsub.f32 0.0, %v3596_v18 }
 0x4c7   : > { %v5822_v51 = vpop.eup %5821  ;;  %v4100_v26 = vadd.f32 1.0, %v5820_v17  ;;  %5847 = vpow2.f32 %v3900_v1  ;;  %v3738_v53 = vsub.f32 0.0, %v3401_v32  ;;  %v3405_v10 = vadd.f32 %v3404_v43, %v7655_v13 }
 0x4c8   : > { %v5824_v4 = vpop.eup %5823  ;;  %5849 = vrcp.f32 %v4098_v21  ;;  %v4099_v39 = vadd.f32 1.0, %v5822_v51  ;;  %v3912_v21 = vmul.f32 1.442695, %v3733_v15  ;;  %v3735_v51 = vsub.f32 0.0, %v3397_v48 }
 0x4c9   : > { %v5826_v56 = vpop.eup %5825  ;;  %5851 = vrcp.f32 %v4100_v26  ;;  %v4101_v5 = vadd.f32 1.0, %v5824_v4  ;;  %v3403_v26 = vadd.f32 %v3402_v2, %v7660_v35  ;;  %v3740_v57 = vsub.f32 0.0, %v3594_v34 }
 0x4ca   : > { %v5828_v33 = vpop.eup %5827  ;;  %4353 = vst [vmem:[%s7691_s23 + $0xf8] sm:$0xff] %v5826_v56  ;;  %5853 = vrcp.f32 %v4099_v39  ;;  %v3914_v39 = vmul.f32 1.442695, %v3734_v0  ;;  %v3406_v56 = vpop.f32.mrf.mxu1  ;;  %v3916_v23 = vmul.f32 1.442695, %v3735_v51  ;;  %v3742_v3 = vsub.f32 0.0, %v3405_v10 }
 0x4cb   : > { %v5830_v11 = vpop.eup %5829  ;;  %5855 = vrcp.f32 %v4101_v5  ;;  %v4102_v12 = vadd.f32 1.0, %v5828_v33  ;;  %v3918_v33 = vmul.f32 1.442695, %v3736_v62  ;;  %v3928_v28 = vmul.f32 1.442695, %v3741_v20 }
 0x4cc   : > { %v5832_v47 = vpop.eup %5831  ;;  %v4104_v42 = vadd.f32 1.0, %v5830_v11  ;;  %5857 = vpow2.f32 %v3904_v25  ;;  %v3737_v25 = vsub.f32 0.0, %v3590_v37  ;;  %v3410_v19 = vpop.f32.mrf.mxu1 }
 0x4cd   : > { %v5834_v46 = vpop.eup %5833  ;;  %5859 = vrcp.f32 %v4102_v12  ;;  %v4103_v7 = vadd.f32 1.0, %v5832_v47  ;;  %v3598_v47 = vadd.f32 %v3597_v36, %v7657_v30  ;;  %v3411_v36 = vadd.f32 %v3410_v19, %v7655_v13 }
 0x4ce   : > { %v5836_v38 = vpop.eup %5835  ;;  %5861 = vrcp.f32 %v4104_v42  ;;  %v4105_v9 = vadd.f32 1.0, %v5834_v46  ;;  %v3739_v46 = vsub.f32 0.0, %v3403_v26 }
 0x4cf   : > { %v5838_v44 = vpop.eup %5837  ;;  %5863 = vrcp.f32 %v4103_v7  ;;  %v4106_v16 = vadd.f32 1.0, %v5836_v38  ;;  %v3407_v7 = vadd.f32 %v3406_v56, %v7660_v35 }
 0x4d0   : > { %v5840_v63 = vpop.eup %5839  ;;  %5865 = vrcp.f32 %v4105_v9  ;;  %v4108_v8 = vadd.f32 1.0, %v5838_v44  ;;  %v3920_v9 = vmul.f32 1.442695, %v3737_v25  ;;  %v3924_v2 = vmul.f32 1.442695, %v3739_v46 }
 0x4d1   : > { %v5842_v22 = vpop.eup %5841  ;;  %5867 = vrcp.f32 %v4106_v16  ;;  %v4107_v14 = vadd.f32 1.0, %v5840_v63  ;;  %v3922_v16 = vmul.f32 1.442695, %v3738_v53  ;;  %v3926_v63 = vmul.f32 1.442695, %v3740_v57 }
 0x4d2   : > { %v5844_v61 = vpop.eup %5843  ;;  %5869 = vrcp.f32 %v4108_v8  ;;  %v4109_v45 = vadd.f32 1.0, %v5842_v22  ;;  %v3744_v8 = vsub.f32 0.0, %v3598_v47  ;;  %v3743_v22 = vsub.f32 0.0, %v3407_v7 }
 0x4d3   : > { %v5846_v24 = vpop.eup %5845  ;;  %5871 = vrcp.f32 %v4107_v14  ;;  %v4110_v40 = vadd.f32 1.0, %v5844_v61  ;;  %v3603_v14 = vpop.f32.mrf.mxu0  ;;  %v3600_v61 = vadd.f32 %v3599_v60, %v7662_v41  ;;  %v3746_v47 = vsub.f32 0.0, %v3411_v36 }
 0x4d4   : > { %v5848_v52 = vpop.eup %5847  ;;  %5873 = vrcp.f32 %v4109_v45  ;;  %v4112_v29 = vadd.f32 1.0, %v5846_v24  ;;  %v3412_v45 = vpop.f32.mrf.mxu1  ;;  %v3932_v48 = vmul.f32 1.442695, %v3743_v22 }
 0x4d5   : > { %v5850_v31 = vpop.eup %5849  ;;  %5875 = vrcp.f32 %v4110_v40  ;;  %v4111_v1 = vadd.f32 1.0, %v5848_v52  ;;  %v3934_v40 = vmul.f32 1.442695, %v3744_v8  ;;  %v3605_v59 = vpop.f32.mrf.mxu0 }
 0x4d6   : > { %v5852_v54 = vpop.eup %5851  ;;  %4354 = vst [vmem:[%s7691_s23 + $0x100] sm:$0xff] %v5850_v31  ;;  %5877 = vrcp.f32 %v4112_v29  ;;  %v3745_v29 = vsub.f32 0.0, %v3600_v61  ;;  %v3414_v0 = vpop.f32.mrf.mxu1  ;;  %v3606_v7 = vadd.f32 %v3605_v59, %v7662_v41 }
 0x4d7   : > { %v5854_v17 = vpop.eup %5853  ;;  %4356 = vst [vmem:[%s7691_s23 + $0x110] sm:$0xff] %v5852_v54  ;;  %5879 = vrcp.f32 %v4111_v1  ;;  %v3607_v32 = vpop.f32.mrf.mxu0 }
 0x4d8   : > { %v5856_v4 = vpop.eup %5855  ;;  %4355 = vst [vmem:[%s7691_s23 + $0x108] sm:$0xff] %v5854_v17  ;;  %5881 = vpow2.f32 %v3906_v27  ;;  %v3936_v34 = vmul.f32 1.442695, %v3745_v29  ;;  %v3416_v17 = vpop.f32.mrf.mxu1 }
 0x4d9   : > { %v5858_v5 = vpop.eup %5857  ;;  %4357 = vst [vmem:[%s7691_s23 + $0x118] sm:$0xff] %v5856_v4  ;;  %5883 = vpow2.f32 %v3910_v58  ;;  %v3930_v58 = vmul.f32 1.442695, %v3742_v3  ;;  %v3604_v4 = vadd.f32 %v3603_v14, %v7657_v30  ;;  %v3609_v18 = vpop.f32.mrf.mxu0  ;;  %v3415_v3 = vadd.f32 %v3414_v0, %v7655_v13 }
 0x4da   : > { %v5860_v11 = vpop.eup %5859  ;;  %v4113_v12 = vadd.f32 1.0, %v5858_v5  ;;  %5885 = vpow2.f32 %v3908_v6  ;;  %v3420_v53 = vpop.f32.mrf.mxu1 }
 0x4db   : > { %v5862_v42 = vpop.eup %5861  ;;  %4358 = vst [vmem:[%s7691_s23 + $0x120] sm:$0xff] %v5860_v11  ;;  %5887 = vpow2.f32 %v3912_v21  ;;  %v3613_v60 = vpop.f32.mrf.mxu0  ;;  %v3750_v59 = vsub.f32 0.0, %v3415_v3 }
 0x4dc   : > { %v5864_v38 = vpop.eup %5863  ;;  %4360 = vst [vmem:[%s7691_s23 + $0x130] sm:$0xff] %v5862_v42  ;;  %5889 = vrcp.f32 %v4113_v12  ;;  %v3748_v42 = vsub.f32 0.0, %v3604_v4  ;;  %v3422_v19 = vpop.f32.mrf.mxu1 }
 0x4dd   : > { %v5866_v44 = vpop.eup %5865  ;;  %4359 = vst [vmem:[%s7691_s23 + $0x128] sm:$0xff] %v5864_v38  ;;  %5891 = vpow2.f32 %v3914_v39  ;;  %v3615_v61 = vpop.f32.mrf.mxu0 }
 0x4de   : > { %v5868_v49 = vpop.eup %5867  ;;  %4361 = vst [vmem:[%s7691_s23 + $0x138] sm:$0xff] %v5866_v44  ;;  %5893 = vpow2.f32 %v3918_v33  ;;  %v3413_v33 = vadd.f32 %v3412_v45, %v7660_v35 }
 0x4df   : > { %v5870_v50 = vpop.eup %5869  ;;  %4362 = vst [vmem:[%s7691_s23 + $0x140] sm:$0xff] %v5868_v49  ;;  %5895 = vpow2.f32 %v3916_v23  ;;  %v3608_v49 = vadd.f32 %v3607_v32, %v7657_v30  ;;  %v3617_v32 = vpop.f32.mrf.mxu0 }
 0x4e0   : > { %v5872_v55 = vpop.eup %5871  ;;  %4364 = vst [vmem:[%s7691_s23 + $0x150] sm:$0xff] %v5870_v50  ;;  %5897 = vpow2.f32 %v3920_v9  ;;  %v3747_v20 = vsub.f32 0.0, %v3413_v33  ;;  %v3938_v50 = vmul.f32 1.442695, %v3746_v47 }
 0x4e1   : > { %v5874_v27 = vpop.eup %5873  ;;  %4363 = vst [vmem:[%s7691_s23 + $0x148] sm:$0xff] %v5872_v55  ;;  %5899 = vpow2.f32 %v3922_v16  ;;  %v3749_v55 = vsub.f32 0.0, %v3606_v7 }
 0x4e2   : > { %v5876_v24 = vpop.eup %5875  ;;  %4365 = vst [vmem:[%s7691_s23 + $0x158] sm:$0xff] %v5874_v27  ;;  %5901 = vpow2.f32 %v3926_v63  ;;  %v3940_v0 = vmul.f32 1.442695, %v3747_v20 }
 0x4e3   : > { %v5878_v15 = vpop.eup %5877  ;;  %4366 = vst [vmem:[%s7691_s23 + $0x160] sm:$0xff] %v5876_v24  ;;  %5903 = vpow2.f32 %v3924_v2  ;;  %v3942_v2 = vmul.f32 1.442695, %v3748_v42  ;;  %v3421_v24 = vadd.f32 %v3420_v53, %v7655_v13 }
 0x4e4   : > { %v5880_v52 = vpop.eup %5879  ;;  %4368 = vst [vmem:[%s7691_s23 + $0x170] sm:$0xff] %v5878_v15  ;;  %5905 = vpow2.f32 %v3928_v28  ;;  %v3417_v28 = vadd.f32 %v3416_v17, %v7660_v35  ;;  %v3616_v17 = vadd.f32 %v3615_v61, %v7662_v41 }
 0x4e5   : > { %v5882_v37 = vpop.eup %5881  ;;  %4367 = vst [vmem:[%s7691_s23 + $0x168] sm:$0xff] %v5880_v52  ;;  %5907 = vpow2.f32 %v3930_v58  ;;  %v3610_v58 = vadd.f32 %v3609_v18, %v7662_v41  ;;  %v3752_v52 = vsub.f32 0.0, %v3608_v49 }
 0x4e6   : > { %v5884_v43 = vpop.eup %5883  ;;  %v4114_v31 = vadd.f32 1.0, %v5882_v37  ;;  %5909 = vpow2.f32 %v3934_v40  ;;  %v3424_v40 = vpop.f32.mrf.mxu1  ;;  %v3614_v37 = vadd.f32 %v3613_v60, %v7657_v30  ;;  %v3757_v47 = vsub.f32 0.0, %v3616_v17 }
 0x4e7   : > { %v5886_v1 = vpop.eup %5885  ;;  %v4116_v62 = vadd.f32 1.0, %v5884_v43  ;;  %5911 = vpow2.f32 %v3932_v48  ;;  %v3950_v36 = vmul.f32 1.442695, %v3752_v52  ;;  %v3425_v4 = vadd.f32 %v3424_v40, %v7655_v13 }
 0x4e8   : > { %v5888_v54 = vpop.eup %5887  ;;  %5913 = vrcp.f32 %v4114_v31  ;;  %v4115_v6 = vadd.f32 1.0, %v5886_v1  ;;  %v3944_v31 = vmul.f32 1.442695, %v3749_v55  ;;  %v3751_v1 = vsub.f32 0.0, %v3417_v28 }
 0x4e9   : > { %v5890_v21 = vpop.eup %5889  ;;  %5915 = vrcp.f32 %v4116_v62  ;;  %v4117_v51 = vadd.f32 1.0, %v5888_v54  ;;  %v3423_v62 = vadd.f32 %v3422_v19, %v7660_v35  ;;  %v3756_v18 = vsub.f32 0.0, %v3614_v37 }
 0x4ea   : > { %v5892_v26 = vpop.eup %5891  ;;  %4369 = vst [vmem:[%s7691_s23 + $0x178] sm:$0xff] %v5890_v21  ;;  %5917 = vrcp.f32 %v4115_v6  ;;  %v3753_v6 = vsub.f32 0.0, %v3610_v58  ;;  %v3426_v21 = vpop.f32.mrf.mxu1  ;;  %v3948_v33 = vmul.f32 1.442695, %v3751_v1  ;;  %v3758_v7 = vsub.f32 0.0, %v3425_v4 }
 0x4eb   : > { %v5894_v39 = vpop.eup %5893  ;;  %5919 = vrcp.f32 %v4117_v51  ;;  %v4118_v25 = vadd.f32 1.0, %v5892_v26  ;;  %v3946_v26 = vmul.f32 1.442695, %v3750_v59  ;;  %v3755_v53 = vsub.f32 0.0, %v3423_v62 }
 0x4ec   : > { %v5896_v56 = vpop.eup %5895  ;;  %v4120_v5 = vadd.f32 1.0, %v5894_v39  ;;  %5921 = vpow2.f32 %v3936_v34  ;;  %v3754_v34 = vsub.f32 0.0, %v3421_v24  ;;  %v3430_v42 = vpop.f32.mrf.mxu1  ;;  %v3960_v49 = vmul.f32 1.442695, %v3757_v47 }
 0x4ed   : > { %v5898_v10 = vpop.eup %5897  ;;  %5923 = vrcp.f32 %v4118_v25  ;;  %v4119_v11 = vadd.f32 1.0, %v5896_v56  ;;  %v3618_v56 = vadd.f32 %v3617_v32, %v7657_v30  ;;  %v3956_v19 = vmul.f32 1.442695, %v3755_v53 }
 0x4ee   : > { %v5900_v12 = vpop.eup %5899  ;;  %5925 = vrcp.f32 %v4120_v5  ;;  %v4121_v57 = vadd.f32 1.0, %v5898_v10  ;;  %v3427_v10 = vadd.f32 %v3426_v21, %v7660_v35  ;;  %v7824_v62 = vadd.f32 %v3430_v42, %v7655_v13 }
 0x4ef   : > { %v5902_v23 = vpop.eup %5901  ;;  %5927 = vrcp.f32 %v4119_v11  ;;  %v4122_v46 = vadd.f32 1.0, %v5900_v12  ;;  %v3619_v11 = vpop.f32.mrf.mxu0 }
 0x4f0   : > { %v5904_v38 = vpop.eup %5903  ;;  %5929 = vrcp.f32 %v4121_v57  ;;  %v4124_v9 = vadd.f32 1.0, %v5902_v23  ;;  %v3952_v57 = vmul.f32 1.442695, %v3753_v6 }
 0x4f1   : > { %v5906_v44 = vpop.eup %5905  ;;  %5931 = vrcp.f32 %v4122_v46  ;;  %v4123_v16 = vadd.f32 1.0, %v5904_v38  ;;  %v3954_v46 = vmul.f32 1.442695, %v3754_v34  ;;  %v3958_v38 = vmul.f32 1.442695, %v3756_v18 }
 0x4f2   : > { %v5908_v63 = vpop.eup %5907  ;;  %5933 = vrcp.f32 %v4124_v9  ;;  %v4125_v8 = vadd.f32 1.0, %v5906_v44  ;;  %v3760_v9 = vsub.f32 0.0, %v3618_v56  ;;  %v3759_v44 = vsub.f32 0.0, %v3427_v10 }
 0x4f3   : > { %v5910_v22 = vpop.eup %5909  ;;  %5935 = vrcp.f32 %v4123_v16  ;;  %v4126_v14 = vadd.f32 1.0, %v5908_v63  ;;  %v3623_v16 = vpop.f32.mrf.mxu0  ;;  %v3620_v63 = vadd.f32 %v3619_v11, %v7662_v41 }
 0x4f4   : > { %v5912_v45 = vpop.eup %5911  ;;  %5937 = vrcp.f32 %v4125_v8  ;;  %v4128_v27 = vadd.f32 1.0, %v5910_v22  ;;  %v7806_v8 = vpop.f32.mrf.mxu1  ;;  %v3964_v28 = vmul.f32 1.442695, %v3759_v44 }
 0x4f5   : > { %v5914_v15 = vpop.eup %5913  ;;  %5939 = vrcp.f32 %v4126_v14  ;;  %v4127_v48 = vadd.f32 1.0, %v5912_v45  ;;  %v3966_v14 = vmul.f32 1.442695, %v3760_v9  ;;  %v7811_v61 = vpop.f32.mrf.mxu0 }
 0x4f6   : > { %v5916_v29 = vpop.eup %5915  ;;  %4370 = vst [vmem:[%s7691_s23 + $0x180] sm:$0xff] %v5914_v15  ;;  %5941 = vrcp.f32 %v4128_v27  ;;  %v3761_v27 = vsub.f32 0.0, %v3620_v63  ;;  %v7814_v58 = vpop.f32.mrf.mxu1 }
 0x4f7   : > { %v5918_v43 = vpop.eup %5917  ;;  %4372 = vst [vmem:[%s7691_s23 + $0x190] sm:$0xff] %v5916_v29  ;;  %5943 = vrcp.f32 %v4127_v48  ;;  %v7817_v52 = vpop.f32.mrf.mxu0 }
 0x4f8   : > { %v5920_v54 = vpop.eup %5919  ;;  %4371 = vst [vmem:[%s7691_s23 + $0x188] sm:$0xff] %v5918_v43  ;;  %5945 = vpow2.f32 %v3938_v50  ;;  %v3968_v37 = vmul.f32 1.442695, %v3761_v27  ;;  %v7819_v43 = vpop.f32.mrf.mxu1 }
 0x4f9   : > { %v5922_v51 = vpop.eup %5921  ;;  %4373 = vst [vmem:[%s7691_s23 + $0x198] sm:$0xff] %v5920_v54  ;;  %5947 = vpow2.f32 %v3942_v2  ;;  %v3962_v2 = vmul.f32 1.442695, %v3758_v7  ;;  %v7835_v54 = vadd.f32 %v3623_v16, %v7657_v30  ;;  %v7839_v17 = vpop.f32.mrf.mxu0 }
 0x4fa   : > { %v5924_v39 = vpop.eup %5923  ;;  %v4129_v25 = vadd.f32 1.0, %v5922_v51  ;;  %5949 = vpow2.f32 %v3940_v0 }
 0x4fb   : > { %v5926_v5 = vpop.eup %5925  ;;  %4374 = vst [vmem:[%s7691_s23 + $0x1a0] sm:$0xff] %v5924_v39  ;;  %5951 = vpow2.f32 %v3944_v31 }
 0x4fc   : > { %v5928_v12 = vpop.eup %5927  ;;  %4376 = vst [vmem:[%s7691_s23 + $0x1b0] sm:$0xff] %v5926_v5  ;;  %5953 = vrcp.f32 %v4129_v25 }
 0x4fd   : > { %v5930_v23 = vpop.eup %5929  ;;  %4375 = vst [vmem:[%s7691_s23 + $0x1a8] sm:$0xff] %v5928_v12  ;;  %5955 = vpow2.f32 %v3946_v26  ;;  %v7841_v26 = vpop.f32.mrf.mxu1 }
 0x4fe   : > { %v5932_v60 = vpop.eup %5931  ;;  %4377 = vst [vmem:[%s7691_s23 + $0x1b8] sm:$0xff] %v5930_v23  ;;  %5957 = vpow2.f32 %v3950_v36 }
 0x4ff   : > { %v5934_v20 = vpop.eup %5933  ;;  %4378 = vst [vmem:[%s7691_s23 + $0x1c0] sm:$0xff] %v5932_v60  ;;  %5959 = vpow2.f32 %v3948_v33 }
 0x500   : > { %v5936_v3 = vpop.eup %5935  ;;  %4380 = vst [vmem:[%s7691_s23 + $0x1d0] sm:$0xff] %v5934_v20  ;;  %5961 = vpow2.f32 %v3952_v57 }
 0x501   : > { %v5938_v50 = vpop.eup %5937  ;;  %4379 = vst [vmem:[%s7691_s23 + $0x1c8] sm:$0xff] %v5936_v3  ;;  %5963 = vpow2.f32 %v3954_v46 }
 0x502   : > { %v5940_v22 = vpop.eup %5939  ;;  %4381 = vst [vmem:[%s7691_s23 + $0x1d8] sm:$0xff] %v5938_v50  ;;  %5965 = vpow2.f32 %v3958_v38 }
 0x503   : > { %v5942_v55 = vpop.eup %5941  ;;  %4382 = vst [vmem:[%s7691_s23 + $0x1e0] sm:$0xff] %v5940_v22  ;;  %5967 = vpow2.f32 %v3956_v19 }
 0x504   : > { %v5944_v45 = vpop.eup %5943  ;;  %4384 = vst [vmem:[%s7691_s23 + $0x1f0] sm:$0xff] %v5942_v55  ;;  %5969 = vpow2.f32 %v3960_v49 }
 0x505   : > { %v5946_v24 = vpop.eup %5945  ;;  %4383 = vst [vmem:[%s7691_s23 + $0x1e8] sm:$0xff] %v5944_v45  ;;  %5971 = vpow2.f32 %v3962_v2 }
 0x506   : > { %v5948_v40 = vpop.eup %5947  ;;  %v4130_v15 = vadd.f32 1.0, %v5946_v24  ;;  %5973 = vpow2.f32 %v3966_v14 }
 0x507   : > { %v5950_v48 = vpop.eup %5949  ;;  %v4132_v59 = vadd.f32 1.0, %v5948_v40  ;;  %5975 = vpow2.f32 %v3964_v28 }
 0x508   : > { %v5952_v29 = vpop.eup %5951  ;;  %5977 = vrcp.f32 %v4130_v15  ;;  %v4131_v0 = vadd.f32 1.0, %v5950_v48 }
 0x509   : > { %v5954_v31 = vpop.eup %5953  ;;  %5979 = vrcp.f32 %v4132_v59  ;;  %v4133_v1 = vadd.f32 1.0, %v5952_v29 }
 0x50a   : > { %v5956_v32 = vpop.eup %5955  ;;  %4385 = vst [vmem:[%s7691_s23 + $0x1f8] sm:$0xff] %v5954_v31  ;;  %5981 = vrcp.f32 %v4131_v0 }
 0x50b   : > { %v5958_v6 = vpop.eup %5957  ;;  %5983 = vrcp.f32 %v4133_v1  ;;  %v4134_v34 = vadd.f32 1.0, %v5956_v32 }
 0x50c   : > { %v5960_v21 = vpop.eup %5959  ;;  %v4136_v51 = vadd.f32 1.0, %v5958_v6  ;;  %5985 = vpow2.f32 %v3968_v37 }
 0x50d   : > { %6404 = shalt.err (!%p6401_p8)
}
 0x50e   : > { %s6405_s15 = scalar_lea.hbm %s7831_s0, 4096  ;;  %s6409_s20 = scalar_lea.hbm %s8110_s13, 8192 }
 0x50f   : > { %p6406_p3 = scmp.ne.s32.totalorder %s7831_s0, %s6405_s15  ;;  %p6410_p2 = scmp.lt.s32.totalorder %s7831_s0, %s8110_s13 }
 0x510   : > { %p6411_p10 = scmp.lt.s32.totalorder %s6409_s20, %s6405_s15 }
 0x511   : > { %p6407_p7 = pnand %p6406_p3, %p8187_p5 }
 0x512   : > { %p6412_p0 = por %p6411_p10, %p6410_p2 }
 0x513   : > { %p6408_p12 = pneg %p6407_p7 }
 0x515   : > { %p6413_p13 = pnand %p6412_p0, %p6408_p12 }
 0x517   : > { %6416 = shalt.err (!%p6413_p13)
}
 0x518   : > { %s6546_s14 = smov 128   ;;  %s6547_s8 = smov 8   ;;  %v5962_v36 = vpop.eup %5961  ;;  %5987 = vrcp.f32 %v4134_v34  ;;  %v4135_v4 = vadd.f32 1.0, %v5960_v21  ;;  %v3762_v39 = vsub.f32 0.0, %v7824_v62  ;;  %v3764_v56 = vsub.f32 0.0, %v7835_v54  ;;  %v7881_v11 = vpop.f32.mrf.mxu0 }
 0x519   : > { %5279 = dma.vmem_to_hbm [thread:$0]  (%p8187_p5), %s7837_s17, 4096, %s7831_s0, %s7845_s22, %s6546_s14, %s6546_s14, %s6547_s8   ;;  %v5964_v25 = vpop.eup %5963  ;;  %5989 = vrcp.f32 %v4136_v51  ;;  %v4137_v18 = vadd.f32 1.0, %v5962_v36  ;;  %v7875_v5 = vadd.f32 %v7806_v8, %v7660_v35  ;;  %v7879_v10 = vadd.f32 %v7811_v61, %v7662_v41  ;;  %v7894_v42 = vpop.f32.mrf.mxu1 }
 0x51a   : > { %v5966_v33 = vpop.eup %5965  ;;  %5991 = vrcp.f32 %v4135_v4  ;;  %v4138_v53 = vadd.f32 1.0, %v5964_v25  ;;  %s8188_s2 = sld [smem:[#allocation45_spill]]  ;;  %v7892_v47 = vadd.f32 %v7814_v58, %v7655_v13  ;;  %s4571_s26 = sshll.u32 %s7275_s25, 4  ;;  %v3970_v7 = vmul.f32 1.442695, %v3762_v39  ;;  %s7901_s26 = int_to_ptr.vmem [resolvable:$true] %s4571_s26 }
 0x51b   : > { %v5968_v12 = vpop.eup %5967  ;;  %5993 = vrcp.f32 %v4137_v18  ;;  %v4140_v57 = vadd.f32 1.0, %v5966_v33  ;;  %v7899_v60 = vadd.f32 %v7817_v52, %v7657_v30  ;;  %v7903_v20 = vmul.f32 1.442695, %v3764_v56  ;;  %s6417_s25 = scalar_lea.vmem %s7901_s26, 4096 }
 0x51c   : > { %v5970_v23 = vpop.eup %5969  ;;  %5995 = vrcp.f32 %v4138_v53  ;;  %v4139_v46 = vadd.f32 1.0, %v5968_v12  ;;  %v3763_v19 = vsub.f32 0.0, %v7875_v5  ;;  %p6418_p9 = scmp.ne.s32.totalorder %s7901_s26, %s6417_s25 }
 0x51d   : > { %v5972_v38 = vpop.eup %5971  ;;  %5997 = vrcp.f32 %v4140_v57  ;;  %v4141_v9 = vadd.f32 1.0, %v5970_v23 }
 0x51e   : > { %p6419_p11 = pnand %p6418_p9, %p8187_p5 }
 0x520   : > { %s7888_s12 = scalar_lea.hbm %s8188_s2, %s4996_s6  ;;  %p6420_p1 = pneg %p6419_p11 }
 0x521   : > { %s6548_s6 = smov [#allocation17]  }
 0x522   : > { %s6421_s21 = sshll.u32 %s6548_s6, 4  ;;  %s6422_s21 = int_to_ptr.vmem [resolvable:$false] %s6421_s21 }
 0x523   : > { %s6423_s15 = scalar_lea.vmem %s6422_s21, 8192  ;;  %p6424_p4 = scmp.lt.s32.totalorder %s7901_s26, %s6422_s21 }
 0x524   : > { %p6425_p6 = scmp.lt.s32.totalorder %s6423_s15, %s6417_s25 }
 0x526   : > { %p6426_p8 = por %p6425_p6, %p6424_p4 }
 0x528   : > { %p6427_p3 = pnand %p6426_p8, %p6420_p1 }
 0x52a   : > { %6430 = shalt.err (!%p6427_p3)
}
 0x52b   : > { %s6431_s28 = scalar_lea.hbm %s7888_s12, 4096  ;;  %s6435_s24 = scalar_lea.hbm %s8188_s2, 8192 }
 0x52c   : > { %p6432_p7 = scmp.ne.s32.totalorder %s7888_s12, %s6431_s28  ;;  %p6436_p10 = scmp.lt.s32.totalorder %s7888_s12, %s8188_s2 }
 0x52d   : > { %p6437_p0 = scmp.lt.s32.totalorder %s6435_s24, %s6431_s28 }
 0x52e   : > { %p6433_p12 = pnand %p6432_p7, %p8187_p5 }
 0x52f   : > { %p6438_p13 = por %p6437_p0, %p6436_p10 }
 0x530   : > { %p6434_p2 = pneg %p6433_p12 }
 0x532   : > { %p6439_p9 = pnand %p6438_p13, %p6434_p2 }
 0x534   : > { %6442 = shalt.err (!%p6439_p9)
}
 0x535   : > { %5280 = dma.vmem_to_hbm [thread:$0]  (%p8187_p5), %s7901_s26, 4096, %s7888_s12, %s7845_s22, %s6546_s14, %s6546_s14, %s6547_s8   ;;  %v5974_v44 = vpop.eup %5973  ;;  %5999 = vrcp.f32 %v4139_v46  ;;  %v4142_v16 = vadd.f32 1.0, %v5972_v38  ;;  %v3765_v3 = vsub.f32 0.0, %v7879_v10  ;;  %v3437_v49 = vadd.f32 %v7819_v43, %v7660_v35  ;;  %v3635_v63 = vpop.f32.mrf.mxu0 }
 0x536   : > { %v5976_v8 = vpop.eup %5975  ;;  %6001 = vrcp.f32 %v4141_v9  ;;  %v4144_v50 = vadd.f32 1.0, %v5974_v44  ;;  %v3766_v2 = vsub.f32 0.0, %v7892_v47  ;;  %v3630_v22 = vadd.f32 %v7839_v17, %v7662_v41  ;;  %v3444_v14 = vpop.f32.mrf.mxu1  ;;  %s4995_s22 = sshll.u32 %s6648_s19, 14  ;;  %s4539_s14 = sshll.u32 %s7691_s23, 4  ;;  %s8051_s14 = int_to_ptr.vmem [resolvable:$true] %s4539_s14 }
 0x537   : > { %v5978_v55 = vpop.eup %5977  ;;  %6003 = vrcp.f32 %v4142_v16  ;;  %v4143_v28 = vadd.f32 1.0, %v5976_v8  ;;  %v3768_v61 = vsub.f32 0.0, %v7899_v60  ;;  %v3441_v45 = vadd.f32 %v7841_v26, %v7655_v13  ;;  %v3637_v52 = vpop.f32.mrf.mxu0  ;;  %s8189_s12 = sld [smem:[#allocation44_spill]]  ;;  %s4515_s25 = scalar_lea.sflag [#allocation4], %s6843_s18 }
 0x538   : > { %v5980_v27 = vpop.eup %5979  ;;  %4386 = vst [vmem:[%s7691_s23 + $0x200] sm:$0xff] %v5978_v55  ;;  %6005 = vrcp.f32 %v4144_v50  ;;  %v3972_v58 = vmul.f32 1.442695, %v3763_v19  ;;  %v3634_v24 = vadd.f32 %v7881_v11, %v7657_v30  ;;  %v3976_v15 = vmul.f32 1.442695, %v3765_v3  ;;  %v3446_v31 = vpop.f32.mrf.mxu1  ;;  %s6443_s6 = scalar_lea.vmem %s8051_s14, 16384 }
 0x539   : > { %v5982_v40 = vpop.eup %5981  ;;  %4388 = vst [vmem:[%s7691_s23 + $0x210] sm:$0xff] %v5980_v27  ;;  %6007 = vrcp.f32 %v4143_v28  ;;  %v3767_v48 = vsub.f32 0.0, %v3437_v49  ;;  %v3443_v59 = vadd.f32 %v7894_v42, %v7660_v35  ;;  %v3978_v0 = vmul.f32 1.442695, %v3766_v2  ;;  %v3639_v39 = vpop.f32.mrf.mxu0  ;;  %p6444_p11 = scmp.ne.s32.totalorder %s8051_s14, %s6443_s6  ;;  %s6549_s19 = smov [#allocation14]  }
 0x53a   : > { %v5984_v29 = vpop.eup %5983  ;;  %4387 = vst [vmem:[%s7691_s23 + $0x208] sm:$0xff] %v5982_v40  ;;  %6009 = vpow2.f32 %v3970_v7  ;;  %v3769_v37 = vsub.f32 0.0, %v3630_v22  ;;  %v3636_v43 = vadd.f32 %v3635_v63, %v7662_v41  ;;  %v3982_v62 = vmul.f32 1.442695, %v3768_v61  ;;  %v3450_v5 = vpop.f32.mrf.mxu1  ;;  %s6447_s21 = sshll.u32 %s6549_s19, 4  ;;  %s6448_s21 = int_to_ptr.vmem [resolvable:$false] %s6447_s21 }
 0x53b   : > { %v5986_v1 = vpop.eup %5985  ;;  %4389 = vst [vmem:[%s7691_s23 + $0x218] sm:$0xff] %v5984_v29  ;;  %6011 = vpow2.f32 %v7903_v20  ;;  %v3770_v32 = vsub.f32 0.0, %v3441_v45  ;;  %v3445_v54 = vadd.f32 %v3444_v14, %v7655_v13  ;;  %v3772_v17 = vsub.f32 0.0, %v3634_v24  ;;  %v3643_v46 = vpop.f32.mrf.mxu0  ;;  %p6445_p1 = pnand %p6444_p11, %p8187_p5  ;;  %s6449_s15 = scalar_lea.vmem %s6448_s21, 32768 }
 0x53c   : > { %v5988_v6 = vpop.eup %5987  ;;  %v4145_v34 = vadd.f32 1.0, %v5986_v1  ;;  %6013 = vpow2.f32 %v3972_v58  ;;  %v3638_v21 = vadd.f32 %v3637_v52, %v7657_v30  ;;  %v3980_v26 = vmul.f32 1.442695, %v3767_v48  ;;  %v3452_v9 = vpop.f32.mrf.mxu1  ;;  %p6450_p6 = scmp.lt.s32.totalorder %s8051_s14, %s6448_s21  ;;  %p6451_p8 = scmp.lt.s32.totalorder %s6449_s15, %s6443_s6 }
 0x53d   : > { %v5990_v51 = vpop.eup %5989  ;;  %4390 = vst [vmem:[%s7691_s23 + $0x220] sm:$0xff] %v5988_v6  ;;  %6015 = vpow2.f32 %v3976_v15  ;;  %v3771_v36 = vsub.f32 0.0, %v3443_v59  ;;  %v3447_v4 = vadd.f32 %v3446_v31, %v7660_v35  ;;  %v3984_v18 = vmul.f32 1.442695, %v3769_v37  ;;  %v3645_v63 = vpop.f32.mrf.mxu0  ;;  %s8049_s26 = scalar_lea.hbm %s8189_s12, %s4995_s22  ;;  %p6446_p4 = pneg %p6445_p1 }
 0x53e   : > { %v5992_v25 = vpop.eup %5991  ;;  %4392 = vst [vmem:[%s7691_s23 + $0x230] sm:$0xff] %v5990_v51  ;;  %6017 = vrcp.f32 %v4145_v34  ;;  %v3773_v56 = vsub.f32 0.0, %v3636_v43  ;;  %v3986_v53 = vmul.f32 1.442695, %v3770_v32  ;;  %v3774_v10 = vsub.f32 0.0, %v3445_v54  ;;  %v3454_v2 = vpop.f32.mrf.mxu1  ;;  %p6452_p3 = por %p6451_p8, %p6450_p6 }
 0x53f   : > { %v5994_v33 = vpop.eup %5993  ;;  %4391 = vst [vmem:[%s7691_s23 + $0x228] sm:$0xff] %v5992_v25  ;;  %6019 = vpow2.f32 %v3978_v0  ;;  %v3990_v12 = vmul.f32 1.442695, %v3772_v17  ;;  %v3776_v57 = vsub.f32 0.0, %v3638_v21  ;;  %v3988_v42 = vmul.f32 1.442695, %v3771_v36  ;;  %v3647_v45 = vpop.f32.mrf.mxu0 }
 0x540   : > { %v5996_v11 = vpop.eup %5995  ;;  %4393 = vst [vmem:[%s7691_s23 + $0x238] sm:$0xff] %v5994_v33  ;;  %6021 = vpow2.f32 %v3982_v62  ;;  %v3775_v23 = vsub.f32 0.0, %v3447_v4  ;;  %v3992_v60 = vmul.f32 1.442695, %v3773_v56  ;;  %v3640_v38 = vadd.f32 %v3639_v39, %v7662_v41  ;;  %v3456_v40 = vpop.f32.mrf.mxu1  ;;  %p6453_p7 = pnand %p6452_p3, %p6446_p4 }
 0x541   : > { %v5998_v47 = vpop.eup %5997  ;;  %4394 = vst [vmem:[%s7691_s23 + $0x240] sm:$0xff] %v5996_v11  ;;  %6023 = vpow2.f32 %v3980_v26  ;;  %v3994_v19 = vmul.f32 1.442695, %v3774_v10  ;;  %v3998_v16 = vmul.f32 1.442695, %v3776_v57  ;;  %v3451_v52 = vadd.f32 %v3450_v5, %v7655_v13  ;;  %v3649_v43 = vpop.f32.mrf.mxu0 }
 0x542   : > { %v6000_v7 = vpop.eup %5999  ;;  %4396 = vst [vmem:[%s7691_s23 + $0x250] sm:$0xff] %v5998_v47  ;;  %6025 = vpow2.f32 %v3984_v18  ;;  %v3996_v49 = vmul.f32 1.442695, %v3775_v23  ;;  %v3777_v50 = vsub.f32 0.0, %v3640_v38  ;;  %v3644_v29 = vadd.f32 %v3643_v46, %v7657_v30  ;;  %v3460_v62 = vpop.f32.mrf.mxu1 }
 0x543   : > { %v6002_v20 = vpop.eup %6001  ;;  %4395 = vst [vmem:[%s7691_s23 + $0x248] sm:$0xff] %v6000_v7  ;;  %6027 = vpow2.f32 %v3986_v53  ;;  %v3453_v6 = vadd.f32 %v3452_v9, %v7660_v35  ;;  %v3778_v21 = vsub.f32 0.0, %v3451_v52  ;;  %v3646_v4 = vadd.f32 %v3645_v63, %v7662_v41  ;;  %v3653_v39 = vpop.f32.mrf.mxu0 }
 0x544   : > { %v6004_v44 = vpop.eup %6003  ;;  %4397 = vst [vmem:[%s7691_s23 + $0x258] sm:$0xff] %v6002_v20  ;;  %6029 = vpow2.f32 %v3990_v12  ;;  %v4000_v24 = vmul.f32 1.442695, %v3777_v50  ;;  %v3780_v51 = vsub.f32 0.0, %v3644_v29  ;;  %v3455_v56 = vadd.f32 %v3454_v2, %v7655_v13  ;;  %v3462_v5 = vpop.f32.mrf.mxu1 }
 0x545   : > { %v6006_v3 = vpop.eup %6005  ;;  %4398 = vst [vmem:[%s7691_s23 + $0x260] sm:$0xff] %v6004_v44  ;;  %6031 = vpow2.f32 %v3988_v42  ;;  %v3779_v10 = vsub.f32 0.0, %v3453_v6  ;;  %v3648_v11 = vadd.f32 %v3647_v45, %v7657_v30  ;;  %v4002_v47 = vmul.f32 1.442695, %v3778_v21  ;;  %v3655_v38 = vpop.f32.mrf.mxu0 }
 0x546   : > { %v6008_v8 = vpop.eup %6007  ;;  %4400 = vst [vmem:[%s7691_s23 + $0x270] sm:$0xff] %v6006_v3  ;;  %6033 = vpow2.f32 %v3992_v60  ;;  %v4006_v42 = vmul.f32 1.442695, %v3780_v51  ;;  %v3781_v7 = vsub.f32 0.0, %v3646_v4  ;;  %v3457_v60 = vadd.f32 %v3456_v40, %v7660_v35 }
 0x547   : > { %v6010_v22 = vpop.eup %6009  ;;  %4399 = vst [vmem:[%s7691_s23 + $0x268] sm:$0xff] %v6008_v8  ;;  %6035 = vpow2.f32 %v3994_v19  ;;  %v3782_v19 = vsub.f32 0.0, %v3455_v56  ;;  %v3650_v44 = vadd.f32 %v3649_v43, %v7662_v41  ;;  %v3784_v63 = vsub.f32 0.0, %v3648_v11  ;;  %v3657_v45 = vpop.f32.mrf.mxu0 }
 0x548   : > { %v6012_v14 = vpop.eup %6011  ;;  %v4146_v55 = vadd.f32 1.0, %v6010_v22  ;;  %6037 = vpow2.f32 %v3998_v16  ;;  %v3464_v16 = vpop.f32.mrf.mxu1  ;;  %v3461_v8 = vadd.f32 %v3460_v62, %v7655_v13  ;;  %v4004_v2 = vmul.f32 1.442695, %v3779_v10 }
 0x549   : > { %v6014_v28 = vpop.eup %6013  ;;  %v4148_v61 = vadd.f32 1.0, %v6012_v14  ;;  %6039 = vpow2.f32 %v3996_v49  ;;  %v3654_v22 = vadd.f32 %v3653_v39, %v7657_v30  ;;  %v3656_v40 = vadd.f32 %v3655_v38, %v7662_v41  ;;  %v3659_v6 = vpop.f32.mrf.mxu0 }
 0x54a   : > { %v6016_v27 = vpop.eup %6015  ;;  %6041 = vrcp.f32 %v4146_v55  ;;  %v4147_v58 = vadd.f32 1.0, %v6014_v28  ;;  %v4008_v55 = vmul.f32 1.442695, %v3781_v7  ;;  %v3783_v28 = vsub.f32 0.0, %v3457_v60 }
 0x54b   : > { %v6018_v15 = vpop.eup %6017  ;;  %6043 = vrcp.f32 %v4148_v61  ;;  %v4149_v48 = vadd.f32 1.0, %v6016_v27  ;;  %v3463_v61 = vadd.f32 %v3462_v5, %v7660_v35  ;;  %v3786_v52 = vsub.f32 0.0, %v3461_v8 }
 0x54c   : > { %v6020_v59 = vpop.eup %6019  ;;  %4401 = vst [vmem:[%s7691_s23 + $0x278] sm:$0xff] %v6018_v15  ;;  %6045 = vrcp.f32 %v4147_v58  ;;  %v4010_v58 = vmul.f32 1.442695, %v3782_v19  ;;  %v3466_v15 = vpop.f32.mrf.mxu1  ;;  %v3465_v29 = vadd.f32 %v3464_v16, %v7655_v13  ;;  %v3788_v43 = vsub.f32 0.0, %v3654_v22 }
 0x54d   : > { %v6022_v0 = vpop.eup %6021  ;;  %6047 = vrcp.f32 %v4149_v48  ;;  %v4150_v37 = vadd.f32 1.0, %v6020_v59  ;;  %v4014_v59 = vmul.f32 1.442695, %v3784_v63  ;;  %v4012_v62 = vmul.f32 1.442695, %v3783_v28 }
 0x54e   : > { %v6024_v31 = vpop.eup %6023  ;;  %v4152_v1 = vadd.f32 1.0, %v6022_v0  ;;  %6049 = vpow2.f32 %v4000_v24  ;;  %v3785_v24 = vsub.f32 0.0, %v3650_v44  ;;  %v3789_v21 = vsub.f32 0.0, %v3656_v40  ;;  %v3470_v51 = vpop.f32.mrf.mxu1 }
 0x54f   : > { %v6026_v32 = vpop.eup %6025  ;;  %6051 = vrcp.f32 %v4150_v37  ;;  %v4151_v54 = vadd.f32 1.0, %v6024_v31  ;;  %v3658_v31 = vadd.f32 %v3657_v45, %v7657_v30  ;;  %v3790_v4 = vsub.f32 0.0, %v3465_v29 }
 0x550   : > { %v6028_v34 = vpop.eup %6027  ;;  %6053 = vrcp.f32 %v4152_v1  ;;  %v4153_v17 = vadd.f32 1.0, %v6026_v32  ;;  %v3787_v32 = vsub.f32 0.0, %v3463_v61  ;;  %v4024_v11 = vmul.f32 1.442695, %v3789_v21 }
 0x551   : > { %v6030_v26 = vpop.eup %6029  ;;  %6055 = vrcp.f32 %v4151_v54  ;;  %v4154_v36 = vadd.f32 1.0, %v6028_v34  ;;  %v3467_v54 = vadd.f32 %v3466_v15, %v7660_v35  ;;  %v3471_v61 = vadd.f32 %v3470_v51, %v7655_v13 }
 0x552   : > { %v6032_v25 = vpop.eup %6031  ;;  %6057 = vrcp.f32 %v4153_v17  ;;  %v4156_v18 = vadd.f32 1.0, %v6030_v26  ;;  %v4016_v17 = vmul.f32 1.442695, %v3785_v24  ;;  %v4020_v5 = vmul.f32 1.442695, %v3787_v32 }
 0x553   : > { %v6034_v33 = vpop.eup %6033  ;;  %6059 = vrcp.f32 %v4154_v36  ;;  %v4155_v53 = vadd.f32 1.0, %v6032_v25  ;;  %v4018_v36 = vmul.f32 1.442695, %v3786_v52  ;;  %v4022_v25 = vmul.f32 1.442695, %v3788_v43 }
 0x554   : > { %v6036_v12 = vpop.eup %6035  ;;  %6061 = vrcp.f32 %v4156_v18  ;;  %v4157_v57 = vadd.f32 1.0, %v6034_v33  ;;  %v3792_v18 = vsub.f32 0.0, %v3658_v31  ;;  %v3791_v33 = vsub.f32 0.0, %v3467_v54 }
 0x555   : > { %v6038_v23 = vpop.eup %6037  ;;  %6063 = vrcp.f32 %v4155_v53  ;;  %v4158_v46 = vadd.f32 1.0, %v6036_v12  ;;  %v3663_v53 = vpop.f32.mrf.mxu0  ;;  %v3660_v12 = vadd.f32 %v3659_v6, %v7662_v41 }
 0x556   : > { %v6040_v9 = vpop.eup %6039  ;;  %6065 = vrcp.f32 %v4157_v57  ;;  %v4160_v20 = vadd.f32 1.0, %v6038_v23  ;;  %v3472_v57 = vpop.f32.mrf.mxu1  ;;  %v4028_v60 = vmul.f32 1.442695, %v3791_v33 }
 0x557   : > { %v6042_v3 = vpop.eup %6041  ;;  %6067 = vrcp.f32 %v4158_v46  ;;  %v4159_v49 = vadd.f32 1.0, %v6040_v9  ;;  %v4030_v46 = vmul.f32 1.442695, %v3792_v18  ;;  %v3665_v38 = vpop.f32.mrf.mxu0 }
 0x558   : > { %v6044_v50 = vpop.eup %6043  ;;  %4402 = vst [vmem:[%s7691_s23 + $0x280] sm:$0xff] %v6042_v3  ;;  %6069 = vrcp.f32 %v4160_v20  ;;  %v3793_v20 = vsub.f32 0.0, %v3660_v12  ;;  %v3474_v19 = vpop.f32.mrf.mxu1  ;;  %v3666_v54 = vadd.f32 %v3665_v38, %v7662_v41 }
 0x559   : > { %v6046_v14 = vpop.eup %6045  ;;  %4404 = vst [vmem:[%s7691_s23 + $0x290] sm:$0xff] %v6044_v50  ;;  %6071 = vrcp.f32 %v4159_v49  ;;  %v3667_v8 = vpop.f32.mrf.mxu0  ;;  %v3475_v21 = vadd.f32 %v3474_v19, %v7655_v13 }
 0x55a   : > { %v6048_v27 = vpop.eup %6047  ;;  %4403 = vst [vmem:[%s7691_s23 + $0x288] sm:$0xff] %v6046_v14  ;;  %6073 = vpow2.f32 %v4002_v47  ;;  %v4032_v22 = vmul.f32 1.442695, %v3793_v20  ;;  %v3476_v14 = vpop.f32.mrf.mxu1 }
 0x55b   : > { %v6050_v48 = vpop.eup %6049  ;;  %4405 = vst [vmem:[%s7691_s23 + $0x298] sm:$0xff] %v6048_v27  ;;  %6075 = vpow2.f32 %v4006_v42  ;;  %v4026_v42 = vmul.f32 1.442695, %v3790_v4  ;;  %v3664_v27 = vadd.f32 %v3663_v53, %v7657_v30  ;;  %v3669_v40 = vpop.f32.mrf.mxu0 }
 0x55c   : > { %v6052_v0 = vpop.eup %6051  ;;  %v4161_v37 = vadd.f32 1.0, %v6050_v48  ;;  %6077 = vpow2.f32 %v4004_v2 }
 0x55d   : > { %v6054_v1 = vpop.eup %6053  ;;  %4406 = vst [vmem:[%s7691_s23 + $0x2a0] sm:$0xff] %v6052_v0  ;;  %6079 = vpow2.f32 %v4008_v55  ;;  %v3794_v0 = vsub.f32 0.0, %v3471_v61  ;;  %v3796_v31 = vsub.f32 0.0, %v3664_v27  ;;  %v3673_v6 = vpop.f32.mrf.mxu0 }
 0x55e   : > { %v6056_v34 = vpop.eup %6055  ;;  %4408 = vst [vmem:[%s7691_s23 + $0x2b0] sm:$0xff] %v6054_v1  ;;  %6081 = vrcp.f32 %v4161_v37  ;;  %v3473_v1 = vadd.f32 %v3472_v57, %v7660_v35 }
 0x55f   : > { %v6058_v26 = vpop.eup %6057  ;;  %4407 = vst [vmem:[%s7691_s23 + $0x2a8] sm:$0xff] %v6056_v34  ;;  %6083 = vpow2.f32 %v4010_v58  ;;  %v4034_v4 = vmul.f32 1.442695, %v3794_v0  ;;  %v3675_v12 = vpop.f32.mrf.mxu0 }
 0x560   : > { %v6060_v39 = vpop.eup %6059  ;;  %4409 = vst [vmem:[%s7691_s23 + $0x2b8] sm:$0xff] %v6058_v26  ;;  %6085 = vpow2.f32 %v4014_v59  ;;  %v3480_v59 = vpop.f32.mrf.mxu1 }
 0x561   : > { %v6062_v56 = vpop.eup %6061  ;;  %4410 = vst [vmem:[%s7691_s23 + $0x2c0] sm:$0xff] %v6060_v39  ;;  %6087 = vpow2.f32 %v4012_v62  ;;  %v3668_v39 = vadd.f32 %v3667_v8, %v7657_v30  ;;  %v3677_v8 = vpop.f32.mrf.mxu0 }
 0x562   : > { %v6064_v10 = vpop.eup %6063  ;;  %4412 = vst [vmem:[%s7691_s23 + $0x2d0] sm:$0xff] %v6062_v56  ;;  %6089 = vpow2.f32 %v4016_v17  ;;  %v3482_v51 = vpop.f32.mrf.mxu1  ;;  %v4038_v56 = vmul.f32 1.442695, %v3796_v31 }
 0x563   : > { %v6066_v47 = vpop.eup %6065  ;;  %4411 = vst [vmem:[%s7691_s23 + $0x2c8] sm:$0xff] %v6064_v10  ;;  %6091 = vpow2.f32 %v4018_v36  ;;  %v3797_v10 = vsub.f32 0.0, %v3666_v54  ;;  %v3800_v38 = vsub.f32 0.0, %v3668_v39 }
 0x564   : > { %v6068_v23 = vpop.eup %6067  ;;  %4413 = vst [vmem:[%s7691_s23 + $0x2d8] sm:$0xff] %v6066_v47  ;;  %6093 = vpow2.f32 %v4022_v25 }
 0x565   : > { %v6070_v7 = vpop.eup %6069  ;;  %4414 = vst [vmem:[%s7691_s23 + $0x2e0] sm:$0xff] %v6068_v23  ;;  %6095 = vpow2.f32 %v4020_v5  ;;  %v3795_v5 = vsub.f32 0.0, %v3473_v1  ;;  %v3670_v23 = vadd.f32 %v3669_v40, %v7662_v41  ;;  %v4046_v61 = vmul.f32 1.442695, %v3800_v38  ;;  %v3679_v1 = vpop.f32.mrf.mxu0 }
 0x566   : > { %v6072_v9 = vpop.eup %6071  ;;  %4416 = vst [vmem:[%s7691_s23 + $0x2f0] sm:$0xff] %v6070_v7  ;;  %6097 = vpow2.f32 %v4024_v11  ;;  %v3477_v11 = vadd.f32 %v3476_v14, %v7660_v35  ;;  %v3676_v14 = vadd.f32 %v3675_v12, %v7662_v41 }
 0x567   : > { %v6074_v44 = vpop.eup %6073  ;;  %4415 = vst [vmem:[%s7691_s23 + $0x2e8] sm:$0xff] %v6072_v9  ;;  %6099 = vpow2.f32 %v4026_v42  ;;  %v3798_v42 = vsub.f32 0.0, %v3475_v21  ;;  %v3481_v9 = vadd.f32 %v3480_v59, %v7655_v13  ;;  %v4036_v19 = vmul.f32 1.442695, %v3795_v5 }
 0x568   : > { %v6076_v16 = vpop.eup %6075  ;;  %v4162_v3 = vadd.f32 1.0, %v6074_v44  ;;  %6101 = vpow2.f32 %v4030_v46  ;;  %v3484_v46 = vpop.f32.mrf.mxu1  ;;  %v3674_v44 = vadd.f32 %v3673_v6, %v7657_v30 }
 0x569   : > { %v6078_v49 = vpop.eup %6077  ;;  %v4164_v63 = vadd.f32 1.0, %v6076_v16  ;;  %6103 = vpow2.f32 %v4028_v60  ;;  %v3485_v27 = vadd.f32 %v3484_v46, %v7655_v13 }
 0x56a   : > { %v6080_v50 = vpop.eup %6079  ;;  %6105 = vrcp.f32 %v4162_v3  ;;  %v4163_v2 = vadd.f32 1.0, %v6078_v49  ;;  %v4040_v3 = vmul.f32 1.442695, %v3797_v10  ;;  %v3799_v49 = vsub.f32 0.0, %v3477_v11 }
 0x56b   : > { %v6082_v55 = vpop.eup %6081  ;;  %6107 = vrcp.f32 %v4164_v63  ;;  %v4165_v28 = vadd.f32 1.0, %v6080_v50  ;;  %v3483_v63 = vadd.f32 %v3482_v51, %v7660_v35  ;;  %v3804_v40 = vsub.f32 0.0, %v3674_v44 }
 0x56c   : > { %v6084_v45 = vpop.eup %6083  ;;  %4417 = vst [vmem:[%s7691_s23 + $0x2f8] sm:$0xff] %v6082_v55  ;;  %6109 = vrcp.f32 %v4163_v2  ;;  %v4042_v2 = vmul.f32 1.442695, %v3798_v42  ;;  %v3486_v55 = vpop.f32.mrf.mxu1  ;;  %v4044_v59 = vmul.f32 1.442695, %v3799_v49  ;;  %v3680_v51 = vadd.f32 %v3679_v1, %v7662_v41 }
 0x56d   : > { %v6086_v58 = vpop.eup %6085  ;;  %6111 = vrcp.f32 %v4165_v28  ;;  %v4166_v24 = vadd.f32 1.0, %v6084_v45  ;;  %v3802_v45 = vsub.f32 0.0, %v3481_v9 }
 0x56e   : > { %v6088_v15 = vpop.eup %6087  ;;  %v4168_v48 = vadd.f32 1.0, %v6086_v58  ;;  %6113 = vpow2.f32 %v4032_v22  ;;  %v3801_v22 = vsub.f32 0.0, %v3670_v23  ;;  %v3809_v5 = vsub.f32 0.0, %v3680_v51 }
 0x56f   : > { %v6090_v52 = vpop.eup %6089  ;;  %6115 = vrcp.f32 %v4166_v24  ;;  %v4167_v29 = vadd.f32 1.0, %v6088_v15  ;;  %v3678_v15 = vadd.f32 %v3677_v8, %v7657_v30  ;;  %v4050_v31 = vmul.f32 1.442695, %v3802_v45 }
 0x570   : > { %v6092_v37 = vpop.eup %6091  ;;  %6117 = vrcp.f32 %v4168_v48  ;;  %v4169_v43 = vadd.f32 1.0, %v6090_v52  ;;  %v3803_v52 = vsub.f32 0.0, %v3483_v63  ;;  %v4048_v13 = vmul.f32 1.442695, %v3801_v22 }
 0x571   : > { %v6094_v62 = vpop.eup %6093  ;;  %6119 = vrcp.f32 %v4167_v29  ;;  %v4170_v32 = vadd.f32 1.0, %v6092_v37  ;;  %v3487_v29 = vadd.f32 %v3486_v55, %v7660_v35  ;;  %v3805_v37 = vsub.f32 0.0, %v3676_v14 }
 0x572   : > { %v6096_v34 = vpop.eup %6095  ;;  %6121 = vrcp.f32 %v4169_v43  ;;  %v4172_v17 = vadd.f32 1.0, %v6094_v62  ;;  %v3806_v30 = vsub.f32 0.0, %v3485_v27  ;;  %v3808_v54 = vsub.f32 0.0, %v3678_v15 }
 0x573   : > { %v6098_v26 = vpop.eup %6097  ;;  %6123 = vrcp.f32 %v4170_v32  ;;  %v4171_v36 = vadd.f32 1.0, %v6096_v34  ;;  %v4054_v32 = vmul.f32 1.442695, %v3804_v40  ;;  %v4052_v6 = vmul.f32 1.442695, %v3803_v52 }
 0x574   : > { %v6100_v25 = vpop.eup %6099  ;;  %6125 = vrcp.f32 %v4172_v17  ;;  %v4173_v18 = vadd.f32 1.0, %v6098_v26  ;;  %v3807_v34 = vsub.f32 0.0, %v3487_v29  ;;  %v4056_v21 = vmul.f32 1.442695, %v3805_v37 }
 0x575   : > { %v6102_v33 = vpop.eup %6101  ;;  %6127 = vrcp.f32 %v4171_v36  ;;  %v4174_v53 = vadd.f32 1.0, %v6100_v25  ;;  %v4058_v36 = vmul.f32 1.442695, %v3806_v30  ;;  %v4062_v39 = vmul.f32 1.442695, %v3808_v54 }
 0x576   : > { %v6104_v57 = vpop.eup %6103  ;;  %6129 = vrcp.f32 %v4173_v18  ;;  %v4176_v47 = vadd.f32 1.0, %v6102_v33  ;;  %v4060_v18 = vmul.f32 1.442695, %v3807_v34 }
 0x577   : > { %v6106_v7 = vpop.eup %6105  ;;  %6131 = vrcp.f32 %v4174_v53  ;;  %v4175_v60 = vadd.f32 1.0, %v6104_v57 }
 0x578   : > { %v6108_v20 = vpop.eup %6107  ;;  %4418 = vst [vmem:[%s7691_s23 + $0x300] sm:$0xff] %v6106_v7  ;;  %6133 = vrcp.f32 %v4176_v47  ;;  %v4064_v47 = vmul.f32 1.442695, %v3809_v5 }
 0x579   : > { %v6110_v16 = vpop.eup %6109  ;;  %4420 = vst [vmem:[%s7691_s23 + $0x310] sm:$0xff] %v6108_v20  ;;  %6135 = vrcp.f32 %v4175_v60 }
 0x57a   : > { %v6112_v50 = vpop.eup %6111  ;;  %4419 = vst [vmem:[%s7691_s23 + $0x308] sm:$0xff] %v6110_v16  ;;  %6137 = vpow2.f32 %v4034_v4 }
 0x57b   : > { %v6114_v28 = vpop.eup %6113  ;;  %4421 = vst [vmem:[%s7691_s23 + $0x318] sm:$0xff] %v6112_v50  ;;  %6139 = vpow2.f32 %v4038_v56 }
 0x57c   : > { %v6116_v58 = vpop.eup %6115  ;;  %v4177_v24 = vadd.f32 1.0, %v6114_v28  ;;  %6141 = vpow2.f32 %v4036_v19 }
 0x57d   : > { %v6118_v48 = vpop.eup %6117  ;;  %4422 = vst [vmem:[%s7691_s23 + $0x320] sm:$0xff] %v6116_v58  ;;  %6143 = vpow2.f32 %v4040_v3 }
 0x57e   : > { %v6120_v0 = vpop.eup %6119  ;;  %4424 = vst [vmem:[%s7691_s23 + $0x330] sm:$0xff] %v6118_v48  ;;  %6145 = vrcp.f32 %v4177_v24 }
 0x57f   : > { %v6122_v43 = vpop.eup %6121  ;;  %4423 = vst [vmem:[%s7691_s23 + $0x328] sm:$0xff] %v6120_v0  ;;  %6147 = vpow2.f32 %v4042_v2 }
 0x580   : > { %v6124_v62 = vpop.eup %6123  ;;  %4425 = vst [vmem:[%s7691_s23 + $0x338] sm:$0xff] %v6122_v43  ;;  %6149 = vpow2.f32 %v4046_v61 }
 0x581   : > { %v6126_v35 = vpop.eup %6125  ;;  %4426 = vst [vmem:[%s7691_s23 + $0x340] sm:$0xff] %v6124_v62  ;;  %6151 = vpow2.f32 %v4044_v59 }
 0x582   : > { %v6128_v17 = vpop.eup %6127  ;;  %4428 = vst [vmem:[%s7691_s23 + $0x350] sm:$0xff] %v6126_v35  ;;  %6153 = vpow2.f32 %v4048_v13 }
 0x583   : > { %v6130_v26 = vpop.eup %6129  ;;  %4427 = vst [vmem:[%s7691_s23 + $0x348] sm:$0xff] %v6128_v17  ;;  %6155 = vpow2.f32 %v4050_v31 }
 0x584   : > { %v6132_v4 = vpop.eup %6131  ;;  %4429 = vst [vmem:[%s7691_s23 + $0x358] sm:$0xff] %v6130_v26  ;;  %6157 = vpow2.f32 %v4054_v32 }
 0x585   : > { %v6134_v25 = vpop.eup %6133  ;;  %4430 = vst [vmem:[%s7691_s23 + $0x360] sm:$0xff] %v6132_v4  ;;  %6159 = vpow2.f32 %v4052_v6 }
 0x586   : > { %v6136_v56 = vpop.eup %6135  ;;  %4432 = vst [vmem:[%s7691_s23 + $0x370] sm:$0xff] %v6134_v25  ;;  %6161 = vpow2.f32 %v4056_v21 }
 0x587   : > { %v6138_v33 = vpop.eup %6137  ;;  %4431 = vst [vmem:[%s7691_s23 + $0x368] sm:$0xff] %v6136_v56  ;;  %6163 = vpow2.f32 %v4058_v36 }
 0x588   : > { %v6140_v41 = vpop.eup %6139  ;;  %v4178_v53 = vadd.f32 1.0, %v6138_v33  ;;  %6165 = vpow2.f32 %v4062_v39 }
 0x589   : > { %v6142_v10 = vpop.eup %6141  ;;  %v4180_v11 = vadd.f32 1.0, %v6140_v41  ;;  %6167 = vpow2.f32 %v4060_v18 }
 0x58a   : > { %v6144_v12 = vpop.eup %6143  ;;  %6169 = vrcp.f32 %v4178_v53  ;;  %v4179_v57 = vadd.f32 1.0, %v6142_v10 }
 0x58b   : > { %v6146_v42 = vpop.eup %6145  ;;  %6171 = vrcp.f32 %v4180_v11  ;;  %v4181_v23 = vadd.f32 1.0, %v6144_v12 }
 0x58c   : > { %v6148_v46 = vpop.eup %6147  ;;  %4433 = vst [vmem:[%s7691_s23 + $0x378] sm:$0xff] %v6146_v42  ;;  %6173 = vrcp.f32 %v4179_v57 }
 0x58d   : > { %v6150_v7 = vpop.eup %6149  ;;  %6175 = vrcp.f32 %v4181_v23  ;;  %v4182_v60 = vadd.f32 1.0, %v6148_v46 }
 0x58e   : > { %v6152_v38 = vpop.eup %6151  ;;  %v4184_v9 = vadd.f32 1.0, %v6150_v7  ;;  %6177 = vpow2.f32 %v4064_v47 }
 0x58f   : > { %v6154_v20 = vpop.eup %6153  ;;  %6179 = vrcp.f32 %v4182_v60  ;;  %v4183_v19 = vadd.f32 1.0, %v6152_v38 }
 0x590   : > { %v6156_v44 = vpop.eup %6155  ;;  %6181 = vrcp.f32 %v4184_v9  ;;  %v4185_v16 = vadd.f32 1.0, %v6154_v20 }
 0x591   : > { %v6158_v3 = vpop.eup %6157  ;;  %6183 = vrcp.f32 %v4183_v19  ;;  %v4186_v49 = vadd.f32 1.0, %v6156_v44 }
 0x592   : > { %v6160_v63 = vpop.eup %6159  ;;  %6185 = vrcp.f32 %v4185_v16  ;;  %v4188_v8 = vadd.f32 1.0, %v6158_v3 }
 0x593   : > { %v6162_v50 = vpop.eup %6161  ;;  %6187 = vrcp.f32 %v4186_v49  ;;  %v4187_v2 = vadd.f32 1.0, %v6160_v63 }
 0x594   : > { %v6164_v22 = vpop.eup %6163  ;;  %6189 = vrcp.f32 %v4188_v8  ;;  %v4189_v14 = vadd.f32 1.0, %v6162_v50 }
 0x595   : > { %v6166_v55 = vpop.eup %6165  ;;  %6191 = vrcp.f32 %v4187_v2  ;;  %v4190_v28 = vadd.f32 1.0, %v6164_v22 }
 0x596   : > { %v6168_v61 = vpop.eup %6167  ;;  %6193 = vrcp.f32 %v4189_v14  ;;  %v4192_v45 = vadd.f32 1.0, %v6166_v55 }
 0x597   : > { %v6170_v27 = vpop.eup %6169  ;;  %6195 = vrcp.f32 %v4190_v28  ;;  %v4191_v58 = vadd.f32 1.0, %v6168_v61 }
 0x598   : > { %v6172_v24 = vpop.eup %6171  ;;  %4434 = vst [vmem:[%s7691_s23 + $0x380] sm:$0xff] %v6170_v27  ;;  %6197 = vrcp.f32 %v4192_v45 }
 0x599   : > { %v6174_v40 = vpop.eup %6173  ;;  %4436 = vst [vmem:[%s7691_s23 + $0x390] sm:$0xff] %v6172_v24  ;;  %6199 = vrcp.f32 %v4191_v58 }
 0x59a   : > { %v6176_v15 = vpop.eup %6175  ;;  %4435 = vst [vmem:[%s7691_s23 + $0x388] sm:$0xff] %v6174_v40 }
 0x59b   : > { %v6178_v48 = vpop.eup %6177  ;;  %4437 = vst [vmem:[%s7691_s23 + $0x398] sm:$0xff] %v6176_v15 }
 0x59c   : > { %v6180_v59 = vpop.eup %6179  ;;  %v4193_v52 = vadd.f32 1.0, %v6178_v48 }
 0x59d   : > { %v6182_v29 = vpop.eup %6181  ;;  %4438 = vst [vmem:[%s7691_s23 + $0x3a0] sm:$0xff] %v6180_v59 }
 0x59e   : > { %v6184_v0 = vpop.eup %6183  ;;  %4440 = vst [vmem:[%s7691_s23 + $0x3b0] sm:$0xff] %v6182_v29  ;;  %6201 = vrcp.f32 %v4193_v52 }
 0x59f   : > { %v6186_v13 = vpop.eup %6185  ;;  %4439 = vst [vmem:[%s7691_s23 + $0x3a8] sm:$0xff] %v6184_v0 }
 0x5a0   : > { %v6188_v37 = vpop.eup %6187  ;;  %4441 = vst [vmem:[%s7691_s23 + $0x3b8] sm:$0xff] %v6186_v13 }
 0x5a1   : > { %v6190_v43 = vpop.eup %6189  ;;  %4442 = vst [vmem:[%s7691_s23 + $0x3c0] sm:$0xff] %v6188_v37 }
 0x5a2   : > { %v6192_v31 = vpop.eup %6191  ;;  %4444 = vst [vmem:[%s7691_s23 + $0x3d0] sm:$0xff] %v6190_v43 }
 0x5a3   : > { %v6194_v30 = vpop.eup %6193  ;;  %4443 = vst [vmem:[%s7691_s23 + $0x3c8] sm:$0xff] %v6192_v31 }
 0x5a4   : > { %v6196_v1 = vpop.eup %6195  ;;  %4445 = vst [vmem:[%s7691_s23 + $0x3d8] sm:$0xff] %v6194_v30 }
 0x5a5   : > { %v6198_v62 = vpop.eup %6197  ;;  %4446 = vst [vmem:[%s7691_s23 + $0x3e0] sm:$0xff] %v6196_v1 }
 0x5a6   : > { %v6200_v32 = vpop.eup %6199  ;;  %4448 = vst [vmem:[%s7691_s23 + $0x3f0] sm:$0xff] %v6198_v62 }
 0x5a7   : > { %4447 = vst [vmem:[%s7691_s23 + $0x3e8] sm:$0xff] %v6200_v32 }
 0x5ab   : > { %v6202_v54 = vpop.eup %6201 }
 0x5ac   : > { %4449 = vst [vmem:[%s7691_s23 + $0x3f8] sm:$0xff] %v6202_v54 }
 0x5ad   : > { %6456 = shalt.err (!%p6453_p7)
}
 0x5ae   : > { %s6457_s23 = scalar_lea.hbm %s8049_s26, 16384  ;;  %s6461_s20 = scalar_lea.hbm %s8189_s12, 32768 }
 0x5af   : > { %p6458_p12 = scmp.ne.s32.totalorder %s8049_s26, %s6457_s23  ;;  %p6462_p0 = scmp.lt.s32.totalorder %s8049_s26, %s8189_s12 }
 0x5b0   : > { %p6463_p13 = scmp.lt.s32.totalorder %s6461_s20, %s6457_s23 }
 0x5b1   : > { %p6459_p2 = pnand %p6458_p12, %p8187_p5 }
 0x5b2   : > { %p6464_p9 = por %p6463_p13, %p6462_p0 }
 0x5b3   : > { %p6460_p10 = pneg %p6459_p2 }
 0x5b5   : > { %p6465_p11 = pnand %p6464_p9, %p6460_p10 }
 0x5b7   : > { %6468 = shalt.err (!%p6465_p11)
}
 0x5b8   : > { %s6550_s17 = smov 512   ;;  %s6551_s22 = smov 32  }
 0x5b9   : > { %5278 = dma.vmem_to_hbm [thread:$0]  (%p8187_p5), %s8051_s14, 16384, %s8049_s26, %s4515_s25, %s6550_s17, %s6550_s17, %s6551_s22  }
 0x5ba PF: > { %s8190_s8 = sld [smem:[#allocation28_spill]]  ;;  %s4586_s0 = sand.u32 1, %s6515_s29  }
 0x5bb   : > { %p8192_p4 = scmp.ge.s32.totalorder %s6527_s16, 2  ;;  %s4587_s6 = scalar_lea.sflag [#allocation4], %s4586_s0 }
 0x5c0   : > { %p8191_p1 = scmp.ne.s32.totalorder %s8190_s8, 0 }
 0x5c2   : > { %p5308_p6 = pnand %p8192_p4, %p8191_p1 }
 0x5c4   : > { %p5309_p8 = pneg %p5308_p6 }
 0x5c6   : > { %6506 = dma.done.wait (%p5309_p8), %s4587_s6, 16384  }
 0x5c7   : > { %6508 = vsyncadd (%p5309_p8), %s4587_s6, 4294950912  ;;  %s8193_s19 = sadd.s32 4294967294, %s6527_s16  }
 0x5c8   : > { %s4595_s21 = sand.u32 1, %s8193_s19  }
 0x5c9   : > { %s4596_s15 = scalar_lea.sflag [#allocation16], %s4595_s21 }
 0x5ca   : > { %6510 = dma.done.wait (%p5309_p8), %s4596_s15, 8192  }
 0x5cb   : > { %6512 = vsyncadd (%p5309_p8), %s4596_s15, 4294959104  ;;  %s8194_s16 = sld [smem:[#allocation26_spill]]  ;;  %s8197_s29 = smov %s6519_s30 }
 0x5cc   : > { %s8195_s27 = sld [smem:[#allocation25_spill]] }
 0x5cd   : > { %s8196_s15 = sld [smem:[#allocation27_spill]] }
 0x5d1   : > { %p36_p5 = scmp.ge.s32.totalorder %s8194_s16, 4  }
 0x5d2   : > { %s8198_s30 = smov %s8195_s27 }
 0x5d3   :  { %38 = sbr.rel (!%p36_p5) target bundleno = 20 (0x14), region = 178 }
 0x5d8   :  { %4610 = vsyncpa [#allocation3], 1 }
 0x5d9   :  { %4612 = vsyncpa [#allocation3 + $0x1], 1 }
 0x5da   :  { %4613 = vsyncpa [#allocation6], 1 }
 0x5db   :  { %4615 = vsyncpa [#allocation6 + $0x1], 1 }
 0x5dc   :  { %4616 = vsyncpa [#allocation9], 1 }
 0x5dd   :  { %4617 = vsyncpa [#allocation12], 1 }
 0x5de   :  { %4618 = vsyncpa [#allocation4], 1 }
 0x5df   :  { %4620 = vsyncpa [#allocation4 + $0x1], 1 }
 0x5e0   :  { %4621 = vsyncpa [#allocation16], 1 }
 0x5e1   :  { %4623 = vsyncpa [#allocation16 + $0x1], 1 }

</bundles_post_ra>
